<compile_context>
chip_gen: v7x
topology: tpu7x:2x2x1
jax: 0.10.0
libtpu: 0.0.40
codegen_flags: <defaults>
</compile_context>

<pallas_src>
import jax
import jax.numpy as jnp
import numpy as np
from jax.experimental import pallas as pl
from jax.experimental.pallas import tpu as pltpu


# ----------------------------------------------------------------------------
# Fused kernel: conv1 -> conv2 -> conv3 -> global max pool -> fc1 -> fc2
# One grid step processes `bpi` images; everything stays in VMEM.
# ----------------------------------------------------------------------------
def fused_keypoint_kernel(x_ref,
                          w1_ref, b1_ref, w2_ref, b2_ref, w3_ref, b3_ref,
                          f1w_ref, f1b_ref, f2w_ref, f2b_ref,
                          o_ref,
                          pad1_ref, pad2_ref, pad3_ref,
                          col1_ref, col2_ref, col3_ref):
    bpi, H, W, _ = x_ref.shape
    M = bpi * H * W

    def conv3x3_relu(pad_ref, col_ref, act_nhwc, wflat_ref, b_ref):
        # act_nhwc: (bpi, H, W, cin) f32.  Returns (M, cout) f32.
        cin = pad_ref.shape[-1]
        # Zero halo + interior write.  Scratch persists across grid steps and
        # the grid axis is 'parallel', so re-zero every step (a few vreg
        # stores -- cheap) instead of relying on a "first step" init.
        pad_ref[...] = jnp.zeros_like(pad_ref)
        pad_ref[:, 1:H + 1, 1:W + 1, :] = act_nhwc
        p = pad_ref[...]
        # im2col into VMEM scratch: column index = (dy*3 + dx)*cin + c, which
        # matches the host-side HWIO -> (9*cin, cout) weight reshape.
        j = 0
        for dy in range(3):
            for dx in range(3):
                col_ref[:, j * cin:(j + 1) * cin] = (
                    p[:, dy:dy + H, dx:dx + W, :].reshape(M, cin))
                j += 1
        # Single large-K MXU matmul, bf16 operands, f32 accumulation.
        acc = jnp.dot(col_ref[...].astype(jnp.bfloat16), wflat_ref[...],
                      preferred_element_type=jnp.float32)
        return jnp.maximum(acc + b_ref[...], 0.0)

    a1 = conv3x3_relu(pad1_ref, col1_ref, x_ref[...], w1_ref, b1_ref)
    a2 = conv3x3_relu(pad2_ref, col2_ref,
                      a1.reshape(bpi, H, W, a1.shape[-1]), w2_ref, b2_ref)
    a3 = conv3x3_relu(pad3_ref, col3_ref,
                      a2.reshape(bpi, H, W, a2.shape[-1]), w3_ref, b3_ref)

    # Global max pool (AdaptiveMaxPool2d((1, 1))) folded into the same kernel:
    # the (bpi, H, W, 256) conv3 activation never leaves VMEM.
    pooled = jnp.max(a3.reshape(bpi, H * W, a3.shape[-1]), axis=1)  # (bpi, C3)

    # Tiny FC head (M = bpi) -- kept in f32.
    h = jnp.dot(pooled, f1w_ref[...], preferred_element_type=jnp.float32)
    h = jnp.maximum(h + f1b_ref[...], 0.0)
    out = jnp.dot(h, f2w_ref[...], preferred_element_type=jnp.float32)
    o_ref[0] = out + f2b_ref[...]


def _pick_images_per_step(B, H, W):
    # Smallest divisor of B whose M = bpi*H*W fills >=128 MXU rows; keeping it
    # small also keeps the grid extent >= 2 when possible (v7x megacore).
    for cand in range(1, B + 1):
        if B % cand == 0 and cand * H * W >= 128:
            return cand
    return B


def keypoint_pallas(x_nhwc, p, images_per_step=None):
    B, H, W, Cin = x_nhwc.shape
    C1 = p["c1w"].shape[-1]
    C2 = p["c2w"].shape[-1]
    C3 = p["c3w"].shape[-1]
    K3 = p["f2w"].shape[-1]

    bpi = images_per_step or _pick_images_per_step(B, H, W)
    assert B % bpi == 0, "batch must be divisible by images_per_step"
    nsteps = B // bpi
    M = bpi * H * W

    # Pre-flatten conv weights host-side to 2-D (9*Cin, Cout) slabs, bf16.
    w1f = p["c1w"].reshape(9 * Cin, C1).astype(jnp.bfloat16)
    w2f = p["c2w"].reshape(9 * C1, C2).astype(jnp.bfloat16)
    w3f = p["c3w"].reshape(9 * C2, C3).astype(jnp.bfloat16)
    b1 = p["c1b"].reshape(1, C1).astype(jnp.float32)
    b2 = p["c2b"].reshape(1, C2).astype(jnp.float32)
    b3 = p["c3b"].reshape(1, C3).astype(jnp.float32)
    f1w = p["f1w"].astype(jnp.float32)
    f1b = p["f1b"].reshape(1, -1).astype(jnp.float32)
    f2w = p["f2w"].astype(jnp.float32)
    f2b = p["f2b"].reshape(1, -1).astype(jnp.float32)

    grid_spec = pltpu.PrefetchScalarGridSpec(
        num_scalar_prefetch=0,
        grid=(nsteps,),
        in_specs=[
            pl.BlockSpec((bpi, H, W, Cin), lambda i: (i, 0, 0, 0)),
            pl.BlockSpec(w1f.shape, lambda i: (0, 0)),
            pl.BlockSpec(b1.shape, lambda i: (0, 0)),
            pl.BlockSpec(w2f.shape, lambda i: (0, 0)),
            pl.BlockSpec(b2.shape, lambda i: (0, 0)),
            pl.BlockSpec(w3f.shape, lambda i: (0, 0)),
            pl.BlockSpec(b3.shape, lambda i: (0, 0)),
            pl.BlockSpec(f1w.shape, lambda i: (0, 0)),
            pl.BlockSpec(f1b.shape, lambda i: (0, 0)),
            pl.BlockSpec(f2w.shape, lambda i: (0, 0)),
            pl.BlockSpec(f2b.shape, lambda i: (0, 0)),
        ],
        # 3-D output so the per-step block equals the full last-two dims.
        out_specs=pl.BlockSpec((1, bpi, K3), lambda i: (i, 0, 0)),
        scratch_shapes=[
            pltpu.VMEM((bpi, H + 2, W + 2, Cin), jnp.float32),   # pad1
            pltpu.VMEM((bpi, H + 2, W + 2, C1), jnp.float32),    # pad2
            pltpu.VMEM((bpi, H + 2, W + 2, C2), jnp.float32),    # pad3
            pltpu.VMEM((M, 9 * Cin), jnp.float32),               # col1
            pltpu.VMEM((M, 9 * C1), jnp.float32),                # col2
            pltpu.VMEM((M, 9 * C2), jnp.float32),                # col3
        ],
    )

    out = pl.pallas_call(
        fused_keypoint_kernel,
        out_shape=jax.ShapeDtypeStruct((nsteps, bpi, K3), jnp.float32),
        grid_spec=grid_spec,
        compiler_params=pltpu.CompilerParams(
            dimension_semantics=("parallel",)),
    )(x_nhwc, w1f, b1, w2f, b2, w3f, b3, f1w, f1b, f2w, f2b)

    return out.reshape(B, -1, 3)  # (B, num_keypoints, 3)


# ----------------------------------------------------------------------------
# Full forward pass (matches KeypointPredictionNetwork.forward).
# ----------------------------------------------------------------------------
@jax.jit
def keypoint_forward(x_raw, params):
    # x_raw: (B, H, C_in, W) -> NHWC (B, H, W, C_in)
    # (equivalent of permute(0,1,3,2).permute(0,3,1,2) -> NCHW in PyTorch).
    x = jnp.transpose(x_raw, (0, 1, 3, 2))
    return keypoint_pallas(x, params)


# ----------------------------------------------------------------------------
# Pure-JAX reference (f32) for verification.
# ----------------------------------------------------------------------------
def reference_forward(x_raw, p):
    x = jnp.transpose(x_raw, (0, 1, 3, 2))
    dn = ("NHWC", "HWIO", "NHWC")
    for wk, bk in (("c1w", "c1b"), ("c2w", "c2b"), ("c3w", "c3b")):
        x = jax.lax.conv_general_dilated(x, p[wk], (1, 1), "SAME",
                                         dimension_numbers=dn)
        x = jax.nn.relu(x + p[bk])
    x = jnp.max(x, axis=(1, 2))                          # adaptive max pool (1,1)
    x = jax.nn.relu(x @ p["f1w"] + p["f1b"])
    x = x @ p["f2w"] + p["f2b"]
    return x.reshape(x.shape[0], -1, 3)


def make_params(key, input_channels=5, num_keypoints=12):
    ks = jax.random.split(key, 10)
    s = 0.05
    return {
        "c1w": s * jax.random.normal(ks[0], (3, 3, input_channels, 64), jnp.float32),
        "c1b": s * jax.random.normal(ks[1], (64,), jnp.float32),
        "c2w": s * jax.random.normal(ks[2], (3, 3, 64, 128), jnp.float32),
        "c2b": s * jax.random.normal(ks[3], (128,), jnp.float32),
        "c3w": s * jax.random.normal(ks[4], (3, 3, 128, 256), jnp.float32),
        "c3b": s * jax.random.normal(ks[5], (256,), jnp.float32),
        "f1w": s * jax.random.normal(ks[6], (256, 128), jnp.float32),
        "f1b": s * jax.random.normal(ks[7], (128,), jnp.float32),
        "f2w": s * jax.random.normal(ks[8], (128, num_keypoints * 3), jnp.float32),
        "f2b": s * jax.random.normal(ks[9], (num_keypoints * 3,), jnp.float32),
    }


if __name__ == "__main__":
    key = jax.random.PRNGKey(0)
    k_in, k_par = jax.random.split(key)

    # B=4 so the batch grid has 2 parallel steps of 2 images each
    # (M = 2*8*8 = 128 MXU rows per step, and both v7x TCs get work).
    B, H, W, C_IN, NUM_KP = 4, 8, 8, 5, 12
    # Raw input layout expected by the PyTorch forward: (B, H, C_in, W)
    x = jax.random.normal(k_in, (B, H, C_IN, W), jnp.float32)
    params = make_params(k_par, input_channels=C_IN, num_keypoints=NUM_KP)

    out = jax.block_until_ready(keypoint_forward(x, params))
    assert out.shape == (B, NUM_KP, 3), out.shape

    ref = jax.block_until_ready(reference_forward(x, params))
    if not np.allclose(np.asarray(out), np.asarray(ref), rtol=3e-2, atol=3e-2):
        raise AssertionError("Pallas output mismatch vs JAX reference")

    print("KERNEL_OK")
</pallas_src>

<mosaic_0001>
module attributes {stable_mosaic.version = 11 : i64} {
  func.func @fused_keypoint_kernel(%arg0: i32, %arg1: memref<2x8x8x5xf32, #tpu.memory_space<vmem>>, %arg2: memref<45x64xbf16, #tpu.memory_space<vmem>>, %arg3: memref<1x64xf32, #tpu.memory_space<vmem>>, %arg4: memref<576x128xbf16, #tpu.memory_space<vmem>>, %arg5: memref<1x128xf32, #tpu.memory_space<vmem>>, %arg6: memref<1152x256xbf16, #tpu.memory_space<vmem>>, %arg7: memref<1x256xf32, #tpu.memory_space<vmem>>, %arg8: memref<256x128xf32, #tpu.memory_space<vmem>>, %arg9: memref<1x128xf32, #tpu.memory_space<vmem>>, %arg10: memref<128x36xf32, #tpu.memory_space<vmem>>, %arg11: memref<1x36xf32, #tpu.memory_space<vmem>>, %arg12: memref<1x2x36xf32, #tpu.memory_space<vmem>>, %arg13: memref<2x10x10x5xf32, #tpu.memory_space<vmem>>, %arg14: memref<2x10x10x64xf32, #tpu.memory_space<vmem>>, %arg15: memref<2x10x10x128xf32, #tpu.memory_space<vmem>>, %arg16: memref<128x45xf32, #tpu.memory_space<vmem>>, %arg17: memref<128x576xf32, #tpu.memory_space<vmem>>, %arg18: memref<128x1152xf32, #tpu.memory_space<vmem>>) attributes {dimension_semantics = [#tpu.dimension_semantics<parallel>], iteration_bounds = array<i64: 2>, scalar_prefetch = 0 : i64, scratch_operands = 6 : i64, tpu.core_type = #tpu.core_type<tc>, window_params = [{transform_indices = @transform_0, window_bounds = array<i64: 2, 8, 8, 5>}, {pipeline_mode = #tpu.pipeline_mode<synchronous>, transform_indices = @transform_1, window_bounds = array<i64: 45, 64>}, {pipeline_mode = #tpu.pipeline_mode<synchronous>, transform_indices = @transform_2, window_bounds = array<i64: 1, 64>}, {pipeline_mode = #tpu.pipeline_mode<synchronous>, transform_indices = @transform_3, window_bounds = array<i64: 576, 128>}, {pipeline_mode = #tpu.pipeline_mode<synchronous>, transform_indices = @transform_4, window_bounds = array<i64: 1, 128>}, {pipeline_mode = #tpu.pipeline_mode<synchronous>, transform_indices = @transform_5, window_bounds = array<i64: 1152, 256>}, {pipeline_mode = #tpu.pipeline_mode<synchronous>, transform_indices = @transform_6, window_bounds = array<i64: 1, 256>}, {pipeline_mode = #tpu.pipeline_mode<synchronous>, transform_indices = @transform_7, window_bounds = array<i64: 256, 128>}, {pipeline_mode = #tpu.pipeline_mode<synchronous>, transform_indices = @transform_8, window_bounds = array<i64: 1, 128>}, {pipeline_mode = #tpu.pipeline_mode<synchronous>, transform_indices = @transform_9, window_bounds = array<i64: 128, 36>}, {pipeline_mode = #tpu.pipeline_mode<synchronous>, transform_indices = @transform_10, window_bounds = array<i64: 1, 36>}, {transform_indices = @transform_11, window_bounds = array<i64: 1, 2, 36>}]} {
    %c0 = arith.constant 0 : index
    %c0_0 = arith.constant 0 : index
    %c0_1 = arith.constant 0 : index
    %c0_2 = arith.constant 0 : index
    %0 = vector.load %arg1[%c0, %c0_0, %c0_1, %c0_2] : memref<2x8x8x5xf32, #tpu.memory_space<vmem>>, vector<2x8x8x5xf32>
    %cst = arith.constant 0.000000e+00 : f32
    %1 = vector.broadcast %cst : f32 to vector<2x10x10x5xf32>
    %c0_3 = arith.constant 0 : index
    %c0_4 = arith.constant 0 : index
    %c0_5 = arith.constant 0 : index
    %c0_6 = arith.constant 0 : index
    %2 = vector.load %arg13[%c0_3, %c0_4, %c0_5, %c0_6] : memref<2x10x10x5xf32, #tpu.memory_space<vmem>>, vector<2x10x10x5xf32>
    tpu.vector_store %arg13[%c0_3, %c0_4, %c0_5, %c0_6], %1 {strides = array<i32>} : memref<2x10x10x5xf32, #tpu.memory_space<vmem>>, vector<2x10x10x5xf32>,
    %c0_7 = arith.constant 0 : index
    %c1 = arith.constant 1 : index
    %c1_8 = arith.constant 1 : index
    %c0_9 = arith.constant 0 : index
    %3 = vector.load %arg13[%c0_7, %c1, %c1_8, %c0_9] : memref<2x10x10x5xf32, #tpu.memory_space<vmem>>, vector<2x8x8x5xf32>
    tpu.vector_store %arg13[%c0_7, %c1, %c1_8, %c0_9], %0 {strides = array<i32>} : memref<2x10x10x5xf32, #tpu.memory_space<vmem>>, vector<2x8x8x5xf32>,
    %c0_10 = arith.constant 0 : index
    %c0_11 = arith.constant 0 : index
    %c0_12 = arith.constant 0 : index
    %c0_13 = arith.constant 0 : index
    %4 = vector.load %arg13[%c0_10, %c0_11, %c0_12, %c0_13] : memref<2x10x10x5xf32, #tpu.memory_space<vmem>>, vector<2x10x10x5xf32>
    %5 = vector.extract_strided_slice %4 {offsets = [0, 0, 0, 0], sizes = [2, 8, 8, 5], strides = [1, 1, 1, 1]} : vector<2x10x10x5xf32> to vector<2x8x8x5xf32>
    %6 = vector.shape_cast %5 : vector<2x8x8x5xf32> to vector<128x5xf32>
    %c0_14 = arith.constant 0 : index
    %c0_15 = arith.constant 0 : index
    %7 = vector.load %arg16[%c0_14, %c0_15] : memref<128x45xf32, #tpu.memory_space<vmem>>, vector<128x5xf32>
    tpu.vector_store %arg16[%c0_14, %c0_15], %6 {strides = array<i32>} : memref<128x45xf32, #tpu.memory_space<vmem>>, vector<128x5xf32>,
    %8 = vector.extract_strided_slice %4 {offsets = [0, 0, 1, 0], sizes = [2, 8, 8, 5], strides = [1, 1, 1, 1]} : vector<2x10x10x5xf32> to vector<2x8x8x5xf32>
    %9 = vector.shape_cast %8 : vector<2x8x8x5xf32> to vector<128x5xf32>
    %c0_16 = arith.constant 0 : index
    %c5 = arith.constant 5 : index
    %10 = vector.load %arg16[%c0_16, %c5] : memref<128x45xf32, #tpu.memory_space<vmem>>, vector<128x5xf32>
    tpu.vector_store %arg16[%c0_16, %c5], %9 {strides = array<i32>} : memref<128x45xf32, #tpu.memory_space<vmem>>, vector<128x5xf32>,
    %11 = vector.extract_strided_slice %4 {offsets = [0, 0, 2, 0], sizes = [2, 8, 8, 5], strides = [1, 1, 1, 1]} : vector<2x10x10x5xf32> to vector<2x8x8x5xf32>
    %12 = vector.shape_cast %11 : vector<2x8x8x5xf32> to vector<128x5xf32>
    %c0_17 = arith.constant 0 : index
    %c10 = arith.constant 10 : index
    %13 = vector.load %arg16[%c0_17, %c10] : memref<128x45xf32, #tpu.memory_space<vmem>>, vector<128x5xf32>
    tpu.vector_store %arg16[%c0_17, %c10], %12 {strides = array<i32>} : memref<128x45xf32, #tpu.memory_space<vmem>>, vector<128x5xf32>,
    %14 = vector.extract_strided_slice %4 {offsets = [0, 1, 0, 0], sizes = [2, 8, 8, 5], strides = [1, 1, 1, 1]} : vector<2x10x10x5xf32> to vector<2x8x8x5xf32>
    %15 = vector.shape_cast %14 : vector<2x8x8x5xf32> to vector<128x5xf32>
    %c0_18 = arith.constant 0 : index
    %c15 = arith.constant 15 : index
    %16 = vector.load %arg16[%c0_18, %c15] : memref<128x45xf32, #tpu.memory_space<vmem>>, vector<128x5xf32>
    tpu.vector_store %arg16[%c0_18, %c15], %15 {strides = array<i32>} : memref<128x45xf32, #tpu.memory_space<vmem>>, vector<128x5xf32>,
    %17 = vector.extract_strided_slice %4 {offsets = [0, 1, 1, 0], sizes = [2, 8, 8, 5], strides = [1, 1, 1, 1]} : vector<2x10x10x5xf32> to vector<2x8x8x5xf32>
    %18 = vector.shape_cast %17 : vector<2x8x8x5xf32> to vector<128x5xf32>
    %c0_19 = arith.constant 0 : index
    %c20 = arith.constant 20 : index
    %19 = vector.load %arg16[%c0_19, %c20] : memref<128x45xf32, #tpu.memory_space<vmem>>, vector<128x5xf32>
    tpu.vector_store %arg16[%c0_19, %c20], %18 {strides = array<i32>} : memref<128x45xf32, #tpu.memory_space<vmem>>, vector<128x5xf32>,
    %20 = vector.extract_strided_slice %4 {offsets = [0, 1, 2, 0], sizes = [2, 8, 8, 5], strides = [1, 1, 1, 1]} : vector<2x10x10x5xf32> to vector<2x8x8x5xf32>
    %21 = vector.shape_cast %20 : vector<2x8x8x5xf32> to vector<128x5xf32>
    %c0_20 = arith.constant 0 : index
    %c25 = arith.constant 25 : index
    %22 = vector.load %arg16[%c0_20, %c25] : memref<128x45xf32, #tpu.memory_space<vmem>>, vector<128x5xf32>
    tpu.vector_store %arg16[%c0_20, %c25], %21 {strides = array<i32>} : memref<128x45xf32, #tpu.memory_space<vmem>>, vector<128x5xf32>,
    %23 = vector.extract_strided_slice %4 {offsets = [0, 2, 0, 0], sizes = [2, 8, 8, 5], strides = [1, 1, 1, 1]} : vector<2x10x10x5xf32> to vector<2x8x8x5xf32>
    %24 = vector.shape_cast %23 : vector<2x8x8x5xf32> to vector<128x5xf32>
    %c0_21 = arith.constant 0 : index
    %c30 = arith.constant 30 : index
    %25 = vector.load %arg16[%c0_21, %c30] : memref<128x45xf32, #tpu.memory_space<vmem>>, vector<128x5xf32>
    tpu.vector_store %arg16[%c0_21, %c30], %24 {strides = array<i32>} : memref<128x45xf32, #tpu.memory_space<vmem>>, vector<128x5xf32>,
    %26 = vector.extract_strided_slice %4 {offsets = [0, 2, 1, 0], sizes = [2, 8, 8, 5], strides = [1, 1, 1, 1]} : vector<2x10x10x5xf32> to vector<2x8x8x5xf32>
    %27 = vector.shape_cast %26 : vector<2x8x8x5xf32> to vector<128x5xf32>
    %c0_22 = arith.constant 0 : index
    %c35 = arith.constant 35 : index
    %28 = vector.load %arg16[%c0_22, %c35] : memref<128x45xf32, #tpu.memory_space<vmem>>, vector<128x5xf32>
    tpu.vector_store %arg16[%c0_22, %c35], %27 {strides = array<i32>} : memref<128x45xf32, #tpu.memory_space<vmem>>, vector<128x5xf32>,
    %29 = vector.extract_strided_slice %4 {offsets = [0, 2, 2, 0], sizes = [2, 8, 8, 5], strides = [1, 1, 1, 1]} : vector<2x10x10x5xf32> to vector<2x8x8x5xf32>
    %30 = vector.shape_cast %29 : vector<2x8x8x5xf32> to vector<128x5xf32>
    %c0_23 = arith.constant 0 : index
    %c40 = arith.constant 40 : index
    %31 = vector.load %arg16[%c0_23, %c40] : memref<128x45xf32, #tpu.memory_space<vmem>>, vector<128x5xf32>
    tpu.vector_store %arg16[%c0_23, %c40], %30 {strides = array<i32>} : memref<128x45xf32, #tpu.memory_space<vmem>>, vector<128x5xf32>,
    %c0_24 = arith.constant 0 : index
    %c0_25 = arith.constant 0 : index
    %32 = vector.load %arg16[%c0_24, %c0_25] : memref<128x45xf32, #tpu.memory_space<vmem>>, vector<128x45xf32>
    %33 = arith.truncf %32 : vector<128x45xf32> to vector<128x45xbf16>
    %c0_26 = arith.constant 0 : index
    %c0_27 = arith.constant 0 : index
    %34 = vector.load %arg2[%c0_26, %c0_27] : memref<45x64xbf16, #tpu.memory_space<vmem>>, vector<45x64xbf16>
    %cst_28 = arith.constant dense<0.000000e+00> : vector<128x64xf32>
    %35 = tpu.matmul %33, %34, %cst_28 {dimension_numbers = #tpu.dot_dimension_numbers<[1], [0], [0], [1], [0, 0, 1, 1], [], []>} : vector<128x45xbf16>, vector<45x64xbf16>, vector<128x64xf32> -> vector<128x64xf32>
    %c0_29 = arith.constant 0 : index
    %c0_30 = arith.constant 0 : index
    %36 = vector.load %arg3[%c0_29, %c0_30] : memref<1x64xf32, #tpu.memory_space<vmem>>, vector<1x64xf32>
    %37 = vector.broadcast %36 : vector<1x64xf32> to vector<128x64xf32>
    %38 = arith.addf %35, %37 : vector<128x64xf32>
    %cst_31 = arith.constant 0.000000e+00 : f32
    %39 = vector.broadcast %cst_31 : f32 to vector<128x64xf32>
    %40 = arith.maximumf %38, %39 : vector<128x64xf32>
    %41 = vector.shape_cast %40 : vector<128x64xf32> to vector<2x8x8x64xf32>
    %cst_32 = arith.constant 0.000000e+00 : f32
    %42 = vector.broadcast %cst_32 : f32 to vector<2x10x10x64xf32>
    %c0_33 = arith.constant 0 : index
    %c0_34 = arith.constant 0 : index
    %c0_35 = arith.constant 0 : index
    %c0_36 = arith.constant 0 : index
    %43 = vector.load %arg14[%c0_33, %c0_34, %c0_35, %c0_36] : memref<2x10x10x64xf32, #tpu.memory_space<vmem>>, vector<2x10x10x64xf32>
    tpu.vector_store %arg14[%c0_33, %c0_34, %c0_35, %c0_36], %42 {strides = array<i32>} : memref<2x10x10x64xf32, #tpu.memory_space<vmem>>, vector<2x10x10x64xf32>,
    %c0_37 = arith.constant 0 : index
    %c1_38 = arith.constant 1 : index
    %c1_39 = arith.constant 1 : index
    %c0_40 = arith.constant 0 : index
    %44 = vector.load %arg14[%c0_37, %c1_38, %c1_39, %c0_40] : memref<2x10x10x64xf32, #tpu.memory_space<vmem>>, vector<2x8x8x64xf32>
    tpu.vector_store %arg14[%c0_37, %c1_38, %c1_39, %c0_40], %41 {strides = array<i32>} : memref<2x10x10x64xf32, #tpu.memory_space<vmem>>, vector<2x8x8x64xf32>,
    %c0_41 = arith.constant 0 : index
    %c0_42 = arith.constant 0 : index
    %c0_43 = arith.constant 0 : index
    %c0_44 = arith.constant 0 : index
    %45 = vector.load %arg14[%c0_41, %c0_42, %c0_43, %c0_44] : memref<2x10x10x64xf32, #tpu.memory_space<vmem>>, vector<2x10x10x64xf32>
    %46 = vector.extract_strided_slice %45 {offsets = [0, 0, 0, 0], sizes = [2, 8, 8, 64], strides = [1, 1, 1, 1]} : vector<2x10x10x64xf32> to vector<2x8x8x64xf32>
    %47 = vector.shape_cast %46 : vector<2x8x8x64xf32> to vector<128x64xf32>
    %c0_45 = arith.constant 0 : index
    %c0_46 = arith.constant 0 : index
    %48 = vector.load %arg17[%c0_45, %c0_46] : memref<128x576xf32, #tpu.memory_space<vmem>>, vector<128x64xf32>
    tpu.vector_store %arg17[%c0_45, %c0_46], %47 {strides = array<i32>} : memref<128x576xf32, #tpu.memory_space<vmem>>, vector<128x64xf32>,
    %49 = vector.extract_strided_slice %45 {offsets = [0, 0, 1, 0], sizes = [2, 8, 8, 64], strides = [1, 1, 1, 1]} : vector<2x10x10x64xf32> to vector<2x8x8x64xf32>
    %50 = vector.shape_cast %49 : vector<2x8x8x64xf32> to vector<128x64xf32>
    %c0_47 = arith.constant 0 : index
    %c64 = arith.constant 64 : index
    %51 = vector.load %arg17[%c0_47, %c64] : memref<128x576xf32, #tpu.memory_space<vmem>>, vector<128x64xf32>
    tpu.vector_store %arg17[%c0_47, %c64], %50 {strides = array<i32>} : memref<128x576xf32, #tpu.memory_space<vmem>>, vector<128x64xf32>,
    %52 = vector.extract_strided_slice %45 {offsets = [0, 0, 2, 0], sizes = [2, 8, 8, 64], strides = [1, 1, 1, 1]} : vector<2x10x10x64xf32> to vector<2x8x8x64xf32>
    %53 = vector.shape_cast %52 : vector<2x8x8x64xf32> to vector<128x64xf32>
    %c0_48 = arith.constant 0 : index
    %c128 = arith.constant 128 : index
    %54 = vector.load %arg17[%c0_48, %c128] : memref<128x576xf32, #tpu.memory_space<vmem>>, vector<128x64xf32>
    tpu.vector_store %arg17[%c0_48, %c128], %53 {strides = array<i32>} : memref<128x576xf32, #tpu.memory_space<vmem>>, vector<128x64xf32>,
    %55 = vector.extract_strided_slice %45 {offsets = [0, 1, 0, 0], sizes = [2, 8, 8, 64], strides = [1, 1, 1, 1]} : vector<2x10x10x64xf32> to vector<2x8x8x64xf32>
    %56 = vector.shape_cast %55 : vector<2x8x8x64xf32> to vector<128x64xf32>
    %c0_49 = arith.constant 0 : index
    %c192 = arith.constant 192 : index
    %57 = vector.load %arg17[%c0_49, %c192] : memref<128x576xf32, #tpu.memory_space<vmem>>, vector<128x64xf32>
    tpu.vector_store %arg17[%c0_49, %c192], %56 {strides = array<i32>} : memref<128x576xf32, #tpu.memory_space<vmem>>, vector<128x64xf32>,
    %58 = vector.extract_strided_slice %45 {offsets = [0, 1, 1, 0], sizes = [2, 8, 8, 64], strides = [1, 1, 1, 1]} : vector<2x10x10x64xf32> to vector<2x8x8x64xf32>
    %59 = vector.shape_cast %58 : vector<2x8x8x64xf32> to vector<128x64xf32>
    %c0_50 = arith.constant 0 : index
    %c256 = arith.constant 256 : index
    %60 = vector.load %arg17[%c0_50, %c256] : memref<128x576xf32, #tpu.memory_space<vmem>>, vector<128x64xf32>
    tpu.vector_store %arg17[%c0_50, %c256], %59 {strides = array<i32>} : memref<128x576xf32, #tpu.memory_space<vmem>>, vector<128x64xf32>,
    %61 = vector.extract_strided_slice %45 {offsets = [0, 1, 2, 0], sizes = [2, 8, 8, 64], strides = [1, 1, 1, 1]} : vector<2x10x10x64xf32> to vector<2x8x8x64xf32>
    %62 = vector.shape_cast %61 : vector<2x8x8x64xf32> to vector<128x64xf32>
    %c0_51 = arith.constant 0 : index
    %c320 = arith.constant 320 : index
    %63 = vector.load %arg17[%c0_51, %c320] : memref<128x576xf32, #tpu.memory_space<vmem>>, vector<128x64xf32>
    tpu.vector_store %arg17[%c0_51, %c320], %62 {strides = array<i32>} : memref<128x576xf32, #tpu.memory_space<vmem>>, vector<128x64xf32>,
    %64 = vector.extract_strided_slice %45 {offsets = [0, 2, 0, 0], sizes = [2, 8, 8, 64], strides = [1, 1, 1, 1]} : vector<2x10x10x64xf32> to vector<2x8x8x64xf32>
    %65 = vector.shape_cast %64 : vector<2x8x8x64xf32> to vector<128x64xf32>
    %c0_52 = arith.constant 0 : index
    %c384 = arith.constant 384 : index
    %66 = vector.load %arg17[%c0_52, %c384] : memref<128x576xf32, #tpu.memory_space<vmem>>, vector<128x64xf32>
    tpu.vector_store %arg17[%c0_52, %c384], %65 {strides = array<i32>} : memref<128x576xf32, #tpu.memory_space<vmem>>, vector<128x64xf32>,
    %67 = vector.extract_strided_slice %45 {offsets = [0, 2, 1, 0], sizes = [2, 8, 8, 64], strides = [1, 1, 1, 1]} : vector<2x10x10x64xf32> to vector<2x8x8x64xf32>
    %68 = vector.shape_cast %67 : vector<2x8x8x64xf32> to vector<128x64xf32>
    %c0_53 = arith.constant 0 : index
    %c448 = arith.constant 448 : index
    %69 = vector.load %arg17[%c0_53, %c448] : memref<128x576xf32, #tpu.memory_space<vmem>>, vector<128x64xf32>
    tpu.vector_store %arg17[%c0_53, %c448], %68 {strides = array<i32>} : memref<128x576xf32, #tpu.memory_space<vmem>>, vector<128x64xf32>,
    %70 = vector.extract_strided_slice %45 {offsets = [0, 2, 2, 0], sizes = [2, 8, 8, 64], strides = [1, 1, 1, 1]} : vector<2x10x10x64xf32> to vector<2x8x8x64xf32>
    %71 = vector.shape_cast %70 : vector<2x8x8x64xf32> to vector<128x64xf32>
    %c0_54 = arith.constant 0 : index
    %c512 = arith.constant 512 : index
    %72 = vector.load %arg17[%c0_54, %c512] : memref<128x576xf32, #tpu.memory_space<vmem>>, vector<128x64xf32>
    tpu.vector_store %arg17[%c0_54, %c512], %71 {strides = array<i32>} : memref<128x576xf32, #tpu.memory_space<vmem>>, vector<128x64xf32>,
    %c0_55 = arith.constant 0 : index
    %c0_56 = arith.constant 0 : index
    %73 = vector.load %arg17[%c0_55, %c0_56] : memref<128x576xf32, #tpu.memory_space<vmem>>, vector<128x576xf32>
    %74 = arith.truncf %73 : vector<128x576xf32> to vector<128x576xbf16>
    %c0_57 = arith.constant 0 : index
    %c0_58 = arith.constant 0 : index
    %75 = vector.load %arg4[%c0_57, %c0_58] : memref<576x128xbf16, #tpu.memory_space<vmem>>, vector<576x128xbf16>
    %cst_59 = arith.constant dense<0.000000e+00> : vector<128x128xf32>
    %76 = tpu.matmul %74, %75, %cst_59 {dimension_numbers = #tpu.dot_dimension_numbers<[1], [0], [0], [1], [0, 0, 1, 1], [], []>} : vector<128x576xbf16>, vector<576x128xbf16>, vector<128x128xf32> -> vector<128x128xf32>
    %c0_60 = arith.constant 0 : index
    %c0_61 = arith.constant 0 : index
    %77 = vector.load %arg5[%c0_60, %c0_61] : memref<1x128xf32, #tpu.memory_space<vmem>>, vector<1x128xf32>
    %78 = vector.broadcast %77 : vector<1x128xf32> to vector<128x128xf32>
    %79 = arith.addf %76, %78 : vector<128x128xf32>
    %cst_62 = arith.constant 0.000000e+00 : f32
    %80 = vector.broadcast %cst_62 : f32 to vector<128x128xf32>
    %81 = arith.maximumf %79, %80 : vector<128x128xf32>
    %82 = vector.shape_cast %81 : vector<128x128xf32> to vector<2x8x8x128xf32>
    %cst_63 = arith.constant 0.000000e+00 : f32
    %83 = vector.broadcast %cst_63 : f32 to vector<2x10x10x128xf32>
    %c0_64 = arith.constant 0 : index
    %c0_65 = arith.constant 0 : index
    %c0_66 = arith.constant 0 : index
    %c0_67 = arith.constant 0 : index
    %84 = vector.load %arg15[%c0_64, %c0_65, %c0_66, %c0_67] : memref<2x10x10x128xf32, #tpu.memory_space<vmem>>, vector<2x10x10x128xf32>
    tpu.vector_store %arg15[%c0_64, %c0_65, %c0_66, %c0_67], %83 {strides = array<i32>} : memref<2x10x10x128xf32, #tpu.memory_space<vmem>>, vector<2x10x10x128xf32>,
    %c0_68 = arith.constant 0 : index
    %c1_69 = arith.constant 1 : index
    %c1_70 = arith.constant 1 : index
    %c0_71 = arith.constant 0 : index
    %85 = vector.load %arg15[%c0_68, %c1_69, %c1_70, %c0_71] : memref<2x10x10x128xf32, #tpu.memory_space<vmem>>, vector<2x8x8x128xf32>
    tpu.vector_store %arg15[%c0_68, %c1_69, %c1_70, %c0_71], %82 {strides = array<i32>} : memref<2x10x10x128xf32, #tpu.memory_space<vmem>>, vector<2x8x8x128xf32>,
    %c0_72 = arith.constant 0 : index
    %c0_73 = arith.constant 0 : index
    %c0_74 = arith.constant 0 : index
    %c0_75 = arith.constant 0 : index
    %86 = vector.load %arg15[%c0_72, %c0_73, %c0_74, %c0_75] : memref<2x10x10x128xf32, #tpu.memory_space<vmem>>, vector<2x10x10x128xf32>
    %87 = vector.extract_strided_slice %86 {offsets = [0, 0, 0, 0], sizes = [2, 8, 8, 128], strides = [1, 1, 1, 1]} : vector<2x10x10x128xf32> to vector<2x8x8x128xf32>
    %88 = vector.shape_cast %87 : vector<2x8x8x128xf32> to vector<128x128xf32>
    %c0_76 = arith.constant 0 : index
    %c0_77 = arith.constant 0 : index
    %89 = vector.load %arg18[%c0_76, %c0_77] : memref<128x1152xf32, #tpu.memory_space<vmem>>, vector<128x128xf32>
    tpu.vector_store %arg18[%c0_76, %c0_77], %88 {strides = array<i32>} : memref<128x1152xf32, #tpu.memory_space<vmem>>, vector<128x128xf32>,
    %90 = vector.extract_strided_slice %86 {offsets = [0, 0, 1, 0], sizes = [2, 8, 8, 128], strides = [1, 1, 1, 1]} : vector<2x10x10x128xf32> to vector<2x8x8x128xf32>
    %91 = vector.shape_cast %90 : vector<2x8x8x128xf32> to vector<128x128xf32>
    %c0_78 = arith.constant 0 : index
    %c128_79 = arith.constant 128 : index
    %92 = vector.load %arg18[%c0_78, %c128_79] : memref<128x1152xf32, #tpu.memory_space<vmem>>, vector<128x128xf32>
    tpu.vector_store %arg18[%c0_78, %c128_79], %91 {strides = array<i32>} : memref<128x1152xf32, #tpu.memory_space<vmem>>, vector<128x128xf32>,
    %93 = vector.extract_strided_slice %86 {offsets = [0, 0, 2, 0], sizes = [2, 8, 8, 128], strides = [1, 1, 1, 1]} : vector<2x10x10x128xf32> to vector<2x8x8x128xf32>
    %94 = vector.shape_cast %93 : vector<2x8x8x128xf32> to vector<128x128xf32>
    %c0_80 = arith.constant 0 : index
    %c256_81 = arith.constant 256 : index
    %95 = vector.load %arg18[%c0_80, %c256_81] : memref<128x1152xf32, #tpu.memory_space<vmem>>, vector<128x128xf32>
    tpu.vector_store %arg18[%c0_80, %c256_81], %94 {strides = array<i32>} : memref<128x1152xf32, #tpu.memory_space<vmem>>, vector<128x128xf32>,
    %96 = vector.extract_strided_slice %86 {offsets = [0, 1, 0, 0], sizes = [2, 8, 8, 128], strides = [1, 1, 1, 1]} : vector<2x10x10x128xf32> to vector<2x8x8x128xf32>
    %97 = vector.shape_cast %96 : vector<2x8x8x128xf32> to vector<128x128xf32>
    %c0_82 = arith.constant 0 : index
    %c384_83 = arith.constant 384 : index
    %98 = vector.load %arg18[%c0_82, %c384_83] : memref<128x1152xf32, #tpu.memory_space<vmem>>, vector<128x128xf32>
    tpu.vector_store %arg18[%c0_82, %c384_83], %97 {strides = array<i32>} : memref<128x1152xf32, #tpu.memory_space<vmem>>, vector<128x128xf32>,
    %99 = vector.extract_strided_slice %86 {offsets = [0, 1, 1, 0], sizes = [2, 8, 8, 128], strides = [1, 1, 1, 1]} : vector<2x10x10x128xf32> to vector<2x8x8x128xf32>
    %100 = vector.shape_cast %99 : vector<2x8x8x128xf32> to vector<128x128xf32>
    %c0_84 = arith.constant 0 : index
    %c512_85 = arith.constant 512 : index
    %101 = vector.load %arg18[%c0_84, %c512_85] : memref<128x1152xf32, #tpu.memory_space<vmem>>, vector<128x128xf32>
    tpu.vector_store %arg18[%c0_84, %c512_85], %100 {strides = array<i32>} : memref<128x1152xf32, #tpu.memory_space<vmem>>, vector<128x128xf32>,
    %102 = vector.extract_strided_slice %86 {offsets = [0, 1, 2, 0], sizes = [2, 8, 8, 128], strides = [1, 1, 1, 1]} : vector<2x10x10x128xf32> to vector<2x8x8x128xf32>
    %103 = vector.shape_cast %102 : vector<2x8x8x128xf32> to vector<128x128xf32>
    %c0_86 = arith.constant 0 : index
    %c640 = arith.constant 640 : index
    %104 = vector.load %arg18[%c0_86, %c640] : memref<128x1152xf32, #tpu.memory_space<vmem>>, vector<128x128xf32>
    tpu.vector_store %arg18[%c0_86, %c640], %103 {strides = array<i32>} : memref<128x1152xf32, #tpu.memory_space<vmem>>, vector<128x128xf32>,
    %105 = vector.extract_strided_slice %86 {offsets = [0, 2, 0, 0], sizes = [2, 8, 8, 128], strides = [1, 1, 1, 1]} : vector<2x10x10x128xf32> to vector<2x8x8x128xf32>
    %106 = vector.shape_cast %105 : vector<2x8x8x128xf32> to vector<128x128xf32>
    %c0_87 = arith.constant 0 : index
    %c768 = arith.constant 768 : index
    %107 = vector.load %arg18[%c0_87, %c768] : memref<128x1152xf32, #tpu.memory_space<vmem>>, vector<128x128xf32>
    tpu.vector_store %arg18[%c0_87, %c768], %106 {strides = array<i32>} : memref<128x1152xf32, #tpu.memory_space<vmem>>, vector<128x128xf32>,
    %108 = vector.extract_strided_slice %86 {offsets = [0, 2, 1, 0], sizes = [2, 8, 8, 128], strides = [1, 1, 1, 1]} : vector<2x10x10x128xf32> to vector<2x8x8x128xf32>
    %109 = vector.shape_cast %108 : vector<2x8x8x128xf32> to vector<128x128xf32>
    %c0_88 = arith.constant 0 : index
    %c896 = arith.constant 896 : index
    %110 = vector.load %arg18[%c0_88, %c896] : memref<128x1152xf32, #tpu.memory_space<vmem>>, vector<128x128xf32>
    tpu.vector_store %arg18[%c0_88, %c896], %109 {strides = array<i32>} : memref<128x1152xf32, #tpu.memory_space<vmem>>, vector<128x128xf32>,
    %111 = vector.extract_strided_slice %86 {offsets = [0, 2, 2, 0], sizes = [2, 8, 8, 128], strides = [1, 1, 1, 1]} : vector<2x10x10x128xf32> to vector<2x8x8x128xf32>
    %112 = vector.shape_cast %111 : vector<2x8x8x128xf32> to vector<128x128xf32>
    %c0_89 = arith.constant 0 : index
    %c1024 = arith.constant 1024 : index
    %113 = vector.load %arg18[%c0_89, %c1024] : memref<128x1152xf32, #tpu.memory_space<vmem>>, vector<128x128xf32>
    tpu.vector_store %arg18[%c0_89, %c1024], %112 {strides = array<i32>} : memref<128x1152xf32, #tpu.memory_space<vmem>>, vector<128x128xf32>,
    %c0_90 = arith.constant 0 : index
    %c0_91 = arith.constant 0 : index
    %114 = vector.load %arg18[%c0_90, %c0_91] : memref<128x1152xf32, #tpu.memory_space<vmem>>, vector<128x1152xf32>
    %115 = arith.truncf %114 : vector<128x1152xf32> to vector<128x1152xbf16>
    %c0_92 = arith.constant 0 : index
    %c0_93 = arith.constant 0 : index
    %116 = vector.load %arg6[%c0_92, %c0_93] : memref<1152x256xbf16, #tpu.memory_space<vmem>>, vector<1152x256xbf16>
    %cst_94 = arith.constant dense<0.000000e+00> : vector<128x256xf32>
    %117 = tpu.matmul %115, %116, %cst_94 {dimension_numbers = #tpu.dot_dimension_numbers<[1], [0], [0], [1], [0, 0, 1, 1], [], []>} : vector<128x1152xbf16>, vector<1152x256xbf16>, vector<128x256xf32> -> vector<128x256xf32>
    %c0_95 = arith.constant 0 : index
    %c0_96 = arith.constant 0 : index
    %118 = vector.load %arg7[%c0_95, %c0_96] : memref<1x256xf32, #tpu.memory_space<vmem>>, vector<1x256xf32>
    %119 = vector.broadcast %118 : vector<1x256xf32> to vector<128x256xf32>
    %120 = arith.addf %117, %119 : vector<128x256xf32>
    %cst_97 = arith.constant 0.000000e+00 : f32
    %121 = vector.broadcast %cst_97 : f32 to vector<128x256xf32>
    %122 = arith.maximumf %120, %121 : vector<128x256xf32>
    %123 = vector.shape_cast %122 : vector<128x256xf32> to vector<2x64x256xf32>
    %cst_98 = arith.constant dense<0xFF800000> : vector<2x256xf32>
    %124 = vector.multi_reduction <maximumf>, %123, %cst_98 [1] : vector<2x64x256xf32> to vector<2x256xf32>
    %c0_99 = arith.constant 0 : index
    %c0_100 = arith.constant 0 : index
    %125 = vector.load %arg8[%c0_99, %c0_100] : memref<256x128xf32, #tpu.memory_space<vmem>>, vector<256x128xf32>
    %cst_101 = arith.constant dense<0.000000e+00> : vector<2x128xf32>
    %126 = tpu.matmul %124, %125, %cst_101 {dimension_numbers = #tpu.dot_dimension_numbers<[1], [0], [0], [1], [0, 0, 1, 1], [], []>} : vector<2x256xf32>, vector<256x128xf32>, vector<2x128xf32> -> vector<2x128xf32>
    %c0_102 = arith.constant 0 : index
    %c0_103 = arith.constant 0 : index
    %127 = vector.load %arg9[%c0_102, %c0_103] : memref<1x128xf32, #tpu.memory_space<vmem>>, vector<1x128xf32>
    %128 = vector.broadcast %127 : vector<1x128xf32> to vector<2x128xf32>
    %129 = arith.addf %126, %128 : vector<2x128xf32>
    %cst_104 = arith.constant 0.000000e+00 : f32
    %130 = vector.broadcast %cst_104 : f32 to vector<2x128xf32>
    %131 = arith.maximumf %129, %130 : vector<2x128xf32>
    %c0_105 = arith.constant 0 : index
    %c0_106 = arith.constant 0 : index
    %132 = vector.load %arg10[%c0_105, %c0_106] : memref<128x36xf32, #tpu.memory_space<vmem>>, vector<128x36xf32>
    %cst_107 = arith.constant dense<0.000000e+00> : vector<2x36xf32>
    %133 = tpu.matmul %131, %132, %cst_107 {dimension_numbers = #tpu.dot_dimension_numbers<[1], [0], [0], [1], [0, 0, 1, 1], [], []>} : vector<2x128xf32>, vector<128x36xf32>, vector<2x36xf32> -> vector<2x36xf32>
    %c0_108 = arith.constant 0 : index
    %c0_109 = arith.constant 0 : index
    %134 = vector.load %arg11[%c0_108, %c0_109] : memref<1x36xf32, #tpu.memory_space<vmem>>, vector<1x36xf32>
    %135 = vector.broadcast %134 : vector<1x36xf32> to vector<2x36xf32>
    %136 = arith.addf %133, %135 : vector<2x36xf32>
    %c0_110 = arith.constant 0 : index
    %c0_111 = arith.constant 0 : index
    %c0_112 = arith.constant 0 : index
    %137 = vector.load %arg12[%c0_110, %c0_111, %c0_112] : memref<1x2x36xf32, #tpu.memory_space<vmem>>, vector<1x2x36xf32>
    %138 = vector.shape_cast %137 : vector<1x2x36xf32> to vector<2x36xf32>
    %139 = vector.shape_cast %136 : vector<2x36xf32> to vector<1x2x36xf32>
    tpu.vector_store %arg12[%c0_110, %c0_111, %c0_112], %139 {strides = array<i32>} : memref<1x2x36xf32, #tpu.memory_space<vmem>>, vector<1x2x36xf32>,
    return
  }
  func.func @transform_0(%arg0: i32) -> (i32, i32, i32, i32) {
    %c0_i32 = arith.constant 0 : i32
    %c0_i32_0 = arith.constant 0 : i32
    %c0_i32_1 = arith.constant 0 : i32
    %c0_i32_2 = arith.constant 0 : i32
    return %arg0, %c0_i32, %c0_i32_0, %c0_i32_1 : i32, i32, i32, i32
  }
  func.func @transform_1(%arg0: i32) -> (i32, i32) {
    %c0_i32 = arith.constant 0 : i32
    %c0_i32_0 = arith.constant 0 : i32
    %c0_i32_1 = arith.constant 0 : i32
    return %c0_i32, %c0_i32_0 : i32, i32
  }
  func.func @transform_2(%arg0: i32) -> (i32, i32) {
    %c0_i32 = arith.constant 0 : i32
    %c0_i32_0 = arith.constant 0 : i32
    %c0_i32_1 = arith.constant 0 : i32
    return %c0_i32, %c0_i32_0 : i32, i32
  }
  func.func @transform_3(%arg0: i32) -> (i32, i32) {
    %c0_i32 = arith.constant 0 : i32
    %c0_i32_0 = arith.constant 0 : i32
    %c0_i32_1 = arith.constant 0 : i32
    return %c0_i32, %c0_i32_0 : i32, i32
  }
  func.func @transform_4(%arg0: i32) -> (i32, i32) {
    %c0_i32 = arith.constant 0 : i32
    %c0_i32_0 = arith.constant 0 : i32
    %c0_i32_1 = arith.constant 0 : i32
    return %c0_i32, %c0_i32_0 : i32, i32
  }
  func.func @transform_5(%arg0: i32) -> (i32, i32) {
    %c0_i32 = arith.constant 0 : i32
    %c0_i32_0 = arith.constant 0 : i32
    %c0_i32_1 = arith.constant 0 : i32
    return %c0_i32, %c0_i32_0 : i32, i32
  }
  func.func @transform_6(%arg0: i32) -> (i32, i32) {
    %c0_i32 = arith.constant 0 : i32
    %c0_i32_0 = arith.constant 0 : i32
    %c0_i32_1 = arith.constant 0 : i32
    return %c0_i32, %c0_i32_0 : i32, i32
  }
  func.func @transform_7(%arg0: i32) -> (i32, i32) {
    %c0_i32 = arith.constant 0 : i32
    %c0_i32_0 = arith.constant 0 : i32
    %c0_i32_1 = arith.constant 0 : i32
    return %c0_i32, %c0_i32_0 : i32, i32
  }
  func.func @transform_8(%arg0: i32) -> (i32, i32) {
    %c0_i32 = arith.constant 0 : i32
    %c0_i32_0 = arith.constant 0 : i32
    %c0_i32_1 = arith.constant 0 : i32
    return %c0_i32, %c0_i32_0 : i32, i32
  }
  func.func @transform_9(%arg0: i32) -> (i32, i32) {
    %c0_i32 = arith.constant 0 : i32
    %c0_i32_0 = arith.constant 0 : i32
    %c0_i32_1 = arith.constant 0 : i32
    return %c0_i32, %c0_i32_0 : i32, i32
  }
  func.func @transform_10(%arg0: i32) -> (i32, i32) {
    %c0_i32 = arith.constant 0 : i32
    %c0_i32_0 = arith.constant 0 : i32
    %c0_i32_1 = arith.constant 0 : i32
    return %c0_i32, %c0_i32_0 : i32, i32
  }
  func.func @transform_11(%arg0: i32) -> (i32, i32, i32) {
    %c0_i32 = arith.constant 0 : i32
    %c0_i32_0 = arith.constant 0 : i32
    %c0_i32_1 = arith.constant 0 : i32
    return %arg0, %c0_i32, %c0_i32_0 : i32, i32, i32
  }
}

</mosaic_0001>

<bundles_post_ra>
// kernel: keypoint_forward.1
= control target key start
LH: loop header
LB: loop body
LE: loop exit
PB: predicated region body
PF: predicated region fallthrough
CT: control target
= control target key end

     0   :  { %s6287_s17 = smov 0   ;;  %s8825_s0 = inlined_call_operand.vmem [shape: f32[4,8,8,5], index: 0, kind: input, shape index: {}]   ;;  %s8826_s1 = inlined_call_operand.vmem [shape: bf16[45,64], index: 1, kind: input, shape index: {}]   ;;  %s8827_s2 = inlined_call_operand.vmem [shape: f32[1,64], index: 2, kind: input, shape index: {}]   ;;  %s8828_s3 = inlined_call_operand.vmem [shape: bf16[576,128], index: 3, kind: input, shape index: {}]   ;;  %s8829_s4 = inlined_call_operand.vmem [shape: f32[1,128], index: 4, kind: input, shape index: {}]   ;;  %s8830_s5 = inlined_call_operand.vmem [shape: bf16[1152,256], index: 5, kind: input, shape index: {}]   ;;  %s8831_s6 = inlined_call_operand.vmem [shape: f32[1,256], index: 6, kind: input, shape index: {}]   ;;  %s8832_s7 = inlined_call_operand.vmem [shape: f32[256,128], index: 7, kind: input, shape index: {}]   ;;  %s8833_s8 = inlined_call_operand.vmem [shape: f32[1,128], index: 8, kind: input, shape index: {}]   ;;  %s8834_s9 = inlined_call_operand.vmem [shape: f32[128,36], index: 9, kind: input, shape index: {}]   ;;  %s8835_s10 = inlined_call_operand.vmem [shape: f32[1,36], index: 10, kind: input, shape index: {}]   ;;  %s8836_s11 = inlined_call_operand.vmem [shape: f32[2,2,36], index: 11, kind: output, shape index: {}]  }
   0x1 LB: > { %s6293_s18 = sadd.s32 4294967295, %s6211_s17   ;;  %p5196_p0 = scmp.ge.s32.totalorder %s6211_s17, 1  ;;  %s6211_s17 = sphi %s6287_s17, %s21_s17  }
   0x2   : > { %p339_p1 = scmp.lt.s32.totalorder %s6211_s17, 3 }
   0x4   : > { %p340_p2 = pnand %p5196_p0, %p339_p1 }
   0x6   : > { %343 = sbr.rel (%p340_p2) target bundleno = 1914 (0x77a), region = 64 }
   0xd   : > { %vm407_vm0 = vcmask 39936   ;;  %vm409_vm1 = vcmask 33792   ;;  %s5197_s19 = sshll.u32 %s6293_s18, 1  ;;  %v6213_v0 = vmov 0.0   ;;  %vm554_vm2 = vcmask 1046528   ;;  %s6214_s24 = smov 5  }
   0xe   : > { %408 = vst.msk [vmem:[#allocation2] sm:$0xff] %vm407_vm0, %v6213_v0  ;;  %411 = vst.msk [vmem:[#allocation2 + $0x10] sm:$0xff] %vm407_vm0, %v6213_v0  ;;  %p380_p3 = scmp.lt.s32.totalorder %s5197_s19, 3  ;;  %vm668_vm3 = vcmask 1045504   ;;  %s6215_s25 = smov 15   ;;  %vm651_vm4 = vcmask 80936  }
   0xf   : > { %410 = vst.msk [vmem:[#allocation2 + $0x8] sm:$0x3] %vm409_vm1, %v6213_v0  ;;  %412 = vst.msk [vmem:[#allocation2 + $0x18] sm:$0x3] %vm409_vm1, %v6213_v0  ;;  %s6216_s26 = smov 10   ;;  %s6217_s27 = smov 20  }
  0x10   : > { %413 = vst.msk [vmem:[#allocation2 + $0x20] sm:$0xff] %vm407_vm0, %v6213_v0  ;;  %415 = vst.msk [vmem:[#allocation2 + $0x30] sm:$0xff] %vm407_vm0, %v6213_v0  ;;  %s8901_s19 = smov (!%p380_p3, %s5197_s19), 3  ;;  %s6218_s28 = smov 25   ;;  %vm765_vm5 = vcmask 121936   ;;  %vm832_vm6 = vcmask 162936  }
  0x11   : > { %414 = vst.msk [vmem:[#allocation2 + $0x28] sm:$0x3] %vm409_vm1, %v6213_v0  ;;  %416 = vst.msk [vmem:[#allocation2 + $0x38] sm:$0x3] %vm409_vm1, %v6213_v0  ;;  %s5406_s20 = sshll.u32 %s8901_s19, 6  ;;  %s6219_s29 = smov 30  }
  0x12   : > { %417 = vst.msk [vmem:[#allocation2 + $0x40] sm:$0xff] %vm407_vm0, %v6213_v0  ;;  %419 = vst.msk [vmem:[#allocation2 + $0x50] sm:$0xff] %vm407_vm0, %v6213_v0  ;;  %s6422_s23 = scalar_lea.vmem %s8825_s0, %s5406_s20  ;;  %s6220_s13 = smov 35   ;;  %vm905_vm7 = vcmask 203936   ;;  %vm976_vm8 = vcmask 244936   ;;  %vm1043_vm9 = vcmask 285936  }
  0x13   : > { %418 = vst.msk [vmem:[#allocation2 + $0x48] sm:$0x3] %vm409_vm1, %v6213_v0  ;;  %420 = vst.msk [vmem:[#allocation2 + $0x58] sm:$0x3] %vm409_vm1, %v6213_v0  ;;  %v392_v1 = vld [vmem:[%s6422_s23 + $0x8] sm:$0xff]  ;;  %v391_v2 = vld [vmem:[%s6422_s23] sm:$0xff] }
  0x14   : > { %421 = vst.msk [vmem:[#allocation2 + $0x60] sm:$0xff] %vm407_vm0, %v6213_v0  ;;  %423 = vst.msk [vmem:[#allocation2 + $0x70] sm:$0xff] %vm407_vm0, %v6213_v0  ;;  %v393_v3 = vld [vmem:[%s6422_s23 + $0x10] sm:$0xff]  ;;  %v394_v6 = vld [vmem:[%s6422_s23 + $0x18] sm:$0xff]  ;;  %s6222_s20 = smov 40   ;;  %vm1116_vm10 = vcmask 326936  }
  0x15   : > { %422 = vst.msk [vmem:[#allocation2 + $0x68] sm:$0x3] %vm409_vm1, %v6213_v0  ;;  %424 = vst.msk [vmem:[#allocation2 + $0x78] sm:$0x3] %vm409_vm1, %v6213_v0  ;;  %v466_v4 = vld [vmem:[#allocation2] sm:$0xff]  ;;  %v397_v12 = vld [vmem:[%s6422_s23 + $0x30] sm:$0xff] }
  0x16   : > { %425 = vst.msk [vmem:[#allocation2 + $0x80] sm:$0xff] %vm407_vm0, %v6213_v0  ;;  %427 = vst.msk [vmem:[#allocation2 + $0x90] sm:$0xff] %vm407_vm0, %v6213_v0  ;;  %v467_v5 = vld [vmem:[#allocation2 + $0x8] sm:$0x3]  ;;  %v555_v7 = vrot.slane %v466_v4, 1  ;;  %v669_v9 = vrot.slane %v466_v4, 2 }
  0x17   : > { %426 = vst.msk [vmem:[#allocation2 + $0x88] sm:$0x3] %vm409_vm1, %v6213_v0  ;;  %428 = vst.msk [vmem:[#allocation2 + $0x98] sm:$0x3] %vm409_vm1, %v6213_v0  ;;  %v556_v8 = vrot.slane %v467_v5, 1  ;;  %v670_v10 = vrot.slane %v467_v5, 2 }
  0x18   : > { %429 = vst.msk [vmem:[#allocation2 + $0xa0] sm:$0xff] %vm407_vm0, %v6213_v0  ;;  %431 = vst.msk [vmem:[#allocation2 + $0xb0] sm:$0xff] %vm407_vm0, %v6213_v0  ;;  %v395_v11 = vld [vmem:[%s6422_s23 + $0x20] sm:$0xff]  ;;  %v396_v13 = vld [vmem:[%s6422_s23 + $0x28] sm:$0xff]  ;;  %vm1187_vm11 = vcmask 367936   ;;  %vm1258_vm12 = vcmask 367616  }
  0x19   : > { %430 = vst.msk [vmem:[#allocation2 + $0xa8] sm:$0x3] %vm409_vm1, %v6213_v0  ;;  %432 = vst.msk [vmem:[#allocation2 + $0xb8] sm:$0x3] %vm409_vm1, %v6213_v0  ;;  %v398_v14 = vld [vmem:[%s6422_s23 + $0x38] sm:$0xff]  ;;  %v557_v15 = vsel %vm554_vm2, %v555_v7, %v556_v8  ;;  %v399_v16 = vld [vmem:[%s6422_s23 + $0x40] sm:$0xff]  ;;  %v671_v20 = vsel %vm668_vm3, %v669_v9, %v670_v10 }
  0x1a   : > { %433 = vst.msk [vmem:[#allocation2 + $0xc0] sm:$0xff] %vm407_vm0, %v6213_v0  ;;  %435 = vst.msk [vmem:[#allocation2 + $0xd0] sm:$0xff] %vm407_vm0, %v6213_v0  ;;  %v401_v17 = vld [vmem:[%s6422_s23 + $0x50] sm:$0xff]  ;;  %603 = vrot.lane.b32.xlu0 %v557_v15, %s6214_s24  ;;  %v400_v19 = vld [vmem:[%s6422_s23 + $0x48] sm:$0xff]  ;;  %vm1401_vm13 = vcmask 523264   ;;  %vm1403_vm14 = vcmask 517120  }
  0x1b   : > { %434 = vst.msk [vmem:[#allocation2 + $0xc8] sm:$0x3] %vm409_vm1, %v6213_v0  ;;  %436 = vst.msk [vmem:[#allocation2 + $0xd8] sm:$0x3] %vm409_vm1, %v6213_v0  ;;  %v402_v51 = vld [vmem:[%s6422_s23 + $0x58] sm:$0xff]  ;;  %v403_v61 = vld [vmem:[%s6422_s23 + $0x60] sm:$0xff] }
  0x1c   : > { %437 = vst.msk [vmem:[#allocation2 + $0xe0] sm:$0xff] %vm407_vm0, %v6213_v0  ;;  %439 = vst.msk [vmem:[#allocation2 + $0xf0] sm:$0xff] %vm407_vm0, %v6213_v0  ;;  %v5947_v5 = vld [vmem:[%s8826_s1 + $0x10] sm:$0x7f]   ;;  %v404_v15 = vld [vmem:[%s6422_s23 + $0x68] sm:$0xff]  ;;  %s6223_s15 = smov 64  }
  0x1d   : > { %438 = vst.msk [vmem:[#allocation2 + $0xe8] sm:$0x3] %vm409_vm1, %v6213_v0  ;;  %440 = vst.msk [vmem:[#allocation2 + $0xf8] sm:$0x3] %vm409_vm1, %v6213_v0  ;;  %vm1644_vm15 = vcmask 1048064   ;;  %p386_p4 = scmp.lt.s32.totalorder %s6293_s18, 1 }
  0x1e   : > { %441 = vst.msk [vmem:[#allocation2 + $0x100] sm:$0xff] %vm407_vm0, %v6213_v0  ;;  %443 = vst.msk [vmem:[#allocation2 + $0x110] sm:$0xff] %vm407_vm0, %v6213_v0  ;;  %717 = vrot.lane.b32.xlu0 %v671_v20, %s6216_s26 }
  0x1f   : > { %442 = vst.msk [vmem:[#allocation2 + $0x108] sm:$0x3] %vm409_vm1, %v6213_v0  ;;  %444 = vst.msk [vmem:[#allocation2 + $0x118] sm:$0x3] %vm409_vm1, %v6213_v0  ;;  %v6446_v18 = vld [vmem:[#allocation2 + $0xa0] sm:$0xff]  ;;  %s8903_s18 = smov (!%p386_p4, %s6293_s18), 1 }
  0x20   : > { %445 = vst.msk [vmem:[#allocation2 + $0x120] sm:$0xff] %vm407_vm0, %v6213_v0  ;;  %447 = vst.msk [vmem:[#allocation2 + $0x130] sm:$0xff] %vm407_vm0, %v6213_v0  ;;  %s5200_s30 = sshll.u32 %s8903_s18, 1 }
  0x21   : > { %446 = vst.msk [vmem:[#allocation2 + $0x128] sm:$0x3] %vm409_vm1, %v6213_v0  ;;  %448 = vst.msk [vmem:[#allocation2 + $0x138] sm:$0x3] %vm409_vm1, %v6213_v0  ;;  %vm6226_vm1 = vmmov 0   ;;  %s389_s19 = scalar_lea.vmem %s8836_s11, %s5200_s30 }
  0x22   : > { %2743 = vst [vmem:[#allocation4] sm:$0xff] %v6213_v0  ;;  %2744 = vst [vmem:[#allocation4 + $0x8] sm:$0x3] %v6213_v0 }
  0x23   : > { %2745 = vst [vmem:[#allocation4 + $0x10] sm:$0xff] %v6213_v0  ;;  %2746 = vst [vmem:[#allocation4 + $0x18] sm:$0x3] %v6213_v0 }
  0x24   : > { %2747 = vst [vmem:[#allocation4 + $0x20] sm:$0xff] %v6213_v0  ;;  %2748 = vst [vmem:[#allocation4 + $0x28] sm:$0x3] %v6213_v0 }
  0x25   : > { %2749 = vst [vmem:[#allocation4 + $0x30] sm:$0xff] %v6213_v0  ;;  %2750 = vst [vmem:[#allocation4 + $0x38] sm:$0x3] %v6213_v0 }
  0x26   : > { %2751 = vst [vmem:[#allocation4 + $0x40] sm:$0xff] %v6213_v0  ;;  %2752 = vst [vmem:[#allocation4 + $0x48] sm:$0x3] %v6213_v0 }
  0x27   : > { %2753 = vst [vmem:[#allocation4 + $0x50] sm:$0xff] %v6213_v0  ;;  %2754 = vst [vmem:[#allocation4 + $0x58] sm:$0x3] %v6213_v0 }
  0x28   : > { %2755 = vst [vmem:[#allocation4 + $0x60] sm:$0xff] %v6213_v0  ;;  %2756 = vst [vmem:[#allocation4 + $0x68] sm:$0x3] %v6213_v0 }
  0x29   : > { %2757 = vst [vmem:[#allocation4 + $0x70] sm:$0xff] %v6213_v0  ;;  %2758 = vst [vmem:[#allocation4 + $0x78] sm:$0x3] %v6213_v0 }
  0x2a   : > { %2759 = vst [vmem:[#allocation4 + $0x80] sm:$0xff] %v6213_v0  ;;  %2760 = vst [vmem:[#allocation4 + $0x88] sm:$0x3] %v6213_v0 }
  0x2b   : > { %2762 = vst [vmem:[#allocation4 + $0x98] sm:$0x3] %v6213_v0  ;;  %2764 = vst [vmem:[#allocation4 + $0xa8] sm:$0x3] %v6213_v0 }
  0x2c   : > { %2765 = vst [vmem:[#allocation4 + $0xb0] sm:$0xff] %v6213_v0  ;;  %2766 = vst [vmem:[#allocation4 + $0xb8] sm:$0x3] %v6213_v0 }
  0x2d   : > { %2767 = vst [vmem:[#allocation4 + $0xc0] sm:$0xff] %v6213_v0  ;;  %2768 = vst [vmem:[#allocation4 + $0xc8] sm:$0x3] %v6213_v0 }
  0x2e   : > { %2769 = vst [vmem:[#allocation4 + $0xd0] sm:$0xff] %v6213_v0  ;;  %2770 = vst [vmem:[#allocation4 + $0xd8] sm:$0x3] %v6213_v0 }
  0x2f   : > { %2771 = vst [vmem:[#allocation4 + $0xe0] sm:$0xff] %v6213_v0  ;;  %2772 = vst [vmem:[#allocation4 + $0xe8] sm:$0x3] %v6213_v0 }
  0x30   : > { %2773 = vst [vmem:[#allocation4 + $0xf0] sm:$0xff] %v6213_v0  ;;  %2774 = vst [vmem:[#allocation4 + $0xf8] sm:$0x3] %v6213_v0 }
  0x31   : > { %2775 = vst [vmem:[#allocation4 + $0x100] sm:$0xff] %v6213_v0  ;;  %2776 = vst [vmem:[#allocation4 + $0x108] sm:$0x3] %v6213_v0 }
  0x32   : > { %2777 = vst [vmem:[#allocation4 + $0x110] sm:$0xff] %v6213_v0  ;;  %2778 = vst [vmem:[#allocation4 + $0x118] sm:$0x3] %v6213_v0 }
  0x33   : > { %2779 = vst [vmem:[#allocation4 + $0x120] sm:$0xff] %v6213_v0  ;;  %2780 = vst [vmem:[#allocation4 + $0x128] sm:$0x3] %v6213_v0 }
  0x34   : > { %2782 = vst [vmem:[#allocation4 + $0x138] sm:$0x3] %v6213_v0  ;;  %451 = vst.msk [vmem:[#allocation2 + $0x21] sm:$0xff] %vm407_vm0, %v392_v1  ;;  %v5945_v0 = vld [vmem:[%s8826_s1] sm:$0xff]  }
  0x35   : > { %450 = vst.msk [vmem:[#allocation2 + $0x11] sm:$0xff] %vm407_vm0, %v391_v2  ;;  %452 = vst.msk [vmem:[#allocation2 + $0x31] sm:$0xff] %vm407_vm0, %v393_v3  ;;  %5610 = vmatprep.subr.bf16.mxu0 %v5945_v0  ;;  %v5946_v3 = vld [vmem:[%s8826_s1 + $0x8] sm:$0xff]  }
  0x36   : > { %506 = vst.msk [vmem:[#allocation5] sm:$0xff] %vm407_vm0, %v466_v4  ;;  %453 = vst.msk [vmem:[#allocation2 + $0x41] sm:$0xff] %vm407_vm0, %v394_v6  ;;  %5611 = vmatpush3.bf16.msra.mxu0 %v5945_v0  ;;  %v6221_v6 = vmov 65535  }
  0x37   : > { %454 = vst.msk [vmem:[#allocation2 + $0x51] sm:$0xff] %vm407_vm0, %v395_v11  ;;  %456 = vst.msk [vmem:[#allocation2 + $0x71] sm:$0xff] %vm407_vm0, %v397_v12  ;;  %5612 = vmatprep.subr.bf16.mxu0 %v5946_v3  ;;  %v1283_v7 = vsel %vm668_vm3, 4294967295, %v6221_v6 }
  0x38   : > { %455 = vst.msk [vmem:[#allocation2 + $0x61] sm:$0xff] %vm407_vm0, %v396_v13  ;;  %457 = vst.msk [vmem:[#allocation2 + $0x81] sm:$0xff] %vm407_vm0, %v398_v14  ;;  %v1284_v8 = vsel %vm554_vm2, %v1283_v7, 0  ;;  %v405_v14 = vld [vmem:[%s6422_s23 + $0x70] sm:$0xff] }
  0x39   : > { %458 = vst.msk [vmem:[#allocation2 + $0xb1] sm:$0xff] %vm407_vm0, %v399_v16  ;;  %460 = vst.msk [vmem:[#allocation2 + $0xd1] sm:$0xff] %vm407_vm0, %v401_v17  ;;  %v1286_v9 = vand.u32 %v5947_v5, %v1284_v8 }
  0x3a   : > { %514 = vst.msk [vmem:[#allocation5 + $0x40] sm:$0xff] %vm407_vm0, %v6446_v18  ;;  %459 = vst.msk [vmem:[#allocation2 + $0xc1] sm:$0xff] %vm407_vm0, %v400_v19  ;;  %5613 = vmatpush3.bf16.msra.mxu0 %v5946_v3 }
  0x3b   : > { %v6454_v21 = vld [vmem:[#allocation2 + $0x20] sm:$0xff]  ;;  %v471_v22 = vld [vmem:[#allocation2 + $0x28] sm:$0x3]  ;;  %461 = vst.msk [vmem:[#allocation2 + $0xe1] sm:$0xff] %vm407_vm0, %v402_v51  ;;  %462 = vst.msk [vmem:[#allocation2 + $0xf1] sm:$0xff] %vm407_vm0, %v403_v61  ;;  %5614 = vmatprep.subr.bf16.mxu0 %v1286_v9 }
  0x3c   : > { %v468_v23 = vld [vmem:[#allocation2 + $0x10] sm:$0xff]  ;;  %786 = vrot.lane.b32.xlu1 %v6454_v21, %s6215_s25  ;;  %508 = vst.msk [vmem:[#allocation5 + $0x10] sm:$0xff] %vm407_vm0, %v6454_v21  ;;  %v561_v24 = vrot.slane %v6454_v21, 1  ;;  %v562_v25 = vrot.slane %v471_v22, 1  ;;  %v473_v27 = vld [vmem:[#allocation2 + $0x38] sm:$0x3] }
  0x3d   : > { %507 = vst.msk [vmem:[#allocation5 + $0x8] sm:$0xff] %vm407_vm0, %v468_v23  ;;  %v6463_v26 = vld [vmem:[#allocation2 + $0x30] sm:$0xff]  ;;  %v565_v29 = vrot.slane %v473_v27, 1  ;;  %v469_v30 = vld [vmem:[#allocation2 + $0x18] sm:$0x3]  ;;  %v558_v31 = vrot.slane %v468_v23, 1  ;;  %784 = vrot.lane.b32.xlu0 %v468_v23, %s6215_s25 }
  0x3e   : > { %v564_v28 = vrot.slane %v6463_v26, 1  ;;  %509 = vst.msk [vmem:[#allocation5 + $0x18] sm:$0xff] %vm407_vm0, %v6463_v26  ;;  %v6469_v32 = vsel %vm554_vm2, %v561_v24, %v562_v25  ;;  %v559_v33 = vrot.slane %v469_v30, 1  ;;  %v474_v34 = vld [vmem:[#allocation2 + $0x40] sm:$0xff]  ;;  %v6472_v35 = vld [vmem:[#allocation2 + $0x50] sm:$0xff]  ;;  %v672_v36 = vrot.slane %v468_v23, 2  ;;  %5615 = vmatpush3.bf16.msra.mxu0 %v1286_v9 }
  0x3f   : > { %510 = vst.msk [vmem:[#allocation5 + $0x20] sm:$0xff] %vm407_vm0, %v474_v34  ;;  %v673_v37 = vrot.slane %v469_v30, 2  ;;  %511 = vst.msk [vmem:[#allocation5 + $0x28] sm:$0xff] %vm407_vm0, %v6472_v35  ;;  %v6479_v38 = vld [vmem:[#allocation2 + $0x70] sm:$0xff]  ;;  %v6481_v39 = vld [vmem:[#allocation2 + $0x60] sm:$0xff]  ;;  %v675_v42 = vrot.slane %v6454_v21, 2 }
  0x40   : > { %607 = vrot.lane.b32.xlu1 %v6469_v32, %s6214_s24  ;;  %v566_v40 = vsel %vm554_vm2, %v564_v28, %v565_v29  ;;  %v560_v41 = vsel %vm554_vm2, %v558_v31, %v559_v33  ;;  %v676_v43 = vrot.slane %v471_v22, 2  ;;  %513 = vst.msk [vmem:[#allocation5 + $0x38] sm:$0xff] %vm407_vm0, %v6479_v38  ;;  %512 = vst.msk [vmem:[#allocation5 + $0x30] sm:$0xff] %vm407_vm0, %v6481_v39  ;;  %v6490_v44 = vld [vmem:[#allocation2 + $0xb0] sm:$0xff]  ;;  %v678_v48 = vrot.slane %v6463_v26, 2  ;;  %v482_v33 = vld [vmem:[#allocation2 + $0x80] sm:$0xff] }
  0x41   : > { %515 = vst.msk [vmem:[#allocation5 + $0x48] sm:$0xff] %vm407_vm0, %v6490_v44  ;;  %v6494_v45 = vld [vmem:[#allocation2 + $0xd0] sm:$0xff]  ;;  %605 = vrot.lane.b32.xlu0 %v560_v41, %s6214_s24  ;;  %v6500_v46 = vld [vmem:[#allocation2 + $0xc0] sm:$0xff]  ;;  %v674_v47 = vsel %vm668_vm3, %v672_v36, %v673_v37  ;;  %v679_v49 = vrot.slane %v473_v27, 2  ;;  %v475_v53 = vld [vmem:[#allocation2 + $0x48] sm:$0x3] }
  0x42   : > { %517 = vst.msk [vmem:[#allocation5 + $0x58] sm:$0xff] %vm407_vm0, %v6494_v45  ;;  %v677_v50 = vsel %vm668_vm3, %v675_v42, %v676_v43  ;;  %516 = vst.msk [vmem:[#allocation5 + $0x50] sm:$0xff] %vm407_vm0, %v6500_v46  ;;  %v6515_v54 = vld [vmem:[#allocation2 + $0xe0] sm:$0xff]  ;;  %v567_v55 = vrot.slane %v474_v34, 1  ;;  %v568_v56 = vrot.slane %v475_v53, 1  ;;  %v681_v58 = vrot.slane %v474_v34, 2 }
  0x43   : > { %v680_v52 = vsel %vm668_vm3, %v678_v48, %v679_v49  ;;  %518 = vst.msk [vmem:[#allocation5 + $0x60] sm:$0xff] %vm407_vm0, %v6515_v54  ;;  %v682_v59 = vrot.slane %v475_v53, 2  ;;  %v477_v62 = vld [vmem:[#allocation2 + $0x58] sm:$0x3]  ;;  %v6538_v63 = vld [vmem:[#allocation2 + $0xf0] sm:$0xff]  ;;  %v570_v1 = vrot.slane %v6472_v35, 1 }
  0x44   : > { %609 = vrot.lane.b32.xlu1 %v566_v40, %s6214_s24  ;;  %v569_v57 = vsel %vm554_vm2, %v567_v55, %v568_v56  ;;  %519 = vst.msk [vmem:[#allocation5 + $0x68] sm:$0xff] %vm407_vm0, %v6538_v63  ;;  %v571_v2 = vrot.slane %v477_v62, 1  ;;  %v479_v10 = vld [vmem:[#allocation2 + $0x68] sm:$0x3]  ;;  %v684_v11 = vrot.slane %v6472_v35, 2  ;;  %v685_v12 = vrot.slane %v477_v62, 2 }
  0x45   : > { %721 = vrot.lane.b32.xlu0 %v677_v50, %s6216_s26  ;;  %v683_v60 = vsel %vm668_vm3, %v681_v58, %v682_v59  ;;  %v481_v13 = vld [vmem:[#allocation2 + $0x78] sm:$0x3]  ;;  %v573_v17 = vrot.slane %v6481_v39, 1  ;;  %v574_v19 = vrot.slane %v479_v10, 1  ;;  %464 = vst.msk [vmem:[#allocation2 + $0x111] sm:$0xff] %vm407_vm0, %v405_v14  ;;  %463 = vst.msk [vmem:[#allocation2 + $0x101] sm:$0xff] %vm407_vm0, %v404_v15 }
  0x46   : > { %v572_v4 = vsel %vm554_vm2, %v570_v1, %v571_v2  ;;  %v686_v16 = vsel %vm668_vm3, %v684_v11, %v685_v12  ;;  %v576_v20 = vrot.slane %v6479_v38, 1  ;;  %v688_v27 = vrot.slane %v479_v10, 2  ;;  %v484_v43 = vld [vmem:[#allocation2 + $0x90] sm:$0xff]  ;;  %v491_v61 = vld [vmem:[#allocation2 + $0xc8] sm:$0x3] }
  0x47   : > { %v575_v22 = vsel %vm554_vm2, %v573_v17, %v574_v19  ;;  %v690_v28 = vrot.slane %v6479_v38, 2  ;;  %v691_v29 = vrot.slane %v481_v13, 2  ;;  %v851_v36 = vrot.slane %v482_v33, 1  ;;  %v493_v3 = vld [vmem:[#allocation2 + $0xd8] sm:$0x3] }
  0x48   : > { %719 = vrot.lane.b32.xlu1 %v674_v47, %s6216_s26  ;;  %v1062_v48 = vrot.slane %v484_v43, 1  ;;  %v1133_v53 = vrot.slane %v484_v43, 2  ;;  %v579_v56 = vrot.slane %v6446_v18, 1  ;;  %v582_v1 = vrot.slane %v6490_v44, 1 }
  0x49   : > { %788 = vrot.lane.b32.xlu0 %v6463_v26, %s6215_s25  ;;  %v692_v31 = vsel %vm668_vm3, %v690_v28, %v691_v29  ;;  %v586_v5 = vrot.slane %v491_v61, 1  ;;  %v588_v8 = vrot.slane %v6494_v45, 1  ;;  %v589_v9 = vrot.slane %v493_v3, 1 }
  0x4a   : > { %v693_v12 = vrot.slane %v6446_v18, 2  ;;  %v696_v17 = vrot.slane %v6490_v44, 2  ;;  %v703_v28 = vrot.slane %v493_v3, 2 }
  0x4c   : > { %723 = vrot.lane.b32.xlu1 %v680_v52, %s6216_s26  ;;  %v6578_v23 = vld [vmem:[#allocation2 + $0x110] sm:$0xff]  ;;  %v6580_v24 = vld [vmem:[#allocation2 + $0x100] sm:$0xff] }
  0x4d   : > { %857 = vrot.lane.b32.xlu0 %v560_v41, %s6217_s27  ;;  %521 = vst.msk [vmem:[#allocation5 + $0x78] sm:$0xff] %vm407_vm0, %v6578_v23  ;;  %520 = vst.msk [vmem:[#allocation5 + $0x70] sm:$0xff] %vm407_vm0, %v6580_v24 }
  0x50   : > { %790 = vrot.lane.b32.xlu1 %v474_v34, %s6215_s25 }
  0x51   : > { %861 = vrot.lane.b32.xlu0 %v566_v40, %s6217_s27 }
  0x54   : > { %859 = vrot.lane.b32.xlu1 %v6469_v32, %s6217_s27 }
  0x55   : > { %928 = vrot.lane.b32.xlu0 %v674_v47, %s6218_s28  ;;  %v485_v47 = vld [vmem:[#allocation2 + $0x98] sm:$0x3] }
  0x56   : > { %v1063_v49 = vrot.slane %v485_v47, 1  ;;  %v1134_v55 = vrot.slane %v485_v47, 2 }
  0x58   : > { %863 = vrot.lane.b32.xlu1 %v569_v57, %s6217_s27  ;;  %v1135_v62 = vsel %vm668_vm3, %v1133_v53, %v1134_v55 }
  0x59   : > { %932 = vrot.lane.b32.xlu0 %v680_v52, %s6218_s28 }
  0x5c   : > { %930 = vrot.lane.b32.xlu1 %v677_v50, %s6218_s28 }
  0x5d   : > { %995 = vrot.lane.b32.xlu0 %v6454_v21, %s6219_s29  ;;  %v577_v21 = vrot.slane %v481_v13, 1 }
  0x5f   : > { %v578_v25 = vsel %vm554_vm2, %v576_v20, %v577_v21  ;;  %v699_v20 = vrot.slane %v6500_v46, 2  ;;  %v700_v21 = vrot.slane %v491_v61, 2  ;;  %v497_v61 = vld [vmem:[#allocation2 + $0xf8] sm:$0x3] }
  0x60   : > { %934 = vrot.lane.b32.xlu1 %v683_v60, %s6218_s28 }
  0x61   : > { %999 = vrot.lane.b32.xlu0 %v474_v34, %s6219_s29  ;;  %v483_v34 = vld [vmem:[#allocation2 + $0x88] sm:$0x3]  ;;  %v6668_v29 = vsel %vm668_vm3, %v699_v20, %v700_v21  ;;  %v600_v20 = vrot.slane %v6578_v23, 1 }
  0x62   : > { %v852_v37 = vrot.slane %v483_v34, 1  ;;  %v923_v41 = vrot.slane %v483_v34, 2 }
  0x64   : > { %997 = vrot.lane.b32.xlu1 %v6463_v26, %s6219_s29  ;;  %v687_v26 = vrot.slane %v6481_v39, 2 }
  0x65   : > { %1068 = vrot.lane.b32.xlu0 %v6469_v32, %s6220_s13  ;;  %v406_v32 = vld [vmem:[%s6422_s23 + $0x78] sm:$0xff] }
  0x66   : > { %v689_v30 = vsel %vm668_vm3, %v687_v26, %v688_v27  ;;  %465 = vst.msk [vmem:[#allocation2 + $0x121] sm:$0xff] %vm407_vm0, %v406_v32  ;;  %v702_v27 = vrot.slane %v6494_v45, 2  ;;  %vm4968_vm0 = vcmask 1041409  }
  0x68   : > { %1001 = vrot.lane.b32.xlu1 %v6472_v35, %s6219_s29  ;;  %v6676_v32 = vsel %vm668_vm3, %v702_v27, %v703_v28  ;;  %v711_v28 = vrot.slane %v6580_v24, 2 }
  0x69   : > { %1072 = vrot.lane.b32.xlu0 %v569_v57, %s6220_s13 }
  0x6c   : > { %1070 = vrot.lane.b32.xlu1 %v566_v40, %s6220_s13  ;;  %v922_v40 = vrot.slane %v482_v33, 2 }
  0x6d   : > { %1139 = vrot.lane.b32.xlu0 %v677_v50, %s6222_s20 }
  0x6e   : > { %v924_v42 = vsel %vm668_vm3, %v922_v40, %v923_v41  ;;  %v495_v41 = vld [vmem:[#allocation2 + $0xe8] sm:$0x3] }
  0x70   : > { %1074 = vrot.lane.b32.xlu1 %v572_v4, %s6220_s13 }
  0x71   : > { %1143 = vrot.lane.b32.xlu0 %v683_v60, %s6222_s20 }
  0x74   : > { %1141 = vrot.lane.b32.xlu1 %v680_v52, %s6222_s20 }
  0x75   : > { %611 = vrot.lane.b32.xlu0 %v569_v57, %s6214_s24 }
  0x78   : > { %1145 = vrot.lane.b32.xlu1 %v686_v16, %s6222_s20 }
  0x79   : > { %615 = vrot.lane.b32.xlu0 %v575_v22, %s6214_s24 }
  0x7c   : > { %613 = vrot.lane.b32.xlu1 %v572_v4, %s6214_s24 }
  0x7d   : > { %725 = vrot.lane.b32.xlu0 %v683_v60, %s6216_s26  ;;  %v489_v60 = vld [vmem:[#allocation2 + $0xb8] sm:$0x3] }
  0x7e   : > { %v583_v2 = vrot.slane %v489_v60, 1  ;;  %v697_v18 = vrot.slane %v489_v60, 2 }
  0x80   : > { %617 = vrot.lane.b32.xlu1 %v578_v25, %s6214_s24  ;;  %v584_v10 = vsel %vm554_vm2, %v582_v1, %v583_v2  ;;  %v698_v26 = vsel %vm668_vm3, %v696_v17, %v697_v18 }
  0x81   : > { %729 = vrot.lane.b32.xlu0 %v689_v30, %s6216_s26 }
  0x84   : > { %727 = vrot.lane.b32.xlu1 %v686_v16, %s6216_s26 }
  0x85   : > { %792 = vrot.lane.b32.xlu0 %v6472_v35, %s6215_s25  ;;  %v853_v35 = vsel %vm554_vm2, %v851_v36, %v852_v37 }
  0x88   : > { %731 = vrot.lane.b32.xlu1 %v692_v31, %s6216_s26 }
  0x89   : > { %796 = vrot.lane.b32.xlu0 %v6479_v38, %s6215_s25 }
  0x8c   : > { %794 = vrot.lane.b32.xlu1 %v6481_v39, %s6215_s25  ;;  %v604_v50 = vpop.permute.xlu0 %603 }
  0x8d   : > { %865 = vrot.lane.b32.xlu0 %v572_v4, %s6217_s27  ;;  %652 = vst.msk [vmem:[#allocation5] sm:$0xff] %vm651_vm4, %v604_v50  ;;  %v585_v4 = vrot.slane %v6500_v46, 1 }
  0x8f   : > { %v6645_v11 = vsel %vm554_vm2, %v585_v4, %v586_v5 }
  0x90   : > { %798 = vrot.lane.b32.xlu1 %v482_v33, %s6215_s25  ;;  %v718_v52 = vpop.permute.xlu0 %717 }
  0x91   : > { %869 = vrot.lane.b32.xlu0 %v578_v25, %s6217_s27  ;;  %766 = vst.msk [vmem:[#allocation5] sm:$0xff] %vm765_vm5, %v718_v52 }
  0x94   : > { %867 = vrot.lane.b32.xlu1 %v575_v22, %s6217_s27 }
  0x95   : > { %936 = vrot.lane.b32.xlu0 %v686_v16, %s6218_s28  ;;  %v6653_v16 = vsel %vm554_vm2, %v588_v8, %v589_v9  ;;  %v709_v8 = vrot.slane %v497_v61, 2 }
  0x98   : > { %871 = vrot.lane.b32.xlu1 %v853_v35, %s6217_s27 }
  0x99   : > { %940 = vrot.lane.b32.xlu0 %v692_v31, %s6218_s28 }
  0x9c   : > { %938 = vrot.lane.b32.xlu1 %v689_v30, %s6218_s28 }
  0x9d   : > { %1003 = vrot.lane.b32.xlu0 %v6481_v39, %s6219_s29  ;;  %v487_v39 = vld [vmem:[#allocation2 + $0xa8] sm:$0x3] }
  0x9e   : > { %v580_v57 = vrot.slane %v487_v39, 1  ;;  %v694_v13 = vrot.slane %v487_v39, 2  ;;  %v706_v39 = vrot.slane %v495_v41, 2 }
  0xa0   : > { %942 = vrot.lane.b32.xlu1 %v924_v42, %s6218_s28  ;;  %v581_v0 = vsel %vm554_vm2, %v579_v56, %v580_v57  ;;  %v695_v19 = vsel %vm668_vm3, %v693_v12, %v694_v13  ;;  %v499_v12 = vld [vmem:[#allocation2 + $0x108] sm:$0x3] }
  0xa1   : > { %1007 = vrot.lane.b32.xlu0 %v482_v33, %s6219_s29 }
  0xa4   : > { %1005 = vrot.lane.b32.xlu1 %v6479_v38, %s6219_s29  ;;  %v1064_v38 = vsel %vm554_vm2, %v1062_v48, %v1063_v49 }
  0xa5   : > { %1076 = vrot.lane.b32.xlu0 %v575_v22, %s6220_s13 }
  0xa8   : > { %1009 = vrot.lane.b32.xlu1 %v484_v43, %s6219_s29 }
  0xa9   : > { %1080 = vrot.lane.b32.xlu0 %v853_v35, %s6220_s13 }
  0xac   : > { %1078 = vrot.lane.b32.xlu1 %v578_v25, %s6220_s13 }
  0xad   : > { %1147 = vrot.lane.b32.xlu0 %v689_v30, %s6222_s20 }
  0xae   : > { %v787_v51 = vpop.permute.xlu1 %786 }
  0xaf   : > { %v785_v59 = vpop.permute.xlu0 %784 }
  0xb0   : > { %1082 = vrot.lane.b32.xlu1 %v1064_v38, %s6220_s13  ;;  %833 = vst.msk [vmem:[#allocation5] sm:$0xff] %vm832_vm6, %v785_v59  ;;  %v705_v38 = vrot.slane %v6515_v54, 2 }
  0xb1   : > { %1151 = vrot.lane.b32.xlu0 %v924_v42, %s6222_s20  ;;  %v592_v42 = vrot.slane %v495_v41, 1 }
  0xb2   : > { %v608_v58 = vpop.permute.xlu1 %607  ;;  %v6718_v53 = vsel %vm668_vm3, %v705_v38, %v706_v39 }
  0xb3   : > { %654 = vst.msk [vmem:[#allocation5 + $0x10] sm:$0xff] %vm651_vm4, %v608_v58  ;;  %v606_v7 = vpop.permute.xlu0 %605 }
  0xb4   : > { %1149 = vrot.lane.b32.xlu1 %v692_v31, %s6222_s20  ;;  %653 = vst.msk [vmem:[#allocation5 + $0x8] sm:$0xff] %vm651_vm4, %v606_v7  ;;  %v708_v7 = vrot.slane %v6538_v63, 2 }
  0xb5   : > { %619 = vrot.lane.b32.xlu0 %v581_v0, %s6214_s24 }
  0xb6   : > { %v610_v6 = vpop.permute.xlu1 %609 }
  0xb7   : > { %655 = vst.msk [vmem:[#allocation5 + $0x18] sm:$0xff] %vm651_vm4, %v610_v6  ;;  %v722_v15 = vpop.permute.xlu0 %721 }
  0xb8   : > { %1153 = vrot.lane.b32.xlu1 %v1135_v62, %s6222_s20  ;;  %768 = vst.msk [vmem:[#allocation5 + $0x10] sm:$0xff] %vm765_vm5, %v722_v15  ;;  %v595_v62 = vrot.slane %v497_v61, 1  ;;  %v597_v15 = vrot.slane %v6580_v24, 1 }
  0xb9   : > { %623 = vrot.lane.b32.xlu0 %v6645_v11, %s6214_s24 }
  0xba   : > { %v720_v14 = vpop.permute.xlu1 %719 }
  0xbb   : > { %767 = vst.msk [vmem:[#allocation5 + $0x8] sm:$0xff] %vm765_vm5, %v720_v14  ;;  %v789_v25 = vpop.permute.xlu0 %788  ;;  %v6764_v14 = vsel %vm668_vm3, %v708_v7, %v709_v8 }
  0xbc   : > { %834 = vst.msk [vmem:[#allocation5 + $0x8] sm:$0xff] %vm832_vm6, %v787_v51  ;;  %621 = vrot.lane.b32.xlu1 %v584_v10, %s6214_s24  ;;  %835 = vst.msk [vmem:[#allocation5 + $0x10] sm:$0xff] %vm832_vm6, %v789_v25 }
  0xbd   : > { %733 = vrot.lane.b32.xlu0 %v695_v19, %s6216_s26  ;;  %v501_v19 = vld [vmem:[#allocation2 + $0x118] sm:$0x3] }
  0xbe   : > { %v724_v22 = vpop.permute.xlu1 %723  ;;  %v601_v21 = vrot.slane %v501_v19, 1 }
  0xbf   : > { %769 = vst.msk [vmem:[#allocation5 + $0x18] sm:$0xff] %vm765_vm5, %v724_v22  ;;  %v858_v31 = vpop.permute.xlu0 %857 }
  0xc0   : > { %625 = vrot.lane.b32.xlu1 %v6653_v16, %s6214_s24  ;;  %906 = vst.msk [vmem:[#allocation5] sm:$0xff] %vm905_vm7, %v858_v31  ;;  %v6784_v27 = vsel %vm554_vm2, %v600_v20, %v601_v21 }
  0xc1   : > { %737 = vrot.lane.b32.xlu0 %v6668_v29, %s6216_s26 }
  0xc2   : > { %v791_v30 = vpop.permute.xlu1 %790 }
  0xc3   : > { %836 = vst.msk [vmem:[#allocation5 + $0x18] sm:$0xff] %vm832_vm6, %v791_v30  ;;  %v862_v34 = vpop.permute.xlu0 %861 }
  0xc4   : > { %735 = vrot.lane.b32.xlu1 %v698_v26, %s6216_s26  ;;  %908 = vst.msk [vmem:[#allocation5 + $0x10] sm:$0xff] %vm905_vm7, %v862_v34 }
  0xc5   : > { %800 = vrot.lane.b32.xlu0 %v6490_v44, %s6215_s25  ;;  %v591_v44 = vrot.slane %v6515_v54, 1 }
  0xc6   : > { %v860_v33 = vpop.permute.xlu1 %859 }
  0xc7   : > { %907 = vst.msk [vmem:[#allocation5 + $0x8] sm:$0xff] %vm905_vm7, %v860_v33  ;;  %v929_v37 = vpop.permute.xlu0 %928  ;;  %v6703_v48 = vsel %vm554_vm2, %v591_v44, %v592_v42  ;;  %v715_v33 = vrot.slane %v501_v19, 2 }
  0xc8   : > { %739 = vrot.lane.b32.xlu1 %v6676_v32, %s6216_s26  ;;  %977 = vst.msk [vmem:[#allocation5] sm:$0xff] %vm976_vm8, %v929_v37 }
  0xc9   : > { %804 = vrot.lane.b32.xlu0 %v6494_v45, %s6215_s25 }
  0xca   : > { %v864_v36 = vpop.permute.xlu1 %863 }
  0xcb   : > { %909 = vst.msk [vmem:[#allocation5 + $0x18] sm:$0xff] %vm905_vm7, %v864_v36  ;;  %v933_v40 = vpop.permute.xlu0 %932 }
  0xcc   : > { %802 = vrot.lane.b32.xlu1 %v6500_v46, %s6215_s25  ;;  %979 = vst.msk [vmem:[#allocation5 + $0x10] sm:$0xff] %vm976_vm8, %v933_v40 }
  0xcd   : > { %873 = vrot.lane.b32.xlu0 %v584_v10, %s6217_s27 }
  0xce   : > { %v931_v35 = vpop.permute.xlu1 %930 }
  0xcf   : > { %978 = vst.msk [vmem:[#allocation5 + $0x8] sm:$0xff] %vm976_vm8, %v931_v35  ;;  %v996_v47 = vpop.permute.xlu0 %995 }
  0xd0   : > { %806 = vrot.lane.b32.xlu1 %v6515_v54, %s6215_s25  ;;  %1044 = vst.msk [vmem:[#allocation5] sm:$0xff] %vm1043_vm9, %v996_v47 }
  0xd1   : > { %877 = vrot.lane.b32.xlu0 %v6653_v16, %s6217_s27 }
  0xd2   : > { %v935_v43 = vpop.permute.xlu1 %934 }
  0xd3   : > { %980 = vst.msk [vmem:[#allocation5 + $0x18] sm:$0xff] %vm976_vm8, %v935_v43  ;;  %v1000_v50 = vpop.permute.xlu0 %999  ;;  %v502_v43 = vld [vmem:[#allocation2 + $0x120] sm:$0xff] }
  0xd4   : > { %875 = vrot.lane.b32.xlu1 %v6645_v11, %s6217_s27  ;;  %1046 = vst.msk [vmem:[#allocation5 + $0x10] sm:$0xff] %vm1043_vm9, %v1000_v50 }
  0xd5   : > { %944 = vrot.lane.b32.xlu0 %v698_v26, %s6218_s28 }
  0xd6   : > { %v998_v49 = vpop.permute.xlu1 %997 }
  0xd7   : > { %1045 = vst.msk [vmem:[#allocation5 + $0x8] sm:$0xff] %vm1043_vm9, %v998_v49  ;;  %v1069_v52 = vpop.permute.xlu0 %1068  ;;  %v503_v49 = vld [vmem:[#allocation2 + $0x128] sm:$0x3] }
  0xd8   : > { %879 = vrot.lane.b32.xlu1 %v6703_v48, %s6217_s27  ;;  %1117 = vst.msk [vmem:[#allocation5] sm:$0xff] %vm1116_vm10, %v1069_v52  ;;  %v855_v50 = vrot.slane %v503_v49, 1 }
  0xd9   : > { %948 = vrot.lane.b32.xlu0 %v6676_v32, %s6218_s28 }
  0xda   : > { %v1002_v51 = vpop.permute.xlu1 %1001 }
  0xdb   : > { %1047 = vst.msk [vmem:[#allocation5 + $0x18] sm:$0xff] %vm1043_vm9, %v1002_v51  ;;  %v1073_v56 = vpop.permute.xlu0 %1072 }
  0xdc   : > { %946 = vrot.lane.b32.xlu1 %v6668_v29, %s6218_s28  ;;  %1119 = vst.msk [vmem:[#allocation5 + $0x10] sm:$0xff] %vm1116_vm10, %v1073_v56  ;;  %v926_v56 = vrot.slane %v503_v49, 2 }
  0xdd   : > { %1011 = vrot.lane.b32.xlu0 %v6500_v46, %s6219_s29  ;;  %v594_v46 = vrot.slane %v6538_v63, 1 }
  0xde   : > { %v1071_v55 = vpop.permute.xlu1 %1070 }
  0xdf   : > { %1118 = vst.msk [vmem:[#allocation5 + $0x8] sm:$0xff] %vm1116_vm10, %v1071_v55  ;;  %v1140_v58 = vpop.permute.xlu0 %1139  ;;  %v6746_v1 = vsel %vm554_vm2, %v594_v46, %v595_v62  ;;  %v925_v55 = vrot.slane %v502_v43, 2 }
  0xe0   : > { %950 = vrot.lane.b32.xlu1 %v6718_v53, %s6218_s28  ;;  %1188 = vst.msk [vmem:[#allocation5] sm:$0xff] %vm1187_vm11, %v1140_v58 }
  0xe1   : > { %1015 = vrot.lane.b32.xlu0 %v6515_v54, %s6219_s29 }
  0xe2   : > { %v1075_v57 = vpop.permute.xlu1 %1074 }
  0xe3   : > { %1120 = vst.msk [vmem:[#allocation5 + $0x18] sm:$0xff] %vm1116_vm10, %v1075_v57  ;;  %v1144_v60 = vpop.permute.xlu0 %1143 }
  0xe4   : > { %1013 = vrot.lane.b32.xlu1 %v6494_v45, %s6219_s29  ;;  %1190 = vst.msk [vmem:[#allocation5 + $0x10] sm:$0xff] %vm1187_vm11, %v1144_v60 }
  0xe5   : > { %1084 = vrot.lane.b32.xlu0 %v6645_v11, %s6220_s13 }
  0xe6   : > { %v1142_v59 = vpop.permute.xlu1 %1141 }
  0xe7   : > { %1189 = vst.msk [vmem:[#allocation5 + $0x8] sm:$0xff] %vm1187_vm11, %v1142_v59  ;;  %v612_v0 = vpop.permute.xlu0 %611  ;;  %v1204_v54 = vld [vmem:[#allocation5] sm:$0xff]  ;;  %v927_v59 = vsel %vm668_vm3, %v925_v55, %v926_v56 }
  0xe8   : > { %1017 = vrot.lane.b32.xlu1 %v6538_v63, %s6219_s29  ;;  %656 = vst.msk [vmem:[#allocation5 + $0x20] sm:$0xff] %vm651_vm4, %v612_v0 }
  0xe9   : > { %1088 = vrot.lane.b32.xlu0 %v6703_v48, %s6220_s13 }
  0xea   : > { %v1146_v45 = vpop.permute.xlu1 %1145 }
  0xeb   : > { %1191 = vst.msk [vmem:[#allocation5 + $0x18] sm:$0xff] %vm1187_vm11, %v1146_v45  ;;  %v616_v4 = vpop.permute.xlu0 %615  ;;  %v1206_v6 = vld [vmem:[#allocation5 + $0x10] sm:$0xff] }
  0xec   : > { %1086 = vrot.lane.b32.xlu1 %v6653_v16, %s6220_s13  ;;  %658 = vst.msk [vmem:[#allocation5 + $0x30] sm:$0xff] %vm651_vm4, %v616_v4  ;;  %v598_v16 = vrot.slane %v499_v12, 1  ;;  %v504_v45 = vld [vmem:[#allocation2 + $0x130] sm:$0xff] }
  0xed   : > { %1155 = vrot.lane.b32.xlu0 %v6668_v29, %s6222_s20  ;;  %v712_v29 = vrot.slane %v499_v12, 2 }
  0xee   : > { %v614_v2 = vpop.permute.xlu1 %613  ;;  %v1205_v3 = vld [vmem:[#allocation5 + $0x8] sm:$0xff]  ;;  %v6775_v22 = vsel %vm554_vm2, %v597_v15, %v598_v16 }
  0xef   : > { %657 = vst.msk [vmem:[#allocation5 + $0x28] sm:$0xff] %vm651_vm4, %v614_v2  ;;  %v1220_v5 = vpack.c.bf16 %v1205_v3, %v1204_v54  ;;  %v726_v11 = vpop.permute.xlu0 %725  ;;  %v6795_v34 = vsel %vm668_vm3, %v711_v28, %v712_v29 }
  0xf0   : > { %1090 = vrot.lane.b32.xlu1 %v6746_v1, %s6220_s13  ;;  %770 = vst.msk [vmem:[#allocation5 + $0x20] sm:$0xff] %vm765_vm5, %v726_v11  ;;  %v1136_v11 = vrot.slane %v504_v45, 2 }
  0xf1   : > { %5616 = vmatprep.mubr.msk.bf16.mxu0 %vm1258_vm12, %v1220_v5  ;;  %1159 = vrot.lane.b32.xlu0 %v6718_v53, %s6222_s20 }
  0xf2   : > { %v618_v9 = vpop.permute.xlu1 %617  ;;  %v1207_v10 = vld [vmem:[#allocation5 + $0x18] sm:$0xff] }
  0xf3   : > { %659 = vst.msk [vmem:[#allocation5 + $0x38] sm:$0xff] %vm651_vm4, %v618_v9  ;;  %v1221_v13 = vpack.c.bf16 %v1207_v10, %v1206_v6  ;;  %v730_v18 = vpop.permute.xlu0 %729 }
  0xf4   : > { %1157 = vrot.lane.b32.xlu1 %v6676_v32, %s6222_s20  ;;  %772 = vst.msk [vmem:[#allocation5 + $0x30] sm:$0xff] %vm765_vm5, %v730_v18  ;;  %v714_v32 = vrot.slane %v6578_v23, 2 }
  0xf5   : > { %5617 = vmatmul.mubr.msk.bf16.vlgmr.msra.gmra.mrb[0].mxu0 %vm1258_vm12, %v1221_v13  ;;  %627 = vrot.lane.b32.xlu0 %v6703_v48, %s6214_s24 }
  0xf6   : > { %v728_v17 = vpop.permute.xlu1 %727  ;;  %v6804_v35 = vsel %vm668_vm3, %v714_v32, %v715_v33  ;;  %v6200_v32 = vld [vmem:[#allocation4] sm:$0xff] }
  0xf7   : > { %771 = vst.msk [vmem:[#allocation5 + $0x28] sm:$0xff] %vm765_vm5, %v728_v17  ;;  %v793_v26 = vpop.permute.xlu0 %792 }
  0xf8   : > { %1161 = vrot.lane.b32.xlu1 %v6764_v14, %s6222_s20  ;;  %837 = vst.msk [vmem:[#allocation5 + $0x20] sm:$0xff] %vm832_vm6, %v793_v26 }
  0xf9   : > { %631 = vrot.lane.b32.xlu0 %v6775_v22, %s6214_s24  ;;  %1409 = vst.msk [vmem:[#allocation3 + $0x30] sm:$0xff] %vm1401_vm13, %v6200_v32  ;;  %1402 = vst.msk [vmem:[#allocation3] sm:$0xff] %vm1401_vm13, %v6200_v32 }
  0xfa   : > { %v732_v25 = vpop.permute.xlu1 %731  ;;  %1410 = vst.msk [vmem:[#allocation3 + $0x38] sm:$0x3] %vm1403_vm14, %v6200_v32  ;;  %1404 = vst.msk [vmem:[#allocation3 + $0x8] sm:$0x3] %vm1403_vm14, %v6200_v32 }
  0xfb   : > { %773 = vst.msk [vmem:[#allocation5 + $0x38] sm:$0xff] %vm765_vm5, %v732_v25  ;;  %v797_v31 = vpop.permute.xlu0 %796 }
  0xfc   : > { %629 = vrot.lane.b32.xlu1 %v6746_v1, %s6214_s24  ;;  %839 = vst.msk [vmem:[#allocation5 + $0x30] sm:$0xff] %vm832_vm6, %v797_v31 }
  0xfd   : > { %741 = vrot.lane.b32.xlu0 %v6718_v53, %s6216_s26  ;;  %1405 = vst.msk [vmem:[#allocation3 + $0x10] sm:$0xff] %vm1401_vm13, %v6200_v32  ;;  %1407 = vst.msk [vmem:[#allocation3 + $0x20] sm:$0xff] %vm1401_vm13, %v6200_v32 }
  0xfe   : > { %v795_v30 = vpop.permute.xlu1 %794  ;;  %1406 = vst.msk [vmem:[#allocation3 + $0x18] sm:$0x3] %vm1403_vm14, %v6200_v32  ;;  %1408 = vst.msk [vmem:[#allocation3 + $0x28] sm:$0x3] %vm1403_vm14, %v6200_v32 }
  0xff   : > { %838 = vst.msk [vmem:[#allocation5 + $0x28] sm:$0xff] %vm832_vm6, %v795_v30  ;;  %v866_v37 = vpop.permute.xlu0 %865 }
 0x100   : > { %633 = vrot.lane.b32.xlu1 %v6784_v27, %s6214_s24  ;;  %910 = vst.msk [vmem:[#allocation5 + $0x20] sm:$0xff] %vm905_vm7, %v866_v37 }
 0x101   : > { %745 = vrot.lane.b32.xlu0 %v6795_v34, %s6216_s26  ;;  %1411 = vst.msk [vmem:[#allocation3 + $0x40] sm:$0xff] %vm1401_vm13, %v6200_v32  ;;  %1413 = vst.msk [vmem:[#allocation3 + $0x50] sm:$0xff] %vm1401_vm13, %v6200_v32 }
 0x102   : > { %v799_v36 = vpop.permute.xlu1 %798  ;;  %1412 = vst.msk [vmem:[#allocation3 + $0x48] sm:$0x3] %vm1403_vm14, %v6200_v32  ;;  %1414 = vst.msk [vmem:[#allocation3 + $0x58] sm:$0x3] %vm1403_vm14, %v6200_v32 }
 0x103   : > { %840 = vst.msk [vmem:[#allocation5 + $0x38] sm:$0xff] %vm832_vm6, %v799_v36  ;;  %v870_v41 = vpop.permute.xlu0 %869 }
 0x104   : > { %743 = vrot.lane.b32.xlu1 %v6764_v14, %s6216_s26  ;;  %912 = vst.msk [vmem:[#allocation5 + $0x30] sm:$0xff] %vm905_vm7, %v870_v41  ;;  %v6933_v41 = vld [vmem:[#allocation3] sm:$0xff] }
 0x105   : > { %808 = vrot.lane.b32.xlu0 %v6538_v63, %s6215_s25  ;;  %v854_v63 = vrot.slane %v502_v43, 1  ;;  %1415 = vst.msk [vmem:[#allocation3 + $0x60] sm:$0xff] %vm1401_vm13, %v6200_v32  ;;  %1417 = vst.msk [vmem:[#allocation3 + $0x70] sm:$0xff] %vm1401_vm13, %v6200_v32 }
 0x106   : > { %v868_v40 = vpop.permute.xlu1 %867  ;;  %1416 = vst.msk [vmem:[#allocation3 + $0x68] sm:$0x3] %vm1403_vm14, %v6200_v32  ;;  %1418 = vst.msk [vmem:[#allocation3 + $0x78] sm:$0x3] %vm1403_vm14, %v6200_v32 }
 0x107   : > { %911 = vst.msk [vmem:[#allocation5 + $0x28] sm:$0xff] %vm905_vm7, %v868_v40  ;;  %v937_v42 = vpop.permute.xlu0 %936  ;;  %v856_v51 = vsel %vm554_vm2, %v854_v63, %v855_v50 }
 0x108   : > { %747 = vrot.lane.b32.xlu1 %v6804_v35, %s6216_s26  ;;  %981 = vst.msk [vmem:[#allocation5 + $0x20] sm:$0xff] %vm976_vm8, %v937_v42 }
 0x109   : > { %812 = vrot.lane.b32.xlu0 %v6578_v23, %s6215_s25  ;;  %1419 = vst.msk [vmem:[#allocation3 + $0x80] sm:$0xff] %vm1401_vm13, %v6200_v32  ;;  %1421 = vst.msk [vmem:[#allocation3 + $0x90] sm:$0xff] %vm1401_vm13, %v6200_v32 }
 0x10a   : > { %v872_v44 = vpop.permute.xlu1 %871  ;;  %1420 = vst.msk [vmem:[#allocation3 + $0x88] sm:$0x3] %vm1403_vm14, %v6200_v32  ;;  %1422 = vst.msk [vmem:[#allocation3 + $0x98] sm:$0x3] %vm1403_vm14, %v6200_v32 }
 0x10b   : > { %913 = vst.msk [vmem:[#allocation5 + $0x38] sm:$0xff] %vm905_vm7, %v872_v44  ;;  %v941_v48 = vpop.permute.xlu0 %940 }
 0x10c   : > { %810 = vrot.lane.b32.xlu1 %v6580_v24, %s6215_s25  ;;  %983 = vst.msk [vmem:[#allocation5 + $0x30] sm:$0xff] %vm976_vm8, %v941_v48 }
 0x10d   : > { %881 = vrot.lane.b32.xlu0 %v6746_v1, %s6217_s27  ;;  %v505_v1 = vld [vmem:[#allocation2 + $0x138] sm:$0x3]  ;;  %1423 = vst.msk [vmem:[#allocation3 + $0xa0] sm:$0xff] %vm1401_vm13, %v6200_v32  ;;  %1425 = vst.msk [vmem:[#allocation3 + $0xb0] sm:$0xff] %vm1401_vm13, %v6200_v32 }
 0x10e   : > { %v939_v47 = vpop.permute.xlu1 %938  ;;  %v1066_v2 = vrot.slane %v505_v1, 1  ;;  %v1137_v12 = vrot.slane %v505_v1, 2  ;;  %1424 = vst.msk [vmem:[#allocation3 + $0xa8] sm:$0x3] %vm1403_vm14, %v6200_v32  ;;  %1426 = vst.msk [vmem:[#allocation3 + $0xb8] sm:$0x3] %vm1403_vm14, %v6200_v32 }
 0x10f   : > { %982 = vst.msk [vmem:[#allocation5 + $0x28] sm:$0xff] %vm976_vm8, %v939_v47  ;;  %v1004_v39 = vpop.permute.xlu0 %1003 }
 0x110   : > { %814 = vrot.lane.b32.xlu1 %v502_v43, %s6215_s25  ;;  %1048 = vst.msk [vmem:[#allocation5 + $0x20] sm:$0xff] %vm1043_vm9, %v1004_v39  ;;  %v1138_v17 = vsel %vm668_vm3, %v1136_v11, %v1137_v12 }
 0x111   : > { %885 = vrot.lane.b32.xlu0 %v6784_v27, %s6217_s27  ;;  %1427 = vst.msk [vmem:[#allocation3 + $0xc0] sm:$0xff] %vm1401_vm13, %v6200_v32  ;;  %1429 = vst.msk [vmem:[#allocation3 + $0xd0] sm:$0xff] %vm1401_vm13, %v6200_v32 }
 0x112   : > { %v943_v38 = vpop.permute.xlu1 %942  ;;  %1428 = vst.msk [vmem:[#allocation3 + $0xc8] sm:$0x3] %vm1403_vm14, %v6200_v32  ;;  %1430 = vst.msk [vmem:[#allocation3 + $0xd8] sm:$0x3] %vm1403_vm14, %v6200_v32 }
 0x113   : > { %984 = vst.msk [vmem:[#allocation5 + $0x38] sm:$0xff] %vm976_vm8, %v943_v38  ;;  %v1008_v53 = vpop.permute.xlu0 %1007 }
 0x114   : > { %883 = vrot.lane.b32.xlu1 %v6775_v22, %s6217_s27  ;;  %1050 = vst.msk [vmem:[#allocation5 + $0x30] sm:$0xff] %vm1043_vm9, %v1008_v53 }
 0x115   : > { %952 = vrot.lane.b32.xlu0 %v6764_v14, %s6218_s28  ;;  %1431 = vst.msk [vmem:[#allocation3 + $0xe0] sm:$0xff] %vm1401_vm13, %v6200_v32  ;;  %1433 = vst.msk [vmem:[#allocation3 + $0xf0] sm:$0xff] %vm1401_vm13, %v6200_v32 }
 0x116   : > { %v1006_v52 = vpop.permute.xlu1 %1005  ;;  %1432 = vst.msk [vmem:[#allocation3 + $0xe8] sm:$0x3] %vm1403_vm14, %v6200_v32  ;;  %1434 = vst.msk [vmem:[#allocation3 + $0xf8] sm:$0x3] %vm1403_vm14, %v6200_v32 }
 0x117   : > { %1049 = vst.msk [vmem:[#allocation5 + $0x28] sm:$0xff] %vm1043_vm9, %v1006_v52  ;;  %v1077_v58 = vpop.permute.xlu0 %1076 }
 0x118   : > { %887 = vrot.lane.b32.xlu1 %v856_v51, %s6217_s27  ;;  %1121 = vst.msk [vmem:[#allocation5 + $0x20] sm:$0xff] %vm1116_vm10, %v1077_v58 }
 0x119   : > { %956 = vrot.lane.b32.xlu0 %v6804_v35, %s6218_s28  ;;  %1435 = vst.msk [vmem:[#allocation3 + $0x100] sm:$0xff] %vm1401_vm13, %v6200_v32  ;;  %1437 = vst.msk [vmem:[#allocation3 + $0x110] sm:$0xff] %vm1401_vm13, %v6200_v32 }
 0x11a   : > { %v1010_v57 = vpop.permute.xlu1 %1009  ;;  %1436 = vst.msk [vmem:[#allocation3 + $0x108] sm:$0x3] %vm1403_vm14, %v6200_v32  ;;  %1438 = vst.msk [vmem:[#allocation3 + $0x118] sm:$0x3] %vm1403_vm14, %v6200_v32 }
 0x11b   : > { %1051 = vst.msk [vmem:[#allocation5 + $0x38] sm:$0xff] %vm1043_vm9, %v1010_v57  ;;  %v1081_v61 = vpop.permute.xlu0 %1080 }
 0x11c   : > { %954 = vrot.lane.b32.xlu1 %v6795_v34, %s6218_s28  ;;  %1123 = vst.msk [vmem:[#allocation5 + $0x30] sm:$0xff] %vm1116_vm10, %v1081_v61 }
 0x11d   : > { %1019 = vrot.lane.b32.xlu0 %v6580_v24, %s6219_s29  ;;  %v1065_v24 = vrot.slane %v504_v45, 1  ;;  %1439 = vst.msk [vmem:[#allocation3 + $0x120] sm:$0xff] %vm1401_vm13, %v6200_v32  ;;  %1441 = vst.msk [vmem:[#allocation3 + $0x130] sm:$0xff] %vm1401_vm13, %v6200_v32 }
 0x11e   : > { %v1079_v60 = vpop.permute.xlu1 %1078  ;;  %1440 = vst.msk [vmem:[#allocation3 + $0x128] sm:$0x3] %vm1403_vm14, %v6200_v32  ;;  %1442 = vst.msk [vmem:[#allocation3 + $0x138] sm:$0x3] %vm1403_vm14, %v6200_v32 }
 0x11f   : > { %1122 = vst.msk [vmem:[#allocation5 + $0x28] sm:$0xff] %vm1116_vm10, %v1079_v60  ;;  %v1148_v62 = vpop.permute.xlu0 %1147  ;;  %v1067_v5 = vsel %vm554_vm2, %v1065_v24, %v1066_v2 }
 0x120   : > { %958 = vrot.lane.b32.xlu1 %v927_v59, %s6218_s28  ;;  %1192 = vst.msk [vmem:[#allocation5 + $0x20] sm:$0xff] %vm1187_vm11, %v1148_v62 }
 0x121   : > { %1023 = vrot.lane.b32.xlu0 %v502_v43, %s6219_s29  ;;  %1500 = vst.msk [vmem:[#allocation6] sm:$0xff] %vm1401_vm13, %v6933_v41 }
 0x122   : > { %v1083_v46 = vpop.permute.xlu1 %1082 }
 0x123   : > { %1124 = vst.msk [vmem:[#allocation5 + $0x38] sm:$0xff] %vm1116_vm10, %v1083_v46  ;;  %v1152_v54 = vpop.permute.xlu0 %1151 }
 0x124   : > { %1021 = vrot.lane.b32.xlu1 %v6578_v23, %s6219_s29  ;;  %1194 = vst.msk [vmem:[#allocation5 + $0x30] sm:$0xff] %vm1187_vm11, %v1152_v54 }
 0x125   : > { %1092 = vrot.lane.b32.xlu0 %v6775_v22, %s6220_s13 }
 0x126   : > { %v1150_v0 = vpop.permute.xlu1 %1149 }
 0x127   : > { %1193 = vst.msk [vmem:[#allocation5 + $0x28] sm:$0xff] %vm1187_vm11, %v1150_v0  ;;  %v620_v4 = vpop.permute.xlu0 %619  ;;  %v1208_v23 = vld [vmem:[#allocation5 + $0x20] sm:$0xff] }
 0x128   : > { %1025 = vrot.lane.b32.xlu1 %v504_v45, %s6219_s29  ;;  %660 = vst.msk [vmem:[#allocation5 + $0x40] sm:$0xff] %vm651_vm4, %v620_v4 }
 0x129   : > { %1096 = vrot.lane.b32.xlu0 %v856_v51, %s6220_s13 }
 0x12a   : > { %v1154_v3 = vpop.permute.xlu1 %1153 }
 0x12b   : > { %1195 = vst.msk [vmem:[#allocation5 + $0x38] sm:$0xff] %vm1187_vm11, %v1154_v3  ;;  %v624_v8 = vpop.permute.xlu0 %623  ;;  %v1210_v10 = vld [vmem:[#allocation5 + $0x30] sm:$0xff] }
 0x12c   : > { %1094 = vrot.lane.b32.xlu1 %v6784_v27, %s6220_s13  ;;  %662 = vst.msk [vmem:[#allocation5 + $0x50] sm:$0xff] %vm651_vm4, %v624_v8 }
 0x12d   : > { %1163 = vrot.lane.b32.xlu0 %v6795_v34, %s6222_s20 }
 0x12e   : > { %v622_v6 = vpop.permute.xlu1 %621  ;;  %v1209_v7 = vld [vmem:[#allocation5 + $0x28] sm:$0xff] }
 0x12f   : > { %661 = vst.msk [vmem:[#allocation5 + $0x48] sm:$0xff] %vm651_vm4, %v622_v6  ;;  %v1222_v9 = vpack.c.bf16 %v1209_v7, %v1208_v23  ;;  %v734_v15 = vpop.permute.xlu0 %733 }
 0x130   : > { %1098 = vrot.lane.b32.xlu1 %v1067_v5, %s6220_s13  ;;  %774 = vst.msk [vmem:[#allocation5 + $0x40] sm:$0xff] %vm765_vm5, %v734_v15  ;;  %v1479_v15 = vld [vmem:[#allocation3 + $0x98] sm:$0x3] }
 0x131   : > { %5620 = vmatprep.mubr.msk.bf16.mxu0 %vm1258_vm12, %v1222_v9  ;;  %1167 = vrot.lane.b32.xlu0 %v927_v59, %s6222_s20 }
 0x132   : > { %v626_v13 = vpop.permute.xlu1 %625  ;;  %v1211_v14 = vld [vmem:[#allocation5 + $0x38] sm:$0xff] }
 0x133   : > { %663 = vst.msk [vmem:[#allocation5 + $0x58] sm:$0xff] %vm651_vm4, %v626_v13  ;;  %v1223_v16 = vpack.c.bf16 %v1211_v14, %v1210_v10  ;;  %v738_v19 = vpop.permute.xlu0 %737  ;;  %v6973_v14 = vld [vmem:[#allocation3 + $0x90] sm:$0xff] }
 0x134   : > { %1165 = vrot.lane.b32.xlu1 %v6804_v35, %s6222_s20  ;;  %776 = vst.msk [vmem:[#allocation5 + $0x50] sm:$0xff] %vm765_vm5, %v738_v19 }
 0x135   : > { %5621 = vmatmul.mubr.msk.bf16.gmra.mrb[4].mxu0 %vm1258_vm12, %v1223_v16  ;;  %v1971_v16 = vrot.slane %v6973_v14, 2  ;;  %1924 = vst.msk [vmem:[#allocation6 + $0x130] sm:$0xff] %vm1401_vm13, %v6973_v14 }
 0x136   : > { %v736_v18 = vpop.permute.xlu1 %735 }
 0x137   : > { %775 = vst.msk [vmem:[#allocation5 + $0x48] sm:$0xff] %vm765_vm5, %v736_v18  ;;  %v801_v21 = vpop.permute.xlu0 %800 }
 0x138   : > { %1169 = vrot.lane.b32.xlu1 %v1138_v17, %s6222_s20  ;;  %841 = vst.msk [vmem:[#allocation5 + $0x40] sm:$0xff] %vm832_vm6, %v801_v21  ;;  %v1972_v17 = vrot.slane %v1479_v15, 2 }
 0x13a   : > { %v740_v20 = vpop.permute.xlu1 %739  ;;  %v1973_v18 = vsel %vm668_vm3, %v1971_v16, %v1972_v17 }
 0x13b   : > { %777 = vst.msk [vmem:[#allocation5 + $0x58] sm:$0xff] %vm765_vm5, %v740_v20  ;;  %v805_v25 = vpop.permute.xlu0 %804 }
 0x13c   : > { %843 = vst.msk [vmem:[#allocation5 + $0x50] sm:$0xff] %vm832_vm6, %v805_v25  ;;  %v5948_v25 = vld [vmem:[%s8828_s3 + $0x40] sm:$0xff]  }
 0x13d   : > { %1988 = vst.msk [vmem:[#allocation6 + $0x138] sm:$0xff] %vm1401_vm13, %v1973_v18  ;;  %5418 = vmatprep.subr.bf16.mxu1 %v5948_v25 }
 0x13e   : > { %v803_v22 = vpop.permute.xlu1 %802 }
 0x13f   : > { %842 = vst.msk [vmem:[#allocation5 + $0x48] sm:$0xff] %vm832_vm6, %v803_v22  ;;  %v874_v27 = vpop.permute.xlu0 %873 }
 0x140   : > { %914 = vst.msk [vmem:[#allocation5 + $0x40] sm:$0xff] %vm905_vm7, %v874_v27  ;;  %v5950_v27 = vld [vmem:[%s8828_s3 + $0x48] sm:$0xff]  }
 0x142   : > { %v807_v26 = vpop.permute.xlu1 %806 }
 0x143   : > { %844 = vst.msk [vmem:[#allocation5 + $0x58] sm:$0xff] %vm832_vm6, %v807_v26  ;;  %v878_v29 = vpop.permute.xlu0 %877  ;;  %v5949_v26 = vld [vmem:[%s8828_s3] sm:$0xff]  }
 0x144   : > { %916 = vst.msk [vmem:[#allocation5 + $0x50] sm:$0xff] %vm905_vm7, %v878_v29  ;;  %5419 = vmatpush3.bf16.msra.mxu1 %v5949_v26 }
 0x145   : > { %5420 = vmatprep.subr.bf16.mxu1 %v5950_v27  ;;  %v5962_v27 = vld [vmem:[%s8828_s3 + $0x78] sm:$0xff]  }
 0x146   : > { %v876_v28 = vpop.permute.xlu1 %875 }
 0x147   : > { %915 = vst.msk [vmem:[#allocation5 + $0x48] sm:$0xff] %vm905_vm7, %v876_v28  ;;  %v945_v31 = vpop.permute.xlu0 %944 }
 0x148   : > { %985 = vst.msk [vmem:[#allocation5 + $0x40] sm:$0xff] %vm976_vm8, %v945_v31  ;;  %v5952_v31 = vld [vmem:[%s8828_s3 + $0x50] sm:$0xff]  }
 0x14a   : > { %v880_v30 = vpop.permute.xlu1 %879 }
 0x14b   : > { %917 = vst.msk [vmem:[#allocation5 + $0x58] sm:$0xff] %vm905_vm7, %v880_v30  ;;  %v949_v34 = vpop.permute.xlu0 %948  ;;  %v5951_v30 = vld [vmem:[%s8828_s3 + $0x8] sm:$0xff]  }
 0x14c   : > { %987 = vst.msk [vmem:[#allocation5 + $0x50] sm:$0xff] %vm976_vm8, %v949_v34  ;;  %5421 = vmatpush3.bf16.msra.mxu1 %v5951_v30 }
 0x14d   : > { %5422 = vmatprep.subr.bf16.mxu1 %v5952_v31 }
 0x14e   : > { %v947_v33 = vpop.permute.xlu1 %946 }
 0x14f   : > { %986 = vst.msk [vmem:[#allocation5 + $0x48] sm:$0xff] %vm976_vm8, %v947_v33  ;;  %v1012_v37 = vpop.permute.xlu0 %1011  ;;  %v5953_v33 = vld [vmem:[%s8828_s3 + $0x10] sm:$0xff]  }
 0x150   : > { %1052 = vst.msk [vmem:[#allocation5 + $0x40] sm:$0xff] %vm1043_vm9, %v1012_v37  ;;  %5423 = vmatpush3.bf16.msra.mxu1 %v5953_v33  ;;  %v7079_v33 = vld [vmem:[#allocation3 + $0xa0] sm:$0xff] }
 0x151   : > { %1508 = vst.msk [vmem:[#allocation6 + $0x140] sm:$0xff] %vm1401_vm13, %v7079_v33 }
 0x152   : > { %v951_v36 = vpop.permute.xlu1 %950 }
 0x153   : > { %988 = vst.msk [vmem:[#allocation5 + $0x58] sm:$0xff] %vm976_vm8, %v951_v36  ;;  %v1016_v40 = vpop.permute.xlu0 %1015  ;;  %v5954_v36 = vld [vmem:[%s8828_s3 + $0x58] sm:$0xff]  }
 0x154   : > { %1054 = vst.msk [vmem:[#allocation5 + $0x50] sm:$0xff] %vm1043_vm9, %v1016_v40  ;;  %v5955_v40 = vld [vmem:[%s8828_s3 + $0x18] sm:$0xff]   ;;  %5424 = vmatprep.subr.bf16.mxu1 %v5954_v36 }
 0x155   : > { %5425 = vmatpush3.bf16.msra.mxu1 %v5955_v40 }
 0x156   : > { %v1014_v35 = vpop.permute.xlu1 %1013 }
 0x157   : > { %1053 = vst.msk [vmem:[#allocation5 + $0x48] sm:$0xff] %vm1043_vm9, %v1014_v35  ;;  %v1085_v42 = vpop.permute.xlu0 %1084 }
 0x158   : > { %1125 = vst.msk [vmem:[#allocation5 + $0x40] sm:$0xff] %vm1116_vm10, %v1085_v42 }
 0x15a   : > { %v1018_v44 = vpop.permute.xlu1 %1017 }
 0x15b   : > { %1055 = vst.msk [vmem:[#allocation5 + $0x58] sm:$0xff] %vm1043_vm9, %v1018_v44  ;;  %v1089_v47 = vpop.permute.xlu0 %1088 }
 0x15c   : > { %1127 = vst.msk [vmem:[#allocation5 + $0x50] sm:$0xff] %vm1116_vm10, %v1089_v47  ;;  %v1461_v47 = vld [vmem:[#allocation3 + $0x8] sm:$0x3] }
 0x15e   : > { %v1087_v43 = vpop.permute.xlu1 %1086 }
 0x15f   : > { %1126 = vst.msk [vmem:[#allocation5 + $0x48] sm:$0xff] %vm1116_vm10, %v1087_v43  ;;  %v1156_v49 = vpop.permute.xlu0 %1155 }
 0x160   : > { %1196 = vst.msk [vmem:[#allocation5 + $0x40] sm:$0xff] %vm1187_vm11, %v1156_v49  ;;  %v1662_v49 = vrot.slane %v1461_v47, 2 }
 0x162   : > { %v1091_v48 = vpop.permute.xlu1 %1090 }
 0x163   : > { %1128 = vst.msk [vmem:[#allocation5 + $0x58] sm:$0xff] %vm1116_vm10, %v1091_v48  ;;  %v1160_v50 = vpop.permute.xlu0 %1159  ;;  %v1661_v48 = vrot.slane %v6933_v41, 2 }
 0x164   : > { %1198 = vst.msk [vmem:[#allocation5 + $0x50] sm:$0xff] %vm1187_vm11, %v1160_v50 }
 0x165   : > { %v1663_v50 = vsel %vm668_vm3, %v1661_v48, %v1662_v49 }
 0x166   : > { %v1158_v63 = vpop.permute.xlu1 %1157  ;;  %1725 = vst.msk [vmem:[#allocation6 + $0x8] sm:$0xff] %vm1401_vm13, %v1663_v50 }
 0x167   : > { %1197 = vst.msk [vmem:[#allocation5 + $0x48] sm:$0xff] %vm1187_vm11, %v1158_v63  ;;  %v628_v39 = vpop.permute.xlu0 %627  ;;  %v1212_v51 = vld [vmem:[#allocation5 + $0x40] sm:$0xff] }
 0x168   : > { %664 = vst.msk [vmem:[#allocation5 + $0x60] sm:$0xff] %vm651_vm4, %v628_v39  ;;  %v7019_v63 = vld [vmem:[%s8827_s2] ss:$0 sm:$0xff] }
 0x16a   : > { %v1162_v38 = vpop.permute.xlu1 %1161 }
 0x16b   : > { %1199 = vst.msk [vmem:[#allocation5 + $0x58] sm:$0xff] %vm1187_vm11, %v1162_v38  ;;  %v632_v55 = vpop.permute.xlu0 %631  ;;  %v1214_v57 = vld [vmem:[#allocation5 + $0x50] sm:$0xff]  ;;  %v5956_v38 = vld [vmem:[%s8828_s3 + $0x60] sm:$0xff]  }
 0x16c   : > { %666 = vst.msk [vmem:[#allocation5 + $0x70] sm:$0xff] %vm651_vm4, %v632_v55  ;;  %5426 = vmatprep.subr.bf16.mxu1 %v5956_v38 }
 0x16e   : > { %v630_v52 = vpop.permute.xlu1 %629  ;;  %v1213_v53 = vld [vmem:[#allocation5 + $0x48] sm:$0xff] }
 0x16f   : > { %665 = vst.msk [vmem:[#allocation5 + $0x68] sm:$0xff] %vm651_vm4, %v630_v52  ;;  %v1224_v56 = vpack.c.bf16 %v1213_v53, %v1212_v51  ;;  %v742_v60 = vpop.permute.xlu0 %741  ;;  %v5957_v51 = vld [vmem:[%s8828_s3 + $0x20] sm:$0xff]  }
 0x170   : > { %778 = vst.msk [vmem:[#allocation5 + $0x60] sm:$0xff] %vm765_vm5, %v742_v60  ;;  %5427 = vmatpush3.bf16.msra.mxu1 %v5957_v51 }
 0x171   : > { %5624 = vmatprep.mubr.msk.bf16.mxu0 %vm1258_vm12, %v1224_v56 }
 0x172   : > { %v634_v58 = vpop.permute.xlu1 %633  ;;  %v1215_v59 = vld [vmem:[#allocation5 + $0x58] sm:$0xff] }
 0x173   : > { %667 = vst.msk [vmem:[#allocation5 + $0x78] sm:$0xff] %vm651_vm4, %v634_v58  ;;  %v1225_v61 = vpack.c.bf16 %v1215_v59, %v1214_v57  ;;  %v746_v62 = vpop.permute.xlu0 %745 }
 0x174   : > { %780 = vst.msk [vmem:[#allocation5 + $0x70] sm:$0xff] %vm765_vm5, %v746_v62 }
 0x175   : > { %5625 = vmatmul.mubr.msk.bf16.gmra.mrb[8].mxu0 %vm1258_vm12, %v1225_v61 }
 0x176   : > { %v744_v46 = vpop.permute.xlu1 %743 }
 0x177   : > { %779 = vst.msk [vmem:[#allocation5 + $0x68] sm:$0xff] %vm765_vm5, %v744_v46  ;;  %v809_v0 = vpop.permute.xlu0 %808 }
 0x178   : > { %845 = vst.msk [vmem:[#allocation5 + $0x60] sm:$0xff] %vm832_vm6, %v809_v0  ;;  %v5959_v0 = vld [vmem:[%s8828_s3 + $0x28] sm:$0xff]  }
 0x17a   : > { %v748_v45 = vpop.permute.xlu1 %747 }
 0x17b   : > { %781 = vst.msk [vmem:[#allocation5 + $0x78] sm:$0xff] %vm765_vm5, %v748_v45  ;;  %v813_v1 = vpop.permute.xlu0 %812  ;;  %v5958_v45 = vld [vmem:[%s8828_s3 + $0x68] sm:$0xff]  }
 0x17c   : > { %847 = vst.msk [vmem:[#allocation5 + $0x70] sm:$0xff] %vm832_vm6, %v813_v1  ;;  %5428 = vmatprep.subr.bf16.mxu1 %v5958_v45  ;;  %v5961_v1 = vld [vmem:[%s8828_s3 + $0x30] sm:$0xff]  }
 0x17d   : > { %5429 = vmatpush3.bf16.msra.mxu1 %v5959_v0 }
 0x17e   : > { %v811_v54 = vpop.permute.xlu1 %810 }
 0x17f   : > { %846 = vst.msk [vmem:[#allocation5 + $0x68] sm:$0xff] %vm832_vm6, %v811_v54  ;;  %v882_v2 = vpop.permute.xlu0 %881  ;;  %v5960_v54 = vld [vmem:[%s8828_s3 + $0x70] sm:$0xff]  }
 0x180   : > { %918 = vst.msk [vmem:[#allocation5 + $0x60] sm:$0xff] %vm905_vm7, %v882_v2  ;;  %v1549_v2 = vrot.slane %v1461_v47, 1  ;;  %5430 = vmatprep.subr.bf16.mxu1 %v5960_v54 }
 0x181   : > { %5431 = vmatpush3.bf16.msra.mxu1 %v5961_v1 }
 0x182   : > { %v815_v24 = vpop.permute.xlu1 %814  ;;  %5432 = vmatprep.subr.bf16.mxu1 %v5962_v27  ;;  %v7184_v27 = vld [vmem:[#allocation3 + $0xa8] sm:$0x3] }
 0x183   : > { %848 = vst.msk [vmem:[#allocation5 + $0x78] sm:$0xff] %vm832_vm6, %v815_v24  ;;  %v886_v4 = vpop.permute.xlu0 %885  ;;  %v1548_v24 = vrot.slane %v6933_v41, 1 }
 0x184   : > { %920 = vst.msk [vmem:[#allocation5 + $0x70] sm:$0xff] %vm905_vm7, %v886_v4 }
 0x186   : > { %v884_v3 = vpop.permute.xlu1 %883 }
 0x187   : > { %919 = vst.msk [vmem:[#allocation5 + $0x68] sm:$0xff] %vm905_vm7, %v884_v3  ;;  %v953_v5 = vpop.permute.xlu0 %952 }
 0x188   : > { %989 = vst.msk [vmem:[#allocation5 + $0x60] sm:$0xff] %vm976_vm8, %v953_v5 }
 0x18a   : > { %v888_v23 = vpop.permute.xlu1 %887 }
 0x18b   : > { %921 = vst.msk [vmem:[#allocation5 + $0x78] sm:$0xff] %vm905_vm7, %v888_v23  ;;  %v957_v7 = vpop.permute.xlu0 %956 }
 0x18c   : > { %991 = vst.msk [vmem:[#allocation5 + $0x70] sm:$0xff] %vm976_vm8, %v957_v7 }
 0x18e   : > { %v955_v6 = vpop.permute.xlu1 %954 }
 0x18f   : > { %990 = vst.msk [vmem:[#allocation5 + $0x68] sm:$0xff] %vm976_vm8, %v955_v6  ;;  %v1020_v9 = vpop.permute.xlu0 %1019 }
 0x190   : > { %1056 = vst.msk [vmem:[#allocation5 + $0x60] sm:$0xff] %vm1043_vm9, %v1020_v9 }
 0x192   : > { %v959_v8 = vpop.permute.xlu1 %958 }
 0x193   : > { %992 = vst.msk [vmem:[#allocation5 + $0x78] sm:$0xff] %vm976_vm8, %v959_v8  ;;  %v1024_v11 = vpop.permute.xlu0 %1023 }
 0x194   : > { %1058 = vst.msk [vmem:[#allocation5 + $0x70] sm:$0xff] %vm1043_vm9, %v1024_v11 }
 0x196   : > { %v1022_v10 = vpop.permute.xlu1 %1021 }
 0x197   : > { %1057 = vst.msk [vmem:[#allocation5 + $0x68] sm:$0xff] %vm1043_vm9, %v1022_v10  ;;  %v1093_v13 = vpop.permute.xlu0 %1092  ;;  %v1550_v10 = vsel %vm554_vm2, %v1548_v24, %v1549_v2 }
 0x198   : > { %1129 = vst.msk [vmem:[#allocation5 + $0x60] sm:$0xff] %vm1116_vm10, %v1093_v13 }
 0x19a   : > { %v1026_v12 = vpop.permute.xlu1 %1025 }
 0x19b   : > { %1059 = vst.msk [vmem:[#allocation5 + $0x78] sm:$0xff] %vm1043_vm9, %v1026_v12  ;;  %v1097_v20 = vpop.permute.xlu0 %1096 }
 0x19c   : > { %1131 = vst.msk [vmem:[#allocation5 + $0x70] sm:$0xff] %vm1116_vm10, %v1097_v20 }
 0x19e   : > { %v1095_v19 = vpop.permute.xlu1 %1094 }
 0x19f   : > { %1130 = vst.msk [vmem:[#allocation5 + $0x68] sm:$0xff] %vm1116_vm10, %v1095_v19  ;;  %v1164_v22 = vpop.permute.xlu0 %1163 }
 0x1a0   : > { %1200 = vst.msk [vmem:[#allocation5 + $0x60] sm:$0xff] %vm1187_vm11, %v1164_v22 }
 0x1a2   : > { %v1099_v21 = vpop.permute.xlu1 %1098 }
 0x1a3   : > { %1132 = vst.msk [vmem:[#allocation5 + $0x78] sm:$0xff] %vm1116_vm10, %v1099_v21  ;;  %v1168_v29 = vpop.permute.xlu0 %1167 }
 0x1a4   : > { %1202 = vst.msk [vmem:[#allocation5 + $0x70] sm:$0xff] %vm1187_vm11, %v1168_v29 }
 0x1a6   : > { %v1166_v28 = vpop.permute.xlu1 %1165 }
 0x1a7   : > { %1201 = vst.msk [vmem:[#allocation5 + $0x68] sm:$0xff] %vm1187_vm11, %v1166_v28  ;;  %v1216_v34 = vld [vmem:[#allocation5 + $0x60] sm:$0xff]  ;;  %v5963_v28 = vld [vmem:[%s8828_s3 + $0x38] sm:$0xff]  }
 0x1a8   : > { %5433 = vmatpush3.bf16.msra.mxu1 %v5963_v28  ;;  %v1685_v28 = vrot.slane %v7079_v33, 2 }
 0x1aa   : > { %v1170_v32 = vpop.permute.xlu1 %1169 }
 0x1ab   : > { %1203 = vst.msk [vmem:[#allocation5 + $0x78] sm:$0xff] %vm1187_vm11, %v1170_v32  ;;  %v1218_v44 = vld [vmem:[#allocation5 + $0x70] sm:$0xff] }
 0x1ae   : > { %v1217_v37 = vld [vmem:[#allocation5 + $0x68] sm:$0xff] }
 0x1af   : > { %v1226_v35 = vpack.c.bf16 %v1217_v37, %v1216_v34 }
 0x1b1   : > { %5628 = vmatprep.mubr.msk.bf16.mxu0 %vm1258_vm12, %v1226_v35 }
 0x1b2   : > { %v1219_v42 = vld [vmem:[#allocation5 + $0x78] sm:$0xff] }
 0x1b3   : > { %v1227_v43 = vpack.c.bf16 %v1219_v42, %v1218_v44 }
 0x1b5   : > { %5629 = vmatmul.mubr.msk.bf16.gmra.mrb[12].mxu0 %vm1258_vm12, %v1227_v43 }
 0x1c8   : > { %v5618_v39 = vpop.f32.mrb[0].mxu0 }
 0x1c9   : > { %v1331_v52 = vadd.f32 %v5618_v39, %v7019_v63  ;;  %v1322_v53 = vpop.f32.mrb[1].mxu0 }
 0x1ca   : > { %v1323_v55 = vadd.f32 %v7019_v63, %v1322_v53  ;;  %v5619_v56 = vpop.f32.mrb[2].mxu0 }
 0x1cb   : > { %v1387_v57 = vmax.f32 %v1331_v52, 0.0  ;;  %v1334_v58 = vadd.f32 %v5619_v56, %v7019_v63  ;;  %v1325_v59 = vpop.f32.mrb[3].mxu0 }
 0x1cc   : > { %v1385_v60 = vmax.f32 %v1323_v55, 0.0  ;;  %v1326_v61 = vadd.f32 %v7019_v63, %v1325_v59 }
 0x1cd   : > { %1446 = vst.msk [vmem:[#allocation3 + $0x31] sm:$0xff] %vm1401_vm13, %v1387_v57  ;;  %v1388_v46 = vmax.f32 %v1334_v58, 0.0 }
 0x1ce   : > { %1444 = vst.msk [vmem:[#allocation3 + $0x11] sm:$0xff] %vm1401_vm13, %v1385_v60  ;;  %v1386_v62 = vmax.f32 %v1326_v61, 0.0 }
 0x1cf   : > { %1447 = vst.msk [vmem:[#allocation3 + $0x41] sm:$0xff] %vm1401_vm13, %v1388_v46 }
 0x1d0   : > { %1445 = vst.msk [vmem:[#allocation3 + $0x21] sm:$0xff] %vm1401_vm13, %v1386_v62 }
 0x1d4   : > { %v7050_v3 = vld [vmem:[#allocation3 + $0x30] sm:$0xff]  ;;  %v1467_v4 = vld [vmem:[#allocation3 + $0x38] sm:$0x3] }
 0x1d5   : > { %v1462_v23 = vld [vmem:[#allocation3 + $0x10] sm:$0xff]  ;;  %v1463_v5 = vld [vmem:[#allocation3 + $0x18] sm:$0x3]  ;;  %1503 = vst.msk [vmem:[#allocation6 + $0x78] sm:$0xff] %vm1401_vm13, %v7050_v3  ;;  %1918 = vst.msk [vmem:[#allocation6 + $0x40] sm:$0xff] %vm1401_vm13, %v7050_v3  ;;  %v1557_v6 = vrot.slane %v7050_v3, 1 }
 0x1d6   : > { %v1558_v7 = vrot.slane %v1467_v4, 1  ;;  %v1671_v8 = vrot.slane %v1467_v4, 2  ;;  %1743 = vrot.lane.b32.xlu0 %v1462_v23, %s6223_s15  ;;  %v1551_v41 = vrot.slane %v1462_v23, 1  ;;  %v1664_v9 = vrot.slane %v1462_v23, 2  ;;  %1501 = vst.msk [vmem:[#allocation6 + $0x28] sm:$0xff] %vm1401_vm13, %v1462_v23  ;;  %v1468_v12 = vld [vmem:[#allocation3 + $0x40] sm:$0xff] }
 0x1d7   : > { %v1552_v11 = vrot.slane %v1463_v5, 1  ;;  %v1469_v13 = vld [vmem:[#allocation3 + $0x48] sm:$0x3]  ;;  %v1464_v15 = vld [vmem:[#allocation3 + $0x20] sm:$0xff]  ;;  %1504 = vst.msk [vmem:[#allocation6 + $0xa0] sm:$0xff] %vm1401_vm13, %v1468_v12  ;;  %1919 = vst.msk [vmem:[#allocation6 + $0x68] sm:$0xff] %vm1401_vm13, %v1468_v12 }
 0x1d8   : > { %v1465_v16 = vld [vmem:[#allocation3 + $0x28] sm:$0x3]  ;;  %v1559_v17 = vsel %vm554_vm2, %v1557_v6, %v1558_v7  ;;  %v1560_v18 = vrot.slane %v1468_v12, 1  ;;  %v1561_v19 = vrot.slane %v1469_v13, 1  ;;  %v1674_v20 = vrot.slane %v1469_v13, 2  ;;  %1745 = vrot.lane.b32.xlu1 %v1464_v15, %s6223_s15  ;;  %1502 = vst.msk [vmem:[#allocation6 + $0x50] sm:$0xff] %vm1401_vm13, %v1464_v15 }
 0x1d9   : > { %1917 = vst.msk [vmem:[#allocation6 + $0x18] sm:$0xff] %vm1401_vm13, %v1464_v15  ;;  %v1553_v21 = vsel %vm554_vm2, %v1551_v41, %v1552_v11  ;;  %v1554_v22 = vrot.slane %v1464_v15, 1  ;;  %v1555_v25 = vrot.slane %v1465_v16, 1  ;;  %v1668_v26 = vrot.slane %v1465_v16, 2  ;;  %1833 = vst.msk [vmem:[#allocation6 + $0x60] sm:$0xff] %vm1401_vm13, %v1559_v17 }
 0x1da   : > { %1831 = vst.msk [vmem:[#allocation6 + $0x10] sm:$0xff] %vm1401_vm13, %v1553_v21  ;;  %v7076_v29 = vsel %vm554_vm2, %v1560_v18, %v1561_v19  ;;  %v1665_v30 = vrot.slane %v1463_v5, 2  ;;  %v1667_v31 = vrot.slane %v1464_v15, 2  ;;  %v1670_v32 = vrot.slane %v7050_v3, 2  ;;  %1596 = vrot.lane.b32.xlu0 %v1550_v10, %s6223_s15  ;;  %v1499_v18 = vld [vmem:[#allocation3 + $0x138] sm:$0x3] }
 0x1db   : > { %v1556_v34 = vsel %vm554_vm2, %v1554_v22, %v1555_v25  ;;  %1834 = vst.msk [vmem:[#allocation6 + $0x88] sm:$0xff] %vm1401_vm13, %v7076_v29  ;;  %v1673_v36 = vrot.slane %v1468_v12, 2  ;;  %v1975_v22 = vrot.slane %v1499_v18, 2 }
 0x1dc   : > { %1832 = vst.msk [vmem:[#allocation6 + $0x38] sm:$0xff] %vm1401_vm13, %v1556_v34  ;;  %v7089_v37 = vsel %vm668_vm3, %v1664_v9, %v1665_v30  ;;  %v7092_v35 = vsel %vm668_vm3, %v1667_v31, %v1668_v26  ;;  %v7095_v40 = vsel %vm668_vm3, %v1670_v32, %v1671_v8  ;;  %1598 = vrot.lane.b32.xlu1 %v1553_v21, %s6223_s15 }
 0x1dd   : > { %1726 = vst.msk [vmem:[#allocation6 + $0x30] sm:$0xff] %vm1401_vm13, %v7089_v37  ;;  %1727 = vst.msk [vmem:[#allocation6 + $0x58] sm:$0xff] %vm1401_vm13, %v7092_v35  ;;  %v7109_v44 = vsel %vm668_vm3, %v1673_v36, %v1674_v20 }
 0x1de   : > { %1981 = vst.msk [vmem:[#allocation6 + $0x20] sm:$0xff] %vm1401_vm13, %v7092_v35  ;;  %1728 = vst.msk [vmem:[#allocation6 + $0x80] sm:$0xff] %vm1401_vm13, %v7095_v40  ;;  %1747 = vrot.lane.b32.xlu0 %v7050_v3, %s6223_s15 }
 0x1df   : > { %1982 = vst.msk [vmem:[#allocation6 + $0x48] sm:$0xff] %vm1401_vm13, %v7095_v40  ;;  %1729 = vst.msk [vmem:[#allocation6 + $0xa8] sm:$0xff] %vm1401_vm13, %v7109_v44 }
 0x1e0   : > { %1983 = vst.msk [vmem:[#allocation6 + $0x70] sm:$0xff] %vm1401_vm13, %v7109_v44  ;;  %1749 = vrot.lane.b32.xlu1 %v1468_v12, %s6223_s15 }
 0x1e2   : > { %1600 = vrot.lane.b32.xlu0 %v1556_v34, %s6223_s15 }
 0x1e4   : > { %1602 = vrot.lane.b32.xlu1 %v1559_v17, %s6223_s15  ;;  %v1498_v17 = vld [vmem:[#allocation3 + $0x130] sm:$0xff] }
 0x1e5   : > { %v1974_v21 = vrot.slane %v1498_v17, 2  ;;  %1932 = vst.msk [vmem:[#allocation6 + $0x270] sm:$0xff] %vm1401_vm13, %v1498_v17 }
 0x1e7   : > { %v1976_v26 = vsel %vm668_vm3, %v1974_v21, %v1975_v22 }
 0x1e8   : > { %1996 = vst.msk [vmem:[#allocation6 + $0x278] sm:$0xff] %vm1401_vm13, %v1976_v26 }
 0x208   : > { %v5622_v42 = vpop.f32.mrb[4].mxu0 }
 0x209   : > { %v1347_v43 = vadd.f32 %v5622_v42, %v7019_v63  ;;  %v1338_v47 = vpop.f32.mrb[5].mxu0  ;;  %v1940_v42 = vrot.slane %v1498_v17, 1 }
 0x20a   : > { %v1339_v48 = vadd.f32 %v7019_v63, %v1338_v47  ;;  %v5623_v49 = vpop.f32.mrb[6].mxu0 }
 0x20b   : > { %v1391_v50 = vmax.f32 %v1347_v43, 0.0  ;;  %v1350_v38 = vadd.f32 %v5623_v49, %v7019_v63  ;;  %v1341_v39 = vpop.f32.mrb[7].mxu0  ;;  %v1941_v43 = vrot.slane %v1499_v18, 1 }
 0x20c   : > { %v1389_v51 = vmax.f32 %v1339_v48, 0.0  ;;  %v1342_v52 = vadd.f32 %v7019_v63, %v1341_v39 }
 0x20d   : > { %1450 = vst.msk [vmem:[#allocation3 + $0x71] sm:$0xff] %vm1401_vm13, %v1391_v50  ;;  %v1392_v53 = vmax.f32 %v1350_v38, 0.0 }
 0x20e   : > { %1448 = vst.msk [vmem:[#allocation3 + $0x51] sm:$0xff] %vm1401_vm13, %v1389_v51  ;;  %v1390_v55 = vmax.f32 %v1342_v52, 0.0  ;;  %v7196_v51 = vsel %vm554_vm2, %v1940_v42, %v1941_v43 }
 0x20f   : > { %1451 = vst.msk [vmem:[#allocation3 + $0x81] sm:$0xff] %vm1401_vm13, %v1392_v53 }
 0x210   : > { %1449 = vst.msk [vmem:[#allocation3 + $0x61] sm:$0xff] %vm1401_vm13, %v1390_v55 }
 0x214   : > { %v1474_v56 = vld [vmem:[#allocation3 + $0x70] sm:$0xff]  ;;  %v1475_v57 = vld [vmem:[#allocation3 + $0x78] sm:$0x3] }
 0x215   : > { %v1470_v58 = vld [vmem:[#allocation3 + $0x50] sm:$0xff]  ;;  %v1471_v59 = vld [vmem:[#allocation3 + $0x58] sm:$0x3]  ;;  %1507 = vst.msk [vmem:[#allocation6 + $0x118] sm:$0xff] %vm1401_vm13, %v1474_v56  ;;  %1922 = vst.msk [vmem:[#allocation6 + $0xe0] sm:$0xff] %vm1401_vm13, %v1474_v56  ;;  %v1569_v60 = vrot.slane %v1474_v56, 1 }
 0x216   : > { %v1570_v61 = vrot.slane %v1475_v57, 1  ;;  %v1683_v46 = vrot.slane %v1475_v57, 2  ;;  %1751 = vrot.lane.b32.xlu0 %v1470_v58, %s6223_s15  ;;  %1505 = vst.msk [vmem:[#allocation6 + $0xc8] sm:$0xff] %vm1401_vm13, %v1470_v58  ;;  %1920 = vst.msk [vmem:[#allocation6 + $0x90] sm:$0xff] %vm1401_vm13, %v1470_v58  ;;  %v1563_v62 = vrot.slane %v1470_v58, 1  ;;  %v1564_v45 = vrot.slane %v1471_v59, 1 }
 0x217   : > { %v1677_v0 = vrot.slane %v1471_v59, 2  ;;  %v1476_v54 = vld [vmem:[#allocation3 + $0x80] sm:$0xff]  ;;  %v1676_v1 = vrot.slane %v1470_v58, 2  ;;  %v1473_v4 = vld [vmem:[#allocation3 + $0x68] sm:$0x3]  ;;  %v1682_v5 = vrot.slane %v1474_v56, 2 }
 0x218   : > { %v1472_v24 = vld [vmem:[#allocation3 + $0x60] sm:$0xff]  ;;  %v1809_v2 = vrot.slane %v1476_v54, 1  ;;  %v1847_v3 = vrot.slane %v1476_v54, 2  ;;  %1923 = vst.msk [vmem:[#allocation6 + $0x108] sm:$0xff] %vm1401_vm13, %v1476_v54  ;;  %v1571_v23 = vsel %vm554_vm2, %v1569_v60, %v1570_v61  ;;  %v1565_v6 = vsel %vm554_vm2, %v1563_v62, %v1564_v45  ;;  %v1477_v9 = vld [vmem:[#allocation3 + $0x88] sm:$0x3] }
 0x219   : > { %1753 = vrot.lane.b32.xlu1 %v1472_v24, %s6223_s15  ;;  %1506 = vst.msk [vmem:[#allocation6 + $0xf0] sm:$0xff] %vm1401_vm13, %v1472_v24  ;;  %1921 = vst.msk [vmem:[#allocation6 + $0xb8] sm:$0xff] %vm1401_vm13, %v1472_v24  ;;  %v1566_v7 = vrot.slane %v1472_v24, 1  ;;  %v1567_v8 = vrot.slane %v1473_v4, 1  ;;  %v1680_v41 = vrot.slane %v1473_v4, 2  ;;  %v7142_v10 = vsel %vm668_vm3, %v1676_v1, %v1677_v0 }
 0x21a   : > { %1837 = vst.msk [vmem:[#allocation6 + $0x100] sm:$0xff] %vm1401_vm13, %v1571_v23  ;;  %1835 = vst.msk [vmem:[#allocation6 + $0xb0] sm:$0xff] %vm1401_vm13, %v1565_v6  ;;  %v1679_v11 = vrot.slane %v1472_v24, 2  ;;  %v7145_v12 = vsel %vm668_vm3, %v1682_v5, %v1683_v46  ;;  %v1810_v13 = vrot.slane %v1477_v9, 1  ;;  %1604 = vrot.lane.b32.xlu0 %v7076_v29, %s6223_s15  ;;  %v1848_v16 = vrot.slane %v1477_v9, 2 }
 0x21b   : > { %v1568_v15 = vsel %vm554_vm2, %v1566_v7, %v1567_v8  ;;  %1730 = vst.msk [vmem:[#allocation6 + $0xd0] sm:$0xff] %vm1401_vm13, %v7142_v10  ;;  %1984 = vst.msk [vmem:[#allocation6 + $0x98] sm:$0xff] %vm1401_vm13, %v7142_v10  ;;  %v1686_v29 = vrot.slane %v7184_v27, 2  ;;  %v1572_v45 = vrot.slane %v7079_v33, 1  ;;  %v1573_v0 = vrot.slane %v7184_v27, 1 }
 0x21c   : > { %1732 = vst.msk [vmem:[#allocation6 + $0x120] sm:$0xff] %vm1401_vm13, %v7145_v12  ;;  %1986 = vst.msk [vmem:[#allocation6 + $0xe8] sm:$0xff] %vm1401_vm13, %v7145_v12  ;;  %v7160_v19 = vsel %vm668_vm3, %v1679_v11, %v1680_v41  ;;  %v7163_v20 = vsel %vm554_vm2, %v1809_v2, %v1810_v13  ;;  %v7174_v25 = vsel %vm668_vm3, %v1847_v3, %v1848_v16 }
 0x21d   : > { %1836 = vst.msk [vmem:[#allocation6 + $0xd8] sm:$0xff] %vm1401_vm13, %v1568_v15  ;;  %1606 = vrot.lane.b32.xlu1 %v1565_v6, %s6223_s15  ;;  %1731 = vst.msk [vmem:[#allocation6 + $0xf8] sm:$0xff] %vm1401_vm13, %v7160_v19  ;;  %v1687_v32 = vsel %vm668_vm3, %v1685_v28, %v1686_v29  ;;  %v1574_v17 = vsel %vm554_vm2, %v1572_v45, %v1573_v0  ;;  %v5967_v45 = vld [vmem:[%s8828_s3 + $0x80] sm:$0xff]   ;;  %v5968_v0 = vld [vmem:[%s8828_s3 + $0xc8] sm:$0xff]  }
 0x21e   : > { %1985 = vst.msk [vmem:[#allocation6 + $0xc0] sm:$0xff] %vm1401_vm13, %v7160_v19  ;;  %1838 = vst.msk [vmem:[#allocation6 + $0x128] sm:$0xff] %vm1401_vm13, %v7163_v20  ;;  %1755 = vrot.lane.b32.xlu0 %v1474_v56, %s6223_s15 }
 0x21f   : > { %1987 = vst.msk [vmem:[#allocation6 + $0x110] sm:$0xff] %vm1401_vm13, %v7174_v25  ;;  %1733 = vst.msk [vmem:[#allocation6 + $0x148] sm:$0xff] %vm1401_vm13, %v1687_v32 }
 0x221   : > { %1757 = vrot.lane.b32.xlu1 %v1476_v54, %s6223_s15 }
 0x222   : > { %1608 = vrot.lane.b32.xlu0 %v1568_v15, %s6223_s15 }
 0x225   : > { %1610 = vrot.lane.b32.xlu1 %v1571_v23, %s6223_s15 }
 0x248   : > { %v5626_v30 = vpop.f32.mrb[8].mxu0  ;;  %v1744_v31 = vpop.permute.xlu0 %1743 }
 0x249   : > { %v1363_v34 = vadd.f32 %v5626_v30, %v7019_v63  ;;  %1791 = vst.msk [vmem:[#allocation6 + $0x8] sm:$0xff] %vm1644_vm15, %v1744_v31  ;;  %v1354_v36 = vpop.f32.mrb[9].mxu0 }
 0x24a   : > { %v1355_v47 = vadd.f32 %v7019_v63, %v1354_v36  ;;  %v5627_v48 = vpop.f32.mrb[10].mxu0  ;;  %v1746_v49 = vpop.permute.xlu1 %1745 }
 0x24b   : > { %v1395_v50 = vmax.f32 %v1363_v34, 0.0  ;;  %v1366_v38 = vadd.f32 %v5627_v48, %v7019_v63  ;;  %1792 = vst.msk [vmem:[#allocation6 + $0x30] sm:$0xff] %vm1644_vm15, %v1746_v49  ;;  %v1357_v39 = vpop.f32.mrb[11].mxu0 }
 0x24c   : > { %v1393_v52 = vmax.f32 %v1355_v47, 0.0  ;;  %v1358_v53 = vadd.f32 %v7019_v63, %v1357_v39  ;;  %v1597_v55 = vpop.permute.xlu0 %1596 }
 0x24d   : > { %1454 = vst.msk [vmem:[#allocation3 + $0xd1] sm:$0xff] %vm1401_vm13, %v1395_v50  ;;  %v1396_v56 = vmax.f32 %v1366_v38, 0.0 }
 0x24e   : > { %1645 = vst.msk [vmem:[#allocation6] sm:$0xff] %vm1644_vm15, %v1597_v55  ;;  %v1394_v57 = vmax.f32 %v1358_v53, 0.0  ;;  %v1599_v58 = vpop.permute.xlu1 %1598 }
 0x24f   : > { %1452 = vst.msk [vmem:[#allocation3 + $0xb1] sm:$0xff] %vm1401_vm13, %v1393_v52  ;;  %1455 = vst.msk [vmem:[#allocation3 + $0xe1] sm:$0xff] %vm1401_vm13, %v1396_v56 }
 0x250   : > { %1646 = vst.msk [vmem:[#allocation6 + $0x28] sm:$0xff] %vm1644_vm15, %v1599_v58  ;;  %v1748_v59 = vpop.permute.xlu0 %1747  ;;  %v1998_v61 = vld [vmem:[#allocation6 + $0x8] sm:$0xff] }
 0x251   : > { %1453 = vst.msk [vmem:[#allocation3 + $0xc1] sm:$0xff] %vm1401_vm13, %v1394_v57 }
 0x252   : > { %1793 = vst.msk [vmem:[#allocation6 + $0x58] sm:$0xff] %vm1644_vm15, %v1748_v59  ;;  %v1750_v60 = vpop.permute.xlu1 %1749  ;;  %v2003_v46 = vld [vmem:[#allocation6 + $0x30] sm:$0xff] }
 0x253   : > { %1794 = vst.msk [vmem:[#allocation6 + $0x80] sm:$0xff] %vm1644_vm15, %v1750_v60  ;;  %v2078_v62 = vpack.c.bf16 %v2003_v46, %v1998_v61  ;;  %v5964_v61 = vld [vmem:[%s8828_s3 + $0x100] sm:$0xff]   ;;  %v5965_v46 = vld [vmem:[%s8828_s3 + $0x108] sm:$0xff]  }
 0x254   : > { %v1601_v54 = vpop.permute.xlu0 %1600  ;;  %v7209_v24 = vld [vmem:[#allocation3 + $0xd0] sm:$0xff]  ;;  %v1487_v2 = vld [vmem:[#allocation3 + $0xd8] sm:$0x3]  ;;  %5632 = vmatprep.subr.bf16.mxu1 %v5964_v61 }
 0x255   : > { %v1997_v1 = vld [vmem:[#allocation6] sm:$0xff]  ;;  %1647 = vst.msk [vmem:[#allocation6 + $0x50] sm:$0xff] %vm1644_vm15, %v1601_v54  ;;  %1955 = vst.msk [vmem:[#allocation6 + $0x18] sm:$0xff] %vm1644_vm15, %v1601_v54  ;;  %2468 = vmatprep.mubr.bf16.mxu1 %v2078_v62  ;;  %v1581_v33 = vrot.slane %v7209_v24, 1  ;;  %v1582_v23 = vrot.slane %v1487_v2, 1  ;;  %v1694_v5 = vrot.slane %v7209_v24, 2 }
 0x256   : > { %v1482_v3 = vld [vmem:[#allocation3 + $0xb0] sm:$0xff]  ;;  %v1483_v4 = vld [vmem:[#allocation3 + $0xb8] sm:$0x3]  ;;  %1511 = vst.msk [vmem:[#allocation6 + $0x1b8] sm:$0xff] %vm1401_vm13, %v7209_v24  ;;  %1926 = vst.msk [vmem:[#allocation6 + $0x180] sm:$0xff] %vm1401_vm13, %v7209_v24  ;;  %v1603_v8 = vpop.permute.xlu1 %1602  ;;  %v1695_v36 = vrot.slane %v1487_v2, 2 }
 0x257   : > { %v1575_v6 = vrot.slane %v1482_v3, 1  ;;  %v1688_v7 = vrot.slane %v1482_v3, 2  ;;  %1759 = vrot.lane.b32.xlu0 %v1482_v3, %s6223_s15  ;;  %1509 = vst.msk [vmem:[#allocation6 + $0x168] sm:$0xff] %vm1401_vm13, %v1482_v3  ;;  %v2002_v41 = vld [vmem:[#allocation6 + $0x28] sm:$0xff]  ;;  %v1576_v9 = vrot.slane %v1483_v4, 1  ;;  %v1488_v11 = vld [vmem:[#allocation3 + $0xe0] sm:$0xff]  ;;  %v1583_v21 = vsel %vm554_vm2, %v1581_v33, %v1582_v23 }
 0x258   : > { %v1689_v13 = vrot.slane %v1483_v4, 2  ;;  %1648 = vst.msk [vmem:[#allocation6 + $0x78] sm:$0xff] %vm1644_vm15, %v1603_v8  ;;  %1956 = vst.msk [vmem:[#allocation6 + $0x40] sm:$0xff] %vm1644_vm15, %v1603_v8  ;;  %v1484_v15 = vld [vmem:[#allocation3 + $0xc0] sm:$0xff]  ;;  %v2077_v16 = vpack.c.bf16 %v2002_v41, %v1997_v1  ;;  %v1485_v18 = vld [vmem:[#allocation3 + $0xc8] sm:$0x3]  ;;  %v7250_v52 = vsel %vm668_vm3, %v1694_v5, %v1695_v36 }
 0x259   : > { %1512 = vst.msk [vmem:[#allocation6 + $0x1e0] sm:$0xff] %vm1401_vm13, %v1488_v11  ;;  %1927 = vst.msk [vmem:[#allocation6 + $0x1a8] sm:$0xff] %vm1401_vm13, %v1488_v11  ;;  %v1489_v22 = vld [vmem:[#allocation3 + $0xe8] sm:$0x3]  ;;  %v1584_v26 = vrot.slane %v1488_v11, 1  ;;  %1761 = vrot.lane.b32.xlu1 %v1484_v15, %s6223_s15  ;;  %v1577_v27 = vsel %vm554_vm2, %v1575_v6, %v1576_v9  ;;  %v1578_v28 = vrot.slane %v1484_v15, 1 }
 0x25a   : > { %1510 = vst.msk [vmem:[#allocation6 + $0x190] sm:$0xff] %vm1401_vm13, %v1484_v15  ;;  %1925 = vst.msk [vmem:[#allocation6 + $0x158] sm:$0xff] %vm1401_vm13, %v1484_v15  ;;  %v1579_v29 = vrot.slane %v1485_v18, 1  ;;  %v1585_v30 = vrot.slane %v1489_v22, 1  ;;  %2469 = vmatmul.mubr.bf16.vlgmr.msra.gmra.mrb[0].mxu1 %v2077_v16  ;;  %v7234_v31 = vsel %vm668_vm3, %v1688_v7, %v1689_v13  ;;  %v1691_v32 = vrot.slane %v1484_v15, 2  ;;  %v2008_v42 = vld [vmem:[#allocation6 + $0x58] sm:$0xff] }
 0x25b   : > { %1841 = vst.msk [vmem:[#allocation6 + $0x1a0] sm:$0xff] %vm1401_vm13, %v1583_v21  ;;  %1839 = vst.msk [vmem:[#allocation6 + $0x150] sm:$0xff] %vm1401_vm13, %v1577_v27  ;;  %v1692_v34 = vrot.slane %v1485_v18, 2  ;;  %1612 = vrot.lane.b32.xlu0 %v1574_v17, %s6223_s15  ;;  %v2013_v43 = vld [vmem:[#allocation6 + $0x80] sm:$0xff]  ;;  %v1697_v49 = vrot.slane %v1488_v11, 2  ;;  %v1698_v50 = vrot.slane %v1489_v22, 2  ;;  %5633 = vmatpush3.bf16.msra.mxu1 %v5964_v61 }
 0x25c   : > { %v1580_v47 = vsel %vm554_vm2, %v1578_v28, %v1579_v29  ;;  %v7239_v48 = vsel %vm554_vm2, %v1584_v26, %v1585_v30  ;;  %1734 = vst.msk [vmem:[#allocation6 + $0x170] sm:$0xff] %vm1401_vm13, %v7234_v31  ;;  %v2083_v38 = vpack.c.bf16 %v2013_v43, %v2008_v42  ;;  %1990 = vst.msk [vmem:[#allocation6 + $0x188] sm:$0xff] %vm1401_vm13, %v7250_v52  ;;  %v2007_v55 = vld [vmem:[#allocation6 + $0x50] sm:$0xff]  ;;  %v2000_v57 = vld [vmem:[#allocation6 + $0x18] sm:$0xff]  ;;  %5634 = vmatprep.subr.bf16.mxu1 %v5965_v46 }
 0x25d   : > { %1840 = vst.msk [vmem:[#allocation6 + $0x178] sm:$0xff] %vm1401_vm13, %v1580_v47  ;;  %1842 = vst.msk [vmem:[#allocation6 + $0x1c8] sm:$0xff] %vm1401_vm13, %v7239_v48  ;;  %v7247_v39 = vsel %vm668_vm3, %v1691_v32, %v1692_v34  ;;  %1614 = vrot.lane.b32.xlu1 %v1577_v27, %s6223_s15  ;;  %v7262_v53 = vsel %vm668_vm3, %v1697_v49, %v1698_v50  ;;  %v5966_v62 = vld [vmem:[%s8828_s3 + $0xc0] sm:$0xff]   ;;  %v5969_v3 = vld [vmem:[%s8828_s3 + $0x110] sm:$0xff]  }
 0x25e   : > { %1989 = vst.msk [vmem:[#allocation6 + $0x160] sm:$0xff] %vm1401_vm13, %v7247_v39  ;;  %1735 = vst.msk [vmem:[#allocation6 + $0x198] sm:$0xff] %vm1401_vm13, %v7247_v39  ;;  %2476 = vmatprep.mubr.bf16.mxu1 %v2083_v38  ;;  %5482 = vmatprep.subr.bf16.mxu0 %v5966_v62  ;;  %v5970_v4 = vld [vmem:[%s8828_s3 + $0x88] sm:$0xff]   ;;  %v5971_v41 = vld [vmem:[%s8828_s3 + $0xd0] sm:$0xff]  }
 0x25f   : > { %1736 = vst.msk [vmem:[#allocation6 + $0x1c0] sm:$0xff] %vm1401_vm13, %v7250_v52  ;;  %1991 = vst.msk [vmem:[#allocation6 + $0x1b0] sm:$0xff] %vm1401_vm13, %v7262_v53  ;;  %1763 = vrot.lane.b32.xlu0 %v7209_v24, %s6223_s15  ;;  %v2012_v56 = vld [vmem:[#allocation6 + $0x78] sm:$0xff]  ;;  %v2005_v58 = vld [vmem:[#allocation6 + $0x40] sm:$0xff]  ;;  %5483 = vmatpush3.bf16.msra.mxu0 %v5967_v45 }
 0x260   : > { %1737 = vst.msk [vmem:[#allocation6 + $0x1e8] sm:$0xff] %vm1401_vm13, %v7262_v53  ;;  %v2082_v59 = vpack.c.bf16 %v2012_v56, %v2007_v55  ;;  %v2080_v60 = vpack.c.bf16 %v2005_v58, %v2000_v57  ;;  %5484 = vmatprep.subr.bf16.mxu0 %v5968_v0  ;;  %5635 = vmatpush3.bf16.msra.mxu1 %v5965_v46  ;;  %v5972_v16 = vld [vmem:[%s8828_s3 + $0x90] sm:$0xff]   ;;  %v5974_v22 = vld [vmem:[%s8828_s3 + $0x98] sm:$0xff]   ;;  %v5975_v30 = vld [vmem:[%s8828_s3 + $0xe0] sm:$0xff]  }
 0x261   : > { %1765 = vrot.lane.b32.xlu1 %v1488_v11, %s6223_s15  ;;  %5636 = vmatprep.subr.bf16.mxu1 %v5969_v3 }
 0x262   : > { %2477 = vmatmul.mubr.bf16.gmra.mrb[4].mxu1 %v2082_v59  ;;  %2565 = vmatprep.mubr.bf16.mxu0 %v2080_v60 }
 0x263   : > { %1616 = vrot.lane.b32.xlu0 %v1580_v47, %s6223_s15  ;;  %5485 = vmatpush3.bf16.msra.mxu0 %v5970_v4 }
 0x264   : > { %5637 = vmatpush3.bf16.msra.mxu1 %v5969_v3  ;;  %5486 = vmatprep.subr.bf16.mxu0 %v5971_v41 }
 0x265   : > { %1618 = vrot.lane.b32.xlu1 %v1583_v21, %s6223_s15 }
 0x267   : > { %5487 = vmatpush3.bf16.msra.mxu0 %v5972_v16 }
 0x288   : > { %v5630_v54 = vpop.f32.mrb[12].mxu0  ;;  %v1752_v1 = vpop.permute.xlu0 %1751 }
 0x289   : > { %v1379_v24 = vadd.f32 %v5630_v54, %v7019_v63  ;;  %1795 = vst.msk [vmem:[#allocation6 + $0xa8] sm:$0xff] %vm1644_vm15, %v1752_v1  ;;  %v1370_v2 = vpop.f32.mrb[13].mxu0 }
 0x28a   : > { %v1371_v33 = vadd.f32 %v7019_v63, %v1370_v2  ;;  %v5631_v23 = vpop.f32.mrb[14].mxu0 }
 0x28b   : > { %v1754_v5 = vpop.permute.xlu1 %1753  ;;  %v1399_v6 = vmax.f32 %v1379_v24, 0.0  ;;  %v1382_v7 = vadd.f32 %v5631_v23, %v7019_v63  ;;  %v1373_v8 = vpop.f32.mrb[15].mxu0  ;;  %v5976_v24 = vld [vmem:[%s8828_s3 + $0xa0] sm:$0xff]  }
 0x28c   : > { %1796 = vst.msk [vmem:[#allocation6 + $0xd0] sm:$0xff] %vm1644_vm15, %v1754_v5  ;;  %v1397_v9 = vmax.f32 %v1371_v33, 0.0  ;;  %v1374_v11 = vadd.f32 %v7019_v63, %v1373_v8  ;;  %v1605_v13 = vpop.permute.xlu0 %1604  ;;  %v5973_v63 = vld [vmem:[%s8828_s3 + $0xd8] sm:$0xff]   ;;  %v5977_v5 = vld [vmem:[%s8828_s3 + $0xe8] sm:$0xff]  }
 0x28d   : > { %1458 = vst.msk [vmem:[#allocation3 + $0x111] sm:$0xff] %vm1401_vm13, %v1399_v6  ;;  %v1400_v15 = vmax.f32 %v1382_v7, 0.0  ;;  %5488 = vmatprep.subr.bf16.mxu0 %v5973_v63 }
 0x28e   : > { %1649 = vst.msk [vmem:[#allocation6 + $0xa0] sm:$0xff] %vm1644_vm15, %v1605_v13  ;;  %1957 = vst.msk [vmem:[#allocation6 + $0x68] sm:$0xff] %vm1644_vm15, %v1605_v13  ;;  %v1398_v17 = vmax.f32 %v1374_v11, 0.0  ;;  %5489 = vmatpush3.bf16.msra.mxu0 %v5974_v22  ;;  %v5979_v11 = vld [vmem:[%s8828_s3 + $0xa8] sm:$0xff]  }
 0x28f   : > { %1456 = vst.msk [vmem:[#allocation3 + $0xf1] sm:$0xff] %vm1401_vm13, %v1397_v9  ;;  %v1607_v18 = vpop.permute.xlu1 %1606  ;;  %1459 = vst.msk [vmem:[#allocation3 + $0x121] sm:$0xff] %vm1401_vm13, %v1400_v15  ;;  %5490 = vmatprep.subr.bf16.mxu0 %v5975_v30  ;;  %v5978_v9 = vld [vmem:[%s8828_s3 + $0x118] sm:$0xff]  }
 0x290   : > { %1650 = vst.msk [vmem:[#allocation6 + $0xc8] sm:$0xff] %vm1644_vm15, %v1607_v18  ;;  %1958 = vst.msk [vmem:[#allocation6 + $0x90] sm:$0xff] %vm1644_vm15, %v1607_v18  ;;  %v1756_v21 = vpop.permute.xlu0 %1755  ;;  %v2018_v27 = vld [vmem:[#allocation6 + $0xa8] sm:$0xff]  ;;  %5638 = vmatprep.subr.bf16.mxu1 %v5978_v9 }
 0x291   : > { %1457 = vst.msk [vmem:[#allocation3 + $0x101] sm:$0xff] %vm1401_vm13, %v1398_v17  ;;  %5639 = vmatpush3.bf16.msra.mxu1 %v5978_v9 }
 0x292   : > { %1797 = vst.msk [vmem:[#allocation6 + $0xf8] sm:$0xff] %vm1644_vm15, %v1756_v21  ;;  %5491 = vmatpush3.bf16.msra.mxu0 %v5976_v24 }
 0x293   : > { %v1758_v26 = vpop.permute.xlu1 %1757  ;;  %v2023_v28 = vld [vmem:[#allocation6 + $0xd0] sm:$0xff]  ;;  %5492 = vmatprep.subr.bf16.mxu0 %v5977_v5 }
 0x294   : > { %1798 = vst.msk [vmem:[#allocation6 + $0x120] sm:$0xff] %vm1644_vm15, %v1758_v26  ;;  %v2088_v29 = vpack.c.bf16 %v2023_v28, %v2018_v27  ;;  %v1609_v32 = vpop.permute.xlu0 %1608  ;;  %v7325_v36 = vld [vmem:[#allocation3 + $0x110] sm:$0xff]  ;;  %v7327_v42 = vld [vmem:[#allocation3 + $0x118] sm:$0x3] }
 0x295   : > { %v2017_v34 = vld [vmem:[#allocation6 + $0xa0] sm:$0xff]  ;;  %1651 = vst.msk [vmem:[#allocation6 + $0xf0] sm:$0xff] %vm1644_vm15, %v1609_v32  ;;  %1959 = vst.msk [vmem:[#allocation6 + $0xb8] sm:$0xff] %vm1644_vm15, %v1609_v32  ;;  %v1593_v49 = vrot.slane %v7325_v36, 1  ;;  %v1594_v50 = vrot.slane %v7327_v42, 1  ;;  %v1706_v38 = vrot.slane %v7325_v36, 2 }
 0x296   : > { %2484 = vmatprep.mubr.bf16.mxu1 %v2088_v29  ;;  %v1490_v43 = vld [vmem:[#allocation3 + $0xf0] sm:$0xff]  ;;  %v1491_v47 = vld [vmem:[#allocation3 + $0xf8] sm:$0x3]  ;;  %1515 = vst.msk [vmem:[#allocation6 + $0x258] sm:$0xff] %vm1401_vm13, %v7325_v36  ;;  %1930 = vst.msk [vmem:[#allocation6 + $0x220] sm:$0xff] %vm1401_vm13, %v7325_v36  ;;  %v1707_v41 = vrot.slane %v7327_v42, 2  ;;  %5493 = vmatpush3.bf16.msra.mxu0 %v5979_v11 }
 0x297   : > { %1767 = vrot.lane.b32.xlu0 %v1490_v43, %s6223_s15  ;;  %1513 = vst.msk [vmem:[#allocation6 + $0x208] sm:$0xff] %vm1401_vm13, %v1490_v43  ;;  %1928 = vst.msk [vmem:[#allocation6 + $0x1d0] sm:$0xff] %vm1401_vm13, %v1490_v43  ;;  %v1611_v55 = vpop.permute.xlu1 %1610  ;;  %v2022_v56 = vld [vmem:[#allocation6 + $0xc8] sm:$0xff]  ;;  %v1587_v57 = vrot.slane %v1490_v43, 1  ;;  %v1588_v58 = vrot.slane %v1491_v47, 1  ;;  %v7341_v59 = vld [vmem:[#allocation3 + $0x120] sm:$0xff]  ;;  %v1595_v1 = vsel %vm554_vm2, %v1593_v49, %v1594_v50 }
 0x298   : > { %v1700_v60 = vrot.slane %v1490_v43, 2  ;;  %v1701_v61 = vrot.slane %v1491_v47, 2  ;;  %1652 = vst.msk [vmem:[#allocation6 + $0x118] sm:$0xff] %vm1644_vm15, %v1611_v55  ;;  %1960 = vst.msk [vmem:[#allocation6 + $0xe0] sm:$0xff] %vm1644_vm15, %v1611_v55  ;;  %v1492_v46 = vld [vmem:[#allocation3 + $0x100] sm:$0xff]  ;;  %v2087_v62 = vpack.c.bf16 %v2022_v56, %v2017_v34  ;;  %v1812_v45 = vrot.slane %v7341_v59, 1 }
 0x299   : > { %v1850_v0 = vrot.slane %v7341_v59, 2  ;;  %1931 = vst.msk [vmem:[#allocation6 + $0x248] sm:$0xff] %vm1401_vm13, %v7341_v59  ;;  %v1493_v54 = vld [vmem:[#allocation3 + $0x108] sm:$0x3]  ;;  %1769 = vrot.lane.b32.xlu1 %v1492_v46, %s6223_s15  ;;  %1514 = vst.msk [vmem:[#allocation6 + $0x230] sm:$0xff] %vm1401_vm13, %v1492_v46  ;;  %v1589_v2 = vsel %vm554_vm2, %v1587_v57, %v1588_v58  ;;  %v1590_v3 = vrot.slane %v1492_v46, 1  ;;  %v1708_v22 = vsel %vm668_vm3, %v1706_v38, %v1707_v41 }
 0x29a   : > { %1929 = vst.msk [vmem:[#allocation6 + $0x1f8] sm:$0xff] %vm1401_vm13, %v1492_v46  ;;  %v1591_v4 = vrot.slane %v1493_v54, 1  ;;  %1845 = vst.msk [vmem:[#allocation6 + $0x240] sm:$0xff] %vm1401_vm13, %v1595_v1  ;;  %v7359_v33 = vsel %vm668_vm3, %v1700_v60, %v1701_v61  ;;  %v1497_v23 = vld [vmem:[#allocation3 + $0x128] sm:$0x3]  ;;  %2485 = vmatmul.mubr.bf16.gmra.mrb[8].mxu1 %v2087_v62  ;;  %v1703_v6 = vrot.slane %v1492_v46, 2 }
 0x29b   : > { %1843 = vst.msk [vmem:[#allocation6 + $0x1f0] sm:$0xff] %vm1401_vm13, %v1589_v2  ;;  %1992 = vst.msk [vmem:[#allocation6 + $0x1d8] sm:$0xff] %vm1401_vm13, %v7359_v33  ;;  %v1704_v7 = vrot.slane %v1493_v54, 2  ;;  %v1813_v8 = vrot.slane %v1497_v23, 1  ;;  %1620 = vrot.lane.b32.xlu0 %v7239_v48, %s6223_s15  ;;  %v2028_v13 = vld [vmem:[#allocation6 + $0xf8] sm:$0xff]  ;;  %v2033_v15 = vld [vmem:[#allocation6 + $0x120] sm:$0xff] }
 0x29c   : > { %1738 = vst.msk [vmem:[#allocation6 + $0x210] sm:$0xff] %vm1401_vm13, %v7359_v33  ;;  %v1592_v16 = vsel %vm554_vm2, %v1590_v3, %v1591_v4  ;;  %v1851_v17 = vrot.slane %v1497_v23, 2  ;;  %v2093_v18 = vpack.c.bf16 %v2033_v15, %v2028_v13  ;;  %v5980_v48 = vld [vmem:[%s8828_s3 + $0xf0] sm:$0xff]   ;;  %1994 = vst.msk [vmem:[#allocation6 + $0x228] sm:$0xff] %vm1401_vm13, %v1708_v22  ;;  %v5982_v32 = vld [vmem:[%s8828_s3 + $0xf8] sm:$0xff]  }
 0x29d   : > { %1844 = vst.msk [vmem:[#allocation6 + $0x218] sm:$0xff] %vm1401_vm13, %v1592_v16  ;;  %v1705_v63 = vsel %vm668_vm3, %v1703_v6, %v1704_v7  ;;  %v1814_v21 = vsel %vm554_vm2, %v1812_v45, %v1813_v8  ;;  %1622 = vrot.lane.b32.xlu1 %v1589_v2, %s6223_s15  ;;  %1740 = vst.msk [vmem:[#allocation6 + $0x260] sm:$0xff] %vm1401_vm13, %v1708_v22  ;;  %v5981_v27 = vld [vmem:[%s8828_s3 + $0xb0] sm:$0xff]   ;;  %5494 = vmatprep.subr.bf16.mxu0 %v5980_v48  ;;  %v5983_v34 = vld [vmem:[%s8828_s3 + $0xb8] sm:$0xff]  }
 0x29e   : > { %1993 = vst.msk [vmem:[#allocation6 + $0x200] sm:$0xff] %vm1401_vm13, %v1705_v63  ;;  %1739 = vst.msk [vmem:[#allocation6 + $0x238] sm:$0xff] %vm1401_vm13, %v1705_v63  ;;  %v1852_v26 = vsel %vm668_vm3, %v1850_v0, %v1851_v17  ;;  %2492 = vmatprep.mubr.bf16.mxu1 %v2093_v18  ;;  %v2027_v28 = vld [vmem:[#allocation6 + $0xf0] sm:$0xff]  ;;  %5495 = vmatpush3.bf16.msra.mxu0 %v5981_v27  ;;  %v6201_v42 = vld [vmem:[#allocation3 + $0x98] sm:$0x3] }
 0x29f   : > { %1846 = vst.msk [vmem:[#allocation6 + $0x268] sm:$0xff] %vm1401_vm13, %v1814_v21  ;;  %1995 = vst.msk [vmem:[#allocation6 + $0x250] sm:$0xff] %vm1401_vm13, %v1852_v26  ;;  %1771 = vrot.lane.b32.xlu0 %v7325_v36, %s6223_s15  ;;  %v2032_v29 = vld [vmem:[#allocation6 + $0x118] sm:$0xff]  ;;  %5496 = vmatprep.subr.bf16.mxu0 %v5982_v32  ;;  %v1937_v36 = vrot.slane %v6973_v14, 1  ;;  %v1938_v43 = vrot.slane %v6201_v42, 1  ;;  %v2001_v8 = vld [vmem:[#allocation6 + $0x20] sm:$0xff] }
 0x2a0   : > { %v2092_v30 = vpack.c.bf16 %v2032_v29, %v2027_v28  ;;  %v2006_v15 = vld [vmem:[#allocation6 + $0x48] sm:$0xff]  ;;  %v2015_v18 = vld [vmem:[#allocation6 + $0x90] sm:$0xff]  ;;  %v2016_v29 = vld [vmem:[#allocation6 + $0x98] sm:$0xff] }
 0x2a1   : > { %1773 = vrot.lane.b32.xlu1 %v7341_v59, %s6223_s15  ;;  %v2081_v17 = vpack.c.bf16 %v2006_v15, %v2001_v8  ;;  %v2026_v42 = vld [vmem:[#allocation6 + $0xe8] sm:$0xff] }
 0x2a2   : > { %2493 = vmatmul.mubr.bf16.gmra.mrb[12].mxu1 %v2092_v30  ;;  %5497 = vmatpush3.bf16.msra.mxu0 %v5983_v34  ;;  %v2021_v30 = vld [vmem:[#allocation6 + $0xc0] sm:$0xff]  ;;  %v2011_v34 = vld [vmem:[#allocation6 + $0x70] sm:$0xff] }
 0x2a3   : > { %1624 = vrot.lane.b32.xlu0 %v1592_v16, %s6223_s15  ;;  %v2066_v8 = vld [vmem:[#allocation6 + $0x228] sm:$0xff] }
 0x2a5   : > { %1626 = vrot.lane.b32.xlu1 %v1595_v1, %s6223_s15 }
 0x2a7   : > { %1853 = vrot.lane.b32.xlu0 %v7089_v37, %s6223_s15  ;;  %v1939_v37 = vsel %vm554_vm2, %v1937_v36, %v1938_v43  ;;  %v2086_v36 = vpack.c.bf16 %v2016_v29, %v2011_v34  ;;  %v2071_v29 = vld [vmem:[#allocation6 + $0x250] sm:$0xff] }
 0x2a8   : > { %v5995_v34 = vld [vmem:[%s8830_s5 + $0x14] ss:$8 sps:$4 sm:$0xff]  }
 0x2a9   : > { %1855 = vrot.lane.b32.xlu1 %v7092_v35, %s6223_s15 }
 0x2ab   : > { %1857 = vrot.lane.b32.xlu0 %v7095_v40, %s6223_s15 }
 0x2ad   : > { %1859 = vrot.lane.b32.xlu1 %v7109_v44, %s6223_s15 }
 0x2af   : > { %1861 = vrot.lane.b32.xlu0 %v7142_v10, %s6223_s15 }
 0x2b1   : > { %1863 = vrot.lane.b32.xlu1 %v7160_v19, %s6223_s15 }
 0x2b3   : > { %1943 = vrot.lane.b32.xlu0 %v7163_v20, %s6223_s15 }
 0x2b5   : > { %1945 = vrot.lane.b32.xlu1 %v1939_v37, %s6223_s15  ;;  %v2091_v37 = vpack.c.bf16 %v2026_v42, %v2021_v30  ;;  %v2076_v30 = vld [vmem:[#allocation6 + $0x278] sm:$0xff] }
 0x2b6   : > { %v5990_v42 = vld [vmem:[%s8830_s5 + $0x110] ss:$8 sps:$4 sm:$0xff]  }
 0x2b7   : > { %1865 = vrot.lane.b32.xlu0 %v7145_v12, %s6223_s15 }
 0x2b9   : > { %1867 = vrot.lane.b32.xlu1 %v7174_v25, %s6223_s15 }
 0x2bb   : > { %1869 = vrot.lane.b32.xlu0 %v7234_v31, %s6223_s15 }
 0x2bd   : > { %1871 = vrot.lane.b32.xlu1 %v7247_v39, %s6223_s15 }
 0x2bf   : > { %1873 = vrot.lane.b32.xlu0 %v7250_v52, %s6223_s15 }
 0x2c1   : > { %1875 = vrot.lane.b32.xlu1 %v7262_v53, %s6223_s15 }
 0x2c3   : > { %1877 = vrot.lane.b32.xlu0 %v7359_v33, %s6223_s15 }
 0x2c5   : > { %1879 = vrot.lane.b32.xlu1 %v1705_v63, %s6223_s15 }
 0x2c7   : > { %1947 = vrot.lane.b32.xlu0 %v1814_v21, %s6223_s15 }
 0x2c9   : > { %v1760_v14 = vpop.permute.xlu0 %1759  ;;  %1949 = vrot.lane.b32.xlu1 %v7196_v51, %s6223_s15 }
 0x2ca   : > { %1799 = vst.msk [vmem:[#allocation6 + $0x148] sm:$0xff] %vm1644_vm15, %v1760_v14 }
 0x2cb   : > { %1881 = vrot.lane.b32.xlu0 %v1708_v22, %s6223_s15  ;;  %v1762_v35 = vpop.permute.xlu1 %1761 }
 0x2cc   : > { %1800 = vst.msk [vmem:[#allocation6 + $0x170] sm:$0xff] %vm1644_vm15, %v1762_v35  ;;  %v2025_v35 = vld [vmem:[#allocation6 + $0xe0] sm:$0xff] }
 0x2cd   : > { %v1613_v40 = vpop.permute.xlu0 %1612  ;;  %1883 = vrot.lane.b32.xlu1 %v1852_v26, %s6223_s15  ;;  %v2010_v26 = vld [vmem:[#allocation6 + $0x68] sm:$0xff] }
 0x2ce   : > { %1653 = vst.msk [vmem:[#allocation6 + $0x140] sm:$0xff] %vm1644_vm15, %v1613_v40  ;;  %v2085_v28 = vpack.c.bf16 %v2015_v18, %v2010_v26  ;;  %v5984_v18 = vld [vmem:[%s8830_s5 + $0x100] ss:$8 sps:$4 sm:$0xff]   ;;  %v5989_v26 = vld [vmem:[%s8830_s5 + $0x4] ss:$8 sps:$4 sm:$0xff]  }
 0x2cf   : > { %v1615_v44 = vpop.permute.xlu1 %1614  ;;  %4276 = vmatprep.subr.bf16.mxu1 %v5989_v26 }
 0x2d0   : > { %1654 = vst.msk [vmem:[#allocation6 + $0x168] sm:$0xff] %vm1644_vm15, %v1615_v44 }
 0x2d1   : > { %v1764_v10 = vpop.permute.xlu0 %1763  ;;  %v2038_v19 = vld [vmem:[#allocation6 + $0x148] sm:$0xff] }
 0x2d2   : > { %1801 = vst.msk [vmem:[#allocation6 + $0x198] sm:$0xff] %vm1644_vm15, %v1764_v10 }
 0x2d3   : > { %v1766_v12 = vpop.permute.xlu1 %1765  ;;  %v2043_v20 = vld [vmem:[#allocation6 + $0x170] sm:$0xff] }
 0x2d4   : > { %1802 = vst.msk [vmem:[#allocation6 + $0x1c0] sm:$0xff] %vm1644_vm15, %v1766_v12  ;;  %v2098_v25 = vpack.c.bf16 %v2043_v20, %v2038_v19  ;;  %v2020_v12 = vld [vmem:[#allocation6 + $0xb8] sm:$0xff] }
 0x2d5   : > { %v1617_v51 = vpop.permute.xlu0 %1616  ;;  %v2037_v31 = vld [vmem:[#allocation6 + $0x140] sm:$0xff] }
 0x2d6   : > { %1655 = vst.msk [vmem:[#allocation6 + $0x190] sm:$0xff] %vm1644_vm15, %v1617_v51  ;;  %1963 = vst.msk [vmem:[#allocation6 + $0x158] sm:$0xff] %vm1644_vm15, %v1617_v51  ;;  %2500 = vmatprep.mubr.bf16.mxu1 %v2098_v25  ;;  %v2090_v25 = vpack.c.bf16 %v2025_v35, %v2020_v12  ;;  %v2031_v51 = vld [vmem:[#allocation6 + $0x110] sm:$0xff]  ;;  %v5996_v12 = vld [vmem:[%s8830_s5 + $0x120] ss:$8 sps:$4 sm:$0xff]  }
 0x2d7   : > { %v1619_v39 = vpop.permute.xlu1 %1618  ;;  %v2042_v52 = vld [vmem:[#allocation6 + $0x168] sm:$0xff] }
 0x2d8   : > { %1656 = vst.msk [vmem:[#allocation6 + $0x1b8] sm:$0xff] %vm1644_vm15, %v1619_v39  ;;  %1964 = vst.msk [vmem:[#allocation6 + $0x180] sm:$0xff] %vm1644_vm15, %v1619_v39  ;;  %v2097_v53 = vpack.c.bf16 %v2042_v52, %v2037_v31  ;;  %v2036_v31 = vld [vmem:[#allocation6 + $0x138] sm:$0xff]  ;;  %v2041_v52 = vld [vmem:[#allocation6 + $0x160] sm:$0xff] }
 0x2d9   : > { %v2048_v47 = vld [vmem:[#allocation6 + $0x198] sm:$0xff] }
 0x2da   : > { %2501 = vmatmul.mubr.bf16.gmra.mrb[16].mxu1 %v2097_v53 }
 0x2db   : > { %v2053_v49 = vld [vmem:[#allocation6 + $0x1c0] sm:$0xff] }
 0x2dc   : > { %v2103_v50 = vpack.c.bf16 %v2053_v49, %v2048_v47 }
 0x2dd   : > { %v2047_v38 = vld [vmem:[#allocation6 + $0x190] sm:$0xff] }
 0x2de   : > { %2508 = vmatprep.mubr.bf16.mxu1 %v2103_v50 }
 0x2df   : > { %v2052_v55 = vld [vmem:[#allocation6 + $0x1b8] sm:$0xff]  ;;  %v2045_v15 = vld [vmem:[#allocation6 + $0x180] sm:$0xff] }
 0x2e0   : > { %v2102_v56 = vpack.c.bf16 %v2052_v55, %v2047_v38  ;;  %v2096_v38 = vpack.c.bf16 %v2036_v31, %v2031_v51  ;;  %v2046_v55 = vld [vmem:[#allocation6 + $0x188] sm:$0xff]  ;;  %v6004_v51 = vld [vmem:[%s8830_s5 + $0x134] ss:$8 sps:$4 sm:$0xff]  }
 0x2e2   : > { %2509 = vmatmul.mubr.bf16.gmra.mrb[20].mxu1 %v2102_v56 }
 0x309   : > { %v1768_v57 = vpop.permute.xlu0 %1767 }
 0x30a   : > { %1803 = vst.msk [vmem:[#allocation6 + $0x1e8] sm:$0xff] %vm1644_vm15, %v1768_v57 }
 0x30b   : > { %v1770_v58 = vpop.permute.xlu1 %1769 }
 0x30c   : > { %1804 = vst.msk [vmem:[#allocation6 + $0x210] sm:$0xff] %vm1644_vm15, %v1770_v58  ;;  %v2101_v58 = vpack.c.bf16 %v2046_v55, %v2041_v52  ;;  %v6002_v52 = vld [vmem:[%s8830_s5 + $0x130] ss:$8 sps:$4 sm:$0xff]  }
 0x30d   : > { %v1621_v59 = vpop.permute.xlu0 %1620 }
 0x30e   : > { %1657 = vst.msk [vmem:[#allocation6 + $0x1e0] sm:$0xff] %vm1644_vm15, %v1621_v59  ;;  %1965 = vst.msk [vmem:[#allocation6 + $0x1a8] sm:$0xff] %vm1644_vm15, %v1621_v59 }
 0x30f   : > { %v1623_v60 = vpop.permute.xlu1 %1622 }
 0x310   : > { %1658 = vst.msk [vmem:[#allocation6 + $0x208] sm:$0xff] %vm1644_vm15, %v1623_v60  ;;  %1966 = vst.msk [vmem:[#allocation6 + $0x1d0] sm:$0xff] %vm1644_vm15, %v1623_v60 }
 0x311   : > { %v1772_v61 = vpop.permute.xlu0 %1771  ;;  %v2058_v62 = vld [vmem:[#allocation6 + $0x1e8] sm:$0xff] }
 0x312   : > { %1805 = vst.msk [vmem:[#allocation6 + $0x238] sm:$0xff] %vm1644_vm15, %v1772_v61 }
 0x313   : > { %v1774_v46 = vpop.permute.xlu1 %1773  ;;  %v2063_v45 = vld [vmem:[#allocation6 + $0x210] sm:$0xff] }
 0x314   : > { %1806 = vst.msk [vmem:[#allocation6 + $0x260] sm:$0xff] %vm1644_vm15, %v1774_v46  ;;  %v2108_v0 = vpack.c.bf16 %v2063_v45, %v2058_v62 }
 0x315   : > { %v1625_v54 = vpop.permute.xlu0 %1624  ;;  %v2057_v24 = vld [vmem:[#allocation6 + $0x1e0] sm:$0xff] }
 0x316   : > { %1659 = vst.msk [vmem:[#allocation6 + $0x230] sm:$0xff] %vm1644_vm15, %v1625_v54  ;;  %1967 = vst.msk [vmem:[#allocation6 + $0x1f8] sm:$0xff] %vm1644_vm15, %v1625_v54  ;;  %2516 = vmatprep.mubr.bf16.mxu1 %v2108_v0 }
 0x317   : > { %v1627_v1 = vpop.permute.xlu1 %1626  ;;  %v2062_v2 = vld [vmem:[#allocation6 + $0x208] sm:$0xff] }
 0x318   : > { %1660 = vst.msk [vmem:[#allocation6 + $0x258] sm:$0xff] %vm1644_vm15, %v1627_v1  ;;  %1968 = vst.msk [vmem:[#allocation6 + $0x220] sm:$0xff] %vm1644_vm15, %v1627_v1  ;;  %v2107_v3 = vpack.c.bf16 %v2062_v2, %v2057_v24  ;;  %v2056_v24 = vld [vmem:[#allocation6 + $0x1d8] sm:$0xff] }
 0x319   : > { %v1854_v4 = vpop.permute.xlu0 %1853  ;;  %v2068_v23 = vld [vmem:[#allocation6 + $0x238] sm:$0xff] }
 0x31a   : > { %1901 = vst.msk [vmem:[#allocation6 + $0x10] sm:$0xff] %vm1644_vm15, %v1854_v4  ;;  %2517 = vmatmul.mubr.bf16.gmra.mrb[24].mxu1 %v2107_v3  ;;  %v2061_v3 = vld [vmem:[#allocation6 + $0x200] sm:$0xff] }
 0x31b   : > { %v1856_v33 = vpop.permute.xlu1 %1855  ;;  %v2073_v5 = vld [vmem:[#allocation6 + $0x260] sm:$0xff] }
 0x31c   : > { %1902 = vst.msk [vmem:[#allocation6 + $0x38] sm:$0xff] %vm1644_vm15, %v1856_v33  ;;  %v2113_v6 = vpack.c.bf16 %v2073_v5, %v2068_v23  ;;  %v2051_v5 = vld [vmem:[#allocation6 + $0x1b0] sm:$0xff] }
 0x31d   : > { %v1858_v7 = vpop.permute.xlu0 %1857  ;;  %v2067_v9 = vld [vmem:[#allocation6 + $0x230] sm:$0xff] }
 0x31e   : > { %1903 = vst.msk [vmem:[#allocation6 + $0x60] sm:$0xff] %vm1644_vm15, %v1858_v7  ;;  %2524 = vmatprep.mubr.bf16.mxu1 %v2113_v6  ;;  %v2106_v7 = vpack.c.bf16 %v2056_v24, %v2051_v5 }
 0x31f   : > { %v1860_v41 = vpop.permute.xlu1 %1859  ;;  %v2072_v11 = vld [vmem:[#allocation6 + $0x258] sm:$0xff]  ;;  %v2065_v55 = vld [vmem:[#allocation6 + $0x220] sm:$0xff] }
 0x320   : > { %1904 = vst.msk [vmem:[#allocation6 + $0x88] sm:$0xff] %vm1644_vm15, %v1860_v41  ;;  %v2112_v13 = vpack.c.bf16 %v2072_v11, %v2067_v9  ;;  %v2111_v11 = vpack.c.bf16 %v2066_v8, %v2061_v3  ;;  %v6028_v8 = vld [vmem:[%s8830_s5 + $0x174] ss:$8 sps:$4 sm:$0xff]  }
 0x321   : > { %v1862_v16 = vpop.permute.xlu0 %1861  ;;  %v1999_v21 = vld [vmem:[#allocation6 + $0x10] sm:$0xff] }
 0x322   : > { %1905 = vst.msk [vmem:[#allocation6 + $0xb0] sm:$0xff] %vm1644_vm15, %v1862_v16  ;;  %2525 = vmatmul.mubr.bf16.gmra.mrb[28].mxu1 %v2112_v13 }
 0x323   : > { %v1864_v63 = vpop.permute.xlu1 %1863  ;;  %5640 = vmatprep.mubr.msk.bf16.mxu1 %vm1401_vm13, %v2081_v17  ;;  %v2004_v22 = vld [vmem:[#allocation6 + $0x38] sm:$0xff] }
 0x324   : > { %1906 = vst.msk [vmem:[#allocation6 + $0xd8] sm:$0xff] %vm1644_vm15, %v1864_v63  ;;  %v2079_v48 = vpack.c.bf16 %v2004_v22, %v1999_v21  ;;  %v5986_v63 = vld [vmem:[%s8830_s5 + $0x104] ss:$8 sps:$4 sm:$0xff]   ;;  %v2040_v22 = vld [vmem:[#allocation6 + $0x158] sm:$0xff] }
 0x325   : > { %v1944_v27 = vpop.permute.xlu0 %1943  ;;  %v2009_v44 = vld [vmem:[#allocation6 + $0x60] sm:$0xff]  ;;  %4389 = vmatprep.subr.bf16.mxu0 %v5986_v63  ;;  %v6031_v63 = vld [vmem:[%s8830_s5 + $0x74] ss:$8 sps:$4 sm:$0xff]  }
 0x326   : > { %1961 = vst.msk [vmem:[#allocation6 + $0x108] sm:$0xff] %vm1644_vm15, %v1944_v27  ;;  %2566 = vmatmul.mubr.bf16.vlgmr.msra.gmra.mrb[16].mxu0 %v2079_v48  ;;  %v5987_v48 = vld [vmem:[%s8830_s5] ss:$8 sps:$4 sm:$0xff]  }
 0x327   : > { %v1946_v32 = vpop.permute.xlu1 %1945  ;;  %2573 = vmatprep.mubr.bf16.mxu0 %v2085_v28  ;;  %v2014_v14 = vld [vmem:[#allocation6 + $0x88] sm:$0xff]  ;;  %v2100_v28 = vpack.c.bf16 %v2045_v15, %v2040_v22  ;;  %4390 = vmatpush1.bf16.msra.mxu0 %v5984_v18  ;;  %v6029_v18 = vld [vmem:[%s8830_s5 + $0x70] ss:$8 sps:$4 sm:$0xff]  }
 0x328   : > { %1962 = vst.msk [vmem:[#allocation6 + $0x130] sm:$0xff] %vm1644_vm15, %v1946_v32  ;;  %v2084_v10 = vpack.c.bf16 %v2014_v14, %v2009_v44  ;;  %v5992_v32 = vld [vmem:[%s8830_s5 + $0x114] ss:$8 sps:$4 sm:$0xff]   ;;  %v5998_v14 = vld [vmem:[%s8830_s5 + $0x124] ss:$8 sps:$4 sm:$0xff]  }
 0x329   : > { %v1866_v43 = vpop.permute.xlu0 %1865  ;;  %v2019_v46 = vld [vmem:[#allocation6 + $0xb0] sm:$0xff]  ;;  %4391 = vmatprep.subr.bf16.mxu0 %v5992_v32  ;;  %v6037_v32 = vld [vmem:[%s8830_s5 + $0x84] ss:$8 sps:$4 sm:$0xff]  }
 0x32a   : > { %1907 = vst.msk [vmem:[#allocation6 + $0x100] sm:$0xff] %vm1644_vm15, %v1866_v43  ;;  %5641 = vmatmul.mubr.msk.bf16.vlgmr.msra.gmra.mrb[32].mxu1 %vm1401_vm13, %v2086_v36  ;;  %v2116_v43 = vpack.c.bf16 %v2076_v30, %v2071_v29  ;;  %v2055_v44 = vld [vmem:[#allocation6 + $0x1d0] sm:$0xff]  ;;  %v6034_v29 = vld [vmem:[%s8830_s5 + $0x184] ss:$8 sps:$4 sm:$0xff]   ;;  %v6035_v30 = vld [vmem:[%s8830_s5 + $0x80] ss:$8 sps:$4 sm:$0xff]  }
 0x32b   : > { %v1868_v40 = vpop.permute.xlu1 %1867  ;;  %5644 = vmatprep.mubr.msk.bf16.mxu1 %vm1401_vm13, %v2091_v37  ;;  %v2024_v59 = vld [vmem:[#allocation6 + $0xd8] sm:$0xff]  ;;  %4277 = vmatpush1.bf16.msra.mxu1 %v5987_v48 }
 0x32c   : > { %1908 = vst.msk [vmem:[#allocation6 + $0x128] sm:$0xff] %vm1644_vm15, %v1868_v40  ;;  %v2089_v62 = vpack.c.bf16 %v2024_v59, %v2019_v46  ;;  %v5993_v37 = vld [vmem:[%s8830_s5 + $0x10] ss:$8 sps:$4 sm:$0xff]   ;;  %4278 = vmatprep.subr.bf16.mxu1 %v5995_v34  ;;  %v6001_v40 = vld [vmem:[%s8830_s5 + $0x24] ss:$8 sps:$4 sm:$0xff]   ;;  %4392 = vmatpush1.bf16.msra.mxu0 %v5990_v42 }
 0x32d   : > { %v1870_v19 = vpop.permute.xlu0 %1869  ;;  %v5434_v20 = vpop.f32.mrb[0].mxu1  ;;  %v2030_v45 = vld [vmem:[#allocation6 + $0x108] sm:$0xff]  ;;  %4393 = vmatprep.subr.bf16.mxu0 %v5998_v14  ;;  %v6016_v46 = vld [vmem:[%s8830_s5 + $0x154] ss:$8 sps:$4 sm:$0xff]   ;;  %v6038_v34 = vld [vmem:[%s8830_s5 + $0x190] ss:$8 sps:$4 sm:$0xff]  }
 0x32e   : > { %1909 = vst.msk [vmem:[#allocation6 + $0x150] sm:$0xff] %vm1644_vm15, %v1870_v19  ;;  %v5435_v39 = vpop.f32.mrb[1].mxu1  ;;  %2574 = vmatmul.mubr.bf16.gmra.mrb[20].mxu0 %v2084_v10  ;;  %v6041_v14 = vld [vmem:[%s8830_s5 + $0x90] ss:$8 sps:$4 sm:$0xff]  }
 0x32f   : > { %v7482_v53 = vadd.f32 %v5435_v39, %v5434_v20  ;;  %v1872_v47 = vpop.permute.xlu1 %1871  ;;  %v5437_v49 = vpop.f32.mrb[2].mxu1  ;;  %2581 = vmatprep.mubr.bf16.mxu0 %v2090_v25  ;;  %v2035_v60 = vld [vmem:[#allocation6 + $0x130] sm:$0xff]  ;;  %v2050_v20 = vld [vmem:[#allocation6 + $0x1a8] sm:$0xff]  ;;  %4279 = vmatpush1.bf16.msra.mxu1 %v5993_v37 }
 0x330   : > { %1910 = vst.msk [vmem:[#allocation6 + $0x178] sm:$0xff] %vm1644_vm15, %v1872_v47  ;;  %v5438_v50 = vpop.f32.mrb[3].mxu1  ;;  %v2095_v1 = vpack.c.bf16 %v2035_v60, %v2030_v45  ;;  %v5999_v25 = vld [vmem:[%s8830_s5 + $0x20] ss:$8 sps:$4 sm:$0xff]   ;;  %v2105_v31 = vpack.c.bf16 %v2055_v44, %v2050_v20  ;;  %4280 = vmatprep.subr.bf16.mxu1 %v6001_v40  ;;  %v6007_v39 = vld [vmem:[%s8830_s5 + $0x34] ss:$8 sps:$4 sm:$0xff]   ;;  %4394 = vmatpush1.bf16.msra.mxu0 %v5996_v12 }
 0x331   : > { %v7485_v56 = vadd.f32 %v5438_v50, %v5437_v49  ;;  %v1874_v57 = vpop.permute.xlu0 %1873  ;;  %v2029_v17 = vld [vmem:[#allocation6 + $0x100] sm:$0xff]  ;;  %4395 = vmatprep.subr.bf16.mxu0 %v6004_v51  ;;  %v6005_v47 = vld [vmem:[%s8830_s5 + $0x30] ss:$8 sps:$4 sm:$0xff]   ;;  %v6019_v45 = vld [vmem:[%s8830_s5 + $0x54] ss:$8 sps:$4 sm:$0xff]  }
 0x332   : > { %1911 = vst.msk [vmem:[#allocation6 + $0x1a0] sm:$0xff] %vm1644_vm15, %v1874_v57  ;;  %5645 = vmatmul.mubr.msk.bf16.gmra.mrb[36].mxu1 %vm1401_vm13, %v2096_v38  ;;  %v6010_v49 = vld [vmem:[%s8830_s5 + $0x144] ss:$8 sps:$4 sm:$0xff]   ;;  %v2060_v60 = vld [vmem:[#allocation6 + $0x1f8] sm:$0xff]  ;;  %v6044_v12 = vld [vmem:[%s8830_s5 + $0x1a0] ss:$8 sps:$4 sm:$0xff]  }
 0x333   : > { %v1876_v61 = vpop.permute.xlu1 %1875  ;;  %5648 = vmatprep.mubr.msk.bf16.mxu1 %vm1401_vm13, %v2101_v58  ;;  %v2034_v13 = vld [vmem:[#allocation6 + $0x128] sm:$0xff]  ;;  %4281 = vmatpush1.bf16.msra.mxu1 %v5999_v25  ;;  %v6050_v51 = vld [vmem:[%s8830_s5 + $0x1b0] ss:$8 sps:$4 sm:$0xff]  }
 0x334   : > { %1912 = vst.msk [vmem:[#allocation6 + $0x1c8] sm:$0xff] %vm1644_vm15, %v1876_v61  ;;  %v2094_v21 = vpack.c.bf16 %v2034_v13, %v2029_v17  ;;  %4282 = vmatprep.subr.bf16.mxu1 %v6007_v39  ;;  %v6013_v38 = vld [vmem:[%s8830_s5 + $0x44] ss:$8 sps:$4 sm:$0xff]   ;;  %4396 = vmatpush1.bf16.msra.mxu0 %v6002_v52  ;;  %v6008_v58 = vld [vmem:[%s8830_s5 + $0x140] ss:$8 sps:$4 sm:$0xff]  }
 0x335   : > { %v1878_v0 = vpop.permute.xlu0 %1877  ;;  %v5440_v54 = vpop.f32.mrb[4].mxu1  ;;  %v2039_v10 = vld [vmem:[#allocation6 + $0x150] sm:$0xff]  ;;  %4397 = vmatprep.subr.bf16.mxu0 %v6010_v49  ;;  %v6011_v61 = vld [vmem:[%s8830_s5 + $0x40] ss:$8 sps:$4 sm:$0xff]   ;;  %v6049_v25 = vld [vmem:[%s8830_s5 + $0xa4] ss:$8 sps:$4 sm:$0xff]  }
 0x336   : > { %1913 = vst.msk [vmem:[#allocation6 + $0x1f0] sm:$0xff] %vm1644_vm15, %v1878_v0  ;;  %v5441_v2 = vpop.f32.mrb[5].mxu1  ;;  %2582 = vmatmul.mubr.bf16.gmra.mrb[24].mxu0 %v2089_v62  ;;  %v2110_v62 = vpack.c.bf16 %v2065_v55, %v2060_v60  ;;  %v6014_v0 = vld [vmem:[%s8830_s5 + $0x150] ss:$8 sps:$4 sm:$0xff]   ;;  %v6047_v20 = vld [vmem:[%s8830_s5 + $0xa0] ss:$8 sps:$4 sm:$0xff]  }
 0x337   : > { %v7492_v4 = vadd.f32 %v5441_v2, %v5440_v54  ;;  %v1880_v33 = vpop.permute.xlu1 %1879  ;;  %v5443_v23 = vpop.f32.mrb[6].mxu1  ;;  %2589 = vmatprep.mubr.bf16.mxu0 %v2095_v1  ;;  %v2044_v35 = vld [vmem:[#allocation6 + $0x178] sm:$0xff]  ;;  %4283 = vmatpush1.bf16.msra.mxu1 %v6005_v47  ;;  %v6022_v1 = vld [vmem:[%s8830_s5 + $0x164] ss:$8 sps:$4 sm:$0xff]   ;;  %v6056_v47 = vld [vmem:[%s8830_s5 + $0x1c0] ss:$8 sps:$4 sm:$0xff]  }
 0x338   : > { %1914 = vst.msk [vmem:[#allocation6 + $0x218] sm:$0xff] %vm1644_vm15, %v1880_v33  ;;  %v5444_v6 = vpop.f32.mrb[7].mxu1  ;;  %v2099_v19 = vpack.c.bf16 %v2044_v35, %v2039_v10  ;;  %4284 = vmatprep.subr.bf16.mxu1 %v6013_v38  ;;  %4398 = vmatpush1.bf16.msra.mxu0 %v6008_v58  ;;  %v6017_v54 = vld [vmem:[%s8830_s5 + $0x50] ss:$8 sps:$4 sm:$0xff]   ;;  %v6025_v2 = vld [vmem:[%s8830_s5 + $0x64] ss:$8 sps:$4 sm:$0xff]  }
 0x339   : > { %v7495_v41 = vadd.f32 %v5444_v6, %v5443_v23  ;;  %v1948_v9 = vpop.permute.xlu0 %1947  ;;  %v2049_v57 = vld [vmem:[#allocation6 + $0x1a0] sm:$0xff]  ;;  %4399 = vmatprep.subr.bf16.mxu0 %v6016_v46  ;;  %v6055_v39 = vld [vmem:[%s8830_s5 + $0xb4] ss:$8 sps:$4 sm:$0xff]   ;;  %v6053_v52 = vld [vmem:[%s8830_s5 + $0xb0] ss:$8 sps:$4 sm:$0xff]  }
 0x33a   : > { %1969 = vst.msk [vmem:[#allocation6 + $0x248] sm:$0xff] %vm1644_vm15, %v1948_v9  ;;  %5649 = vmatmul.mubr.msk.bf16.gmra.mrb[40].mxu1 %vm1401_vm13, %v2106_v7  ;;  %v6020_v23 = vld [vmem:[%s8830_s5 + $0x160] ss:$8 sps:$4 sm:$0xff]   ;;  %v6058_v49 = vld [vmem:[%s8830_s5 + $0x1c4] ss:$8 sps:$4 sm:$0xff]  }
 0x33b   : > { %v1950_v16 = vpop.permute.xlu1 %1949  ;;  %5652 = vmatprep.mubr.msk.bf16.mxu1 %vm1401_vm13, %v2111_v11  ;;  %v2054_v50 = vld [vmem:[#allocation6 + $0x1c8] sm:$0xff]  ;;  %4285 = vmatpush1.bf16.msra.mxu1 %v6011_v61  ;;  %v6026_v11 = vld [vmem:[%s8830_s5 + $0x170] ss:$8 sps:$4 sm:$0xff]   ;;  %v6064_v55 = vld [vmem:[%s8830_s5 + $0x1d4] ss:$8 sps:$4 sm:$0xff]  }
 0x33c   : > { %1970 = vst.msk [vmem:[#allocation6 + $0x270] sm:$0xff] %vm1644_vm15, %v1950_v16  ;;  %v2104_v59 = vpack.c.bf16 %v2054_v50, %v2049_v57  ;;  %4286 = vmatprep.subr.bf16.mxu1 %v6019_v45  ;;  %4400 = vmatpush1.bf16.msra.mxu0 %v6014_v0  ;;  %v6023_v7 = vld [vmem:[%s8830_s5 + $0x60] ss:$8 sps:$4 sm:$0xff]   ;;  %v6061_v38 = vld [vmem:[%s8830_s5 + $0xc4] ss:$8 sps:$4 sm:$0xff]  }
 0x33d   : > { %v1882_v27 = vpop.permute.xlu0 %1881  ;;  %v2059_v33 = vld [vmem:[#allocation6 + $0x1f0] sm:$0xff]  ;;  %4401 = vmatprep.subr.bf16.mxu0 %v6022_v1  ;;  %v6059_v50 = vld [vmem:[%s8830_s5 + $0xc0] ss:$8 sps:$4 sm:$0xff]   ;;  %v6070_v60 = vld [vmem:[%s8830_s5 + $0x1e4] ss:$8 sps:$4 sm:$0xff]  }
 0x33e   : > { %1915 = vst.msk [vmem:[#allocation6 + $0x240] sm:$0xff] %vm1644_vm15, %v1882_v27  ;;  %2590 = vmatmul.mubr.bf16.gmra.mrb[28].mxu0 %v2094_v21  ;;  %v6062_v57 = vld [vmem:[%s8830_s5 + $0x1d0] ss:$8 sps:$4 sm:$0xff]   ;;  %v6067_v58 = vld [vmem:[%s8830_s5 + $0xd4] ss:$8 sps:$4 sm:$0xff]  }
 0x33f   : > { %v1884_v36 = vpop.permute.xlu1 %1883  ;;  %2597 = vmatprep.mubr.bf16.mxu0 %v2100_v28  ;;  %v2064_v24 = vld [vmem:[#allocation6 + $0x218] sm:$0xff]  ;;  %4287 = vmatpush1.bf16.msra.mxu1 %v6017_v54  ;;  %v6032_v28 = vld [vmem:[%s8830_s5 + $0x180] ss:$8 sps:$4 sm:$0xff]  }
 0x340   : > { %1916 = vst.msk [vmem:[#allocation6 + $0x268] sm:$0xff] %vm1644_vm15, %v1884_v36  ;;  %v2109_v5 = vpack.c.bf16 %v2064_v24, %v2059_v33  ;;  %4288 = vmatprep.subr.bf16.mxu1 %v6025_v2  ;;  %4402 = vmatpush1.bf16.msra.mxu0 %v6020_v23  ;;  %v6040_v36 = vld [vmem:[%s8830_s5 + $0x194] ss:$8 sps:$4 sm:$0xff]   ;;  %v6068_v61 = vld [vmem:[%s8830_s5 + $0x1e0] ss:$8 sps:$4 sm:$0xff]  }
 0x341   : > { %v2070_v6 = vld [vmem:[#allocation6 + $0x248] sm:$0xff]  ;;  %4403 = vmatprep.subr.bf16.mxu0 %v6028_v8  ;;  %v6076_v45 = vld [vmem:[%s8830_s5 + $0x1f4] ss:$8 sps:$4 sm:$0xff]   ;;  %v6074_v0 = vld [vmem:[%s8830_s5 + $0x1f0] ss:$8 sps:$4 sm:$0xff]  }
 0x342   : > { %5653 = vmatmul.mubr.msk.bf16.gmra.mrb[44].mxu1 %vm1401_vm13, %v2116_v43  ;;  %v6043_v43 = vld [vmem:[%s8830_s5 + $0x94] ss:$8 sps:$4 sm:$0xff]   ;;  %v6071_v46 = vld [vmem:[%s8830_s5 + $0xe0] ss:$8 sps:$4 sm:$0xff]   ;;  %v6077_v1 = vld [vmem:[%s8830_s5 + $0xf0] ss:$8 sps:$4 sm:$0xff]  }
 0x343   : > { %v2075_v3 = vld [vmem:[#allocation6 + $0x270] sm:$0xff]  ;;  %4289 = vmatpush1.bf16.msra.mxu1 %v6023_v7  ;;  %v6082_v24 = vld [vmem:[%s8830_s5 + $0x204] ss:$8 sps:$4 sm:$0xff]  }
 0x344   : > { %v2115_v9 = vpack.c.bf16 %v2075_v3, %v2070_v6  ;;  %4404 = vmatpush1.bf16.msra.mxu0 %v6026_v11  ;;  %4290 = vmatprep.subr.bf16.mxu1 %v6031_v63  ;;  %v6079_v54 = vld [vmem:[%s8830_s5 + $0xf4] ss:$8 sps:$4 sm:$0xff]  }
 0x345   : > { %v2069_v15 = vld [vmem:[#allocation6 + $0x240] sm:$0xff]  ;;  %4405 = vmatprep.subr.bf16.mxu0 %v6034_v29 }
 0x346   : > { %2598 = vmatmul.mubr.bf16.gmra.mrb[32].mxu0 %v2099_v19  ;;  %v6046_v19 = vld [vmem:[%s8830_s5 + $0x1a4] ss:$8 sps:$4 sm:$0xff]  }
 0x347   : > { %2605 = vmatprep.mubr.bf16.mxu0 %v2105_v31  ;;  %v2074_v13 = vld [vmem:[#allocation6 + $0x268] sm:$0xff]  ;;  %4291 = vmatpush1.bf16.msra.mxu1 %v6029_v18  ;;  %v6052_v31 = vld [vmem:[%s8830_s5 + $0x1b4] ss:$8 sps:$4 sm:$0xff]  }
 0x348   : > { %v2114_v16 = vpack.c.bf16 %v2074_v13, %v2069_v15  ;;  %4406 = vmatpush1.bf16.msra.mxu0 %v6032_v28  ;;  %4292 = vmatprep.subr.bf16.mxu1 %v6037_v32 }
 0x349   : > { %4407 = vmatprep.subr.bf16.mxu0 %v6040_v36 }
 0x34b   : > { %4293 = vmatpush1.bf16.msra.mxu1 %v6035_v30 }
 0x34c   : > { %4294 = vmatprep.subr.bf16.mxu1 %v6043_v43  ;;  %4408 = vmatpush1.bf16.msra.mxu0 %v6038_v34  ;;  %v7727_v34 = vld [vmem:[%s8829_s4] ss:$0 sm:$0xff] }
 0x34d   : > { %4409 = vmatprep.subr.bf16.mxu0 %v6046_v19  ;;  %v2474_v19 = vadd.f32 %v7485_v56, %v7727_v34 }
 0x34e   : > { %2606 = vmatmul.mubr.bf16.gmra.mrb[36].mxu0 %v2104_v59  ;;  %v6065_v59 = vld [vmem:[%s8830_s5 + $0xd0] ss:$8 sps:$4 sm:$0xff]  }
 0x34f   : > { %2613 = vmatprep.mubr.bf16.mxu0 %v2110_v62  ;;  %4295 = vmatpush1.bf16.msra.mxu1 %v6041_v14  ;;  %v6073_v62 = vld [vmem:[%s8830_s5 + $0xe4] ss:$8 sps:$4 sm:$0xff]   ;;  %v2471_v14 = vadd.f32 %v7482_v53, %v7727_v34  ;;  %v2479_v53 = vadd.f32 %v7492_v4, %v7727_v34 }
 0x350   : > { %4410 = vmatpush1.bf16.msra.mxu0 %v6044_v12  ;;  %4296 = vmatprep.subr.bf16.mxu1 %v6049_v25 }
 0x351   : > { %4411 = vmatprep.subr.bf16.mxu0 %v6052_v31 }
 0x353   : > { %4297 = vmatpush1.bf16.msra.mxu1 %v6047_v20 }
 0x354   : > { %4298 = vmatprep.subr.bf16.mxu1 %v6055_v39  ;;  %4412 = vmatpush1.bf16.msra.mxu0 %v6050_v51 }
 0x355   : > { %4413 = vmatprep.subr.bf16.mxu0 %v6058_v49 }
 0x356   : > { %2614 = vmatmul.mubr.bf16.gmra.mrb[40].mxu0 %v2109_v5 }
 0x357   : > { %2621 = vmatprep.mubr.bf16.mxu0 %v2115_v9  ;;  %4299 = vmatpush1.bf16.msra.mxu1 %v6053_v52  ;;  %v6109_v9 = vld [vmem:[%s8830_s5 + $0x404] ss:$8 sps:$4 sm:$0xff]  }
 0x358   : > { %4414 = vmatpush1.bf16.msra.mxu0 %v6056_v47  ;;  %4300 = vmatprep.subr.bf16.mxu1 %v6061_v38 }
 0x359   : > { %4415 = vmatprep.subr.bf16.mxu0 %v6064_v55 }
 0x35b   : > { %4301 = vmatpush1.bf16.msra.mxu1 %v6059_v50 }
 0x35c   : > { %4416 = vmatpush1.bf16.msra.mxu0 %v6062_v57  ;;  %4302 = vmatprep.subr.bf16.mxu1 %v6067_v58 }
 0x35d   : > { %4417 = vmatprep.subr.bf16.mxu0 %v6070_v60 }
 0x35e   : > { %2622 = vmatmul.mubr.bf16.gmra.mrb[44].mxu0 %v2114_v16 }
 0x35f   : > { %4303 = vmatpush1.bf16.msra.mxu1 %v6065_v59 }
 0x360   : > { %4418 = vmatpush1.bf16.msra.mxu0 %v6068_v61  ;;  %4304 = vmatprep.subr.bf16.mxu1 %v6073_v62  ;;  %v2482_v61 = vadd.f32 %v7495_v41, %v7727_v34 }
 0x361   : > { %4419 = vmatprep.subr.bf16.mxu0 %v6076_v45 }
 0x363   : > { %4305 = vmatpush1.bf16.msra.mxu1 %v6071_v46 }
 0x364   : > { %4420 = vmatpush1.bf16.msra.mxu0 %v6074_v0  ;;  %4306 = vmatprep.subr.bf16.mxu1 %v6079_v54  ;;  %v2801_v0 = vld [vmem:[#allocation4 + $0x8] sm:$0x3] }
 0x365   : > { %4502 = vmatprep.subr.bf16.mxu0 %v6082_v24  ;;  %v2969_v41 = vrot.slane %v2801_v0, 2 }
 0x367   : > { %4307 = vmatpush1.bf16.msra.mxu1 %v6077_v1 }
 0x368   : > { %5747 = vmatprep.subr.bf16.mxu1 %v6109_v9 }
 0x36d   : > { %v5446_v17 = vpop.f32.mrb[8].mxu1 }
 0x36e   : > { %v5447_v21 = vpop.f32.mrb[9].mxu1 }
 0x36f   : > { %v7600_v22 = vadd.f32 %v5447_v21, %v5446_v17  ;;  %v5449_v48 = vpop.f32.mrb[10].mxu1 }
 0x370   : > { %v5450_v26 = vpop.f32.mrb[11].mxu1 }
 0x371   : > { %v7602_v27 = vadd.f32 %v5450_v26, %v5449_v48 }
 0x375   : > { %v5452_v42 = vpop.f32.mrb[12].mxu1 }
 0x376   : > { %v5453_v37 = vpop.f32.mrb[13].mxu1 }
 0x377   : > { %v7628_v35 = vadd.f32 %v5453_v37, %v5452_v42  ;;  %v5455_v40 = vpop.f32.mrb[14].mxu1 }
 0x378   : > { %v5456_v44 = vpop.f32.mrb[15].mxu1 }
 0x379   : > { %v7630_v10 = vadd.f32 %v5456_v44, %v5455_v40 }
 0x3ad   : > { %v5458_v2 = vpop.f32.mrb[16].mxu1 }
 0x3ae   : > { %v5459_v3 = vpop.f32.mrb[17].mxu1 }
 0x3af   : > { %v7707_v33 = vadd.f32 %v5459_v3, %v5458_v2  ;;  %v5461_v23 = vpop.f32.mrb[18].mxu1  ;;  %v7743_v3 = vld [vmem:[#allocation4] sm:$0xff] }
 0x3b0   : > { %v5462_v5 = vpop.f32.mrb[19].mxu1 }
 0x3b1   : > { %v7709_v6 = vadd.f32 %v5462_v5, %v5461_v23  ;;  %v8837_v23 = vrot.slane %v7743_v3, 1  ;;  %v2889_v5 = vrot.slane %v2801_v0, 1 }
 0x3b5   : > { %v5464_v7 = vpop.f32.mrb[20].mxu1 }
 0x3b6   : > { %v5465_v8 = vpop.f32.mrb[21].mxu1 }
 0x3b7   : > { %v7714_v11 = vadd.f32 %v5465_v8, %v5464_v7  ;;  %v5467_v13 = vpop.f32.mrb[22].mxu1  ;;  %v7747_v7 = vrot.slane %v7743_v3, 2 }
 0x3b8   : > { %v5468_v15 = vpop.f32.mrb[23].mxu1 }
 0x3b9   : > { %v7716_v16 = vadd.f32 %v5468_v15, %v5467_v13  ;;  %v2487_v15 = vadd.f32 %v7600_v22, %v7727_v34  ;;  %v2970_v22 = vsel %vm668_vm3, %v7747_v7, %v2969_v41 }
 0x3ed   : > { %v5470_v17 = vpop.f32.mrb[24].mxu1 }
 0x3ee   : > { %v5471_v18 = vpop.f32.mrb[25].mxu1 }
 0x3ef   : > { %v7718_v63 = vadd.f32 %v5471_v18, %v5470_v17  ;;  %v5473_v21 = vpop.f32.mrb[26].mxu1 }
 0x3f0   : > { %v5474_v48 = vpop.f32.mrb[27].mxu1 }
 0x3f1   : > { %v7720_v26 = vadd.f32 %v5474_v48, %v5473_v21 }
 0x3f5   : > { %v5476_v28 = vpop.f32.mrb[28].mxu1 }
 0x3f6   : > { %v5477_v29 = vpop.f32.mrb[29].mxu1 }
 0x3f7   : > { %v7722_v30 = vadd.f32 %v5477_v29, %v5476_v28  ;;  %v5479_v32 = vpop.f32.mrb[30].mxu1 }
 0x3f8   : > { %v5480_v36 = vpop.f32.mrb[31].mxu1 }
 0x3f9   : > { %v7729_v42 = vadd.f32 %v5480_v36, %v5479_v32  ;;  %v5498_v43 = vpop.f32.mrb[16].mxu0 }
 0x3fa   : > { %v5499_v37 = vpop.f32.mrb[17].mxu0 }
 0x3fb   : > { %v5500_v40 = vadd.f32 %v5499_v37, %v5498_v43  ;;  %v5501_v44 = vpop.f32.mrb[18].mxu0 }
 0x3fc   : > { %v5502_v12 = vpop.f32.mrb[19].mxu0 }
 0x3fd   : > { %v5503_v20 = vadd.f32 %v5502_v12, %v5501_v44  ;;  %v5642_v25 = vpop.f32.mrb[32].mxu1  ;;  %v2568_v51 = vadd.f32 %v5500_v40, %v2471_v14  ;;  %v2890_v14 = vsel %vm554_vm2, %v8837_v23, %v2889_v5  ;;  %v2490_v12 = vadd.f32 %v7602_v27, %v7727_v34  ;;  %v2821_v23 = vld [vmem:[#allocation4 + $0xa8] sm:$0x3] }
 0x3fe   : > { %v2664_v31 = vpop.f32.mrb[33].mxu1 }
 0x3ff   : > { %v2665_v39 = vadd.f32 %v2664_v31, %v2568_v51  ;;  %v5643_v52 = vpop.f32.mrb[34].mxu1  ;;  %v2571_v47 = vadd.f32 %v5503_v20, %v2474_v19 }
 0x400   : > { %v2667_v49 = vpop.f32.mrb[35].mxu1 }
 0x401   : > { %v2727_v50 = vmax.f32 %v2665_v39, 0.0  ;;  %v2668_v38 = vadd.f32 %v2667_v49, %v2571_v47  ;;  %v5504_v55 = vpop.f32.mrb[20].mxu0 }
 0x402   : > { %v5505_v57 = vpop.f32.mrb[21].mxu0 }
 0x403   : > { %2784 = vst [vmem:[#allocation4 + $0x11] sm:$0xff] %v2727_v50  ;;  %v2728_v58 = vmax.f32 %v2668_v38, 0.0  ;;  %v5506_v59 = vadd.f32 %v5505_v57, %v5504_v55  ;;  %v5507_v60 = vpop.f32.mrb[22].mxu0 }
 0x404   : > { %v5508_v56 = vpop.f32.mrb[23].mxu0 }
 0x405   : > { %2785 = vst [vmem:[#allocation4 + $0x21] sm:$0xff] %v2728_v58  ;;  %v2576_v46 = vadd.f32 %v5506_v59, %v2479_v53  ;;  %v5509_v62 = vadd.f32 %v5508_v56, %v5507_v60  ;;  %v7739_v45 = vpop.f32.mrb[36].mxu1  ;;  %v6085_v53 = vld [vmem:[%s8830_s5 + $0x214] ss:$8 sps:$4 sm:$0xff]   ;;  %v7786_v58 = vld [vmem:[%s8830_s5 + $0x400] ss:$8 sps:$4 sm:$0xff]  }
 0x406   : > { %v2680_v54 = vpop.f32.mrb[37].mxu1 }
 0x407   : > { %v2673_v1 = vadd.f32 %v5642_v25, %v2576_v46  ;;  %v2579_v24 = vadd.f32 %v5509_v62, %v2482_v61  ;;  %v7741_v2 = vpop.f32.mrb[38].mxu1  ;;  %v7796_v46 = vld [vmem:[%s8830_s5 + $0x414] ss:$8 sps:$4 sm:$0xff]  }
 0x408   : > { %v2683_v4 = vpop.f32.mrb[39].mxu1 }
 0x409   : > { %v2729_v8 = vmax.f32 %v2673_v1, 0.0  ;;  %v2676_v9 = vadd.f32 %v5643_v52, %v2579_v24  ;;  %v5510_v13 = vpop.f32.mrb[24].mxu0  ;;  %v6080_v52 = vld [vmem:[%s8830_s5 + $0x200] ss:$8 sps:$4 sm:$0xff]   ;;  %v6083_v1 = vld [vmem:[%s8830_s5 + $0x210] ss:$8 sps:$4 sm:$0xff]   ;;  %v2495_v24 = vadd.f32 %v7628_v35, %v7727_v34 }
 0x40a   : > { %v5511_v17 = vpop.f32.mrb[25].mxu0  ;;  %v2802_v18 = vld [vmem:[#allocation4 + $0x10] sm:$0xff]  ;;  %v2803_v21 = vld [vmem:[#allocation4 + $0x18] sm:$0x3] }
 0x40b   : > { %2786 = vst [vmem:[#allocation4 + $0x31] sm:$0xff] %v2729_v8  ;;  %v2730_v48 = vmax.f32 %v2676_v9, 0.0  ;;  %v5512_v28 = vadd.f32 %v5511_v17, %v5510_v13  ;;  %v5513_v29 = vpop.f32.mrb[26].mxu0  ;;  %v2971_v32 = vrot.slane %v2802_v18, 2  ;;  %v2891_v36 = vrot.slane %v2802_v18, 1 }
 0x40c   : > { %v5514_v43 = vpop.f32.mrb[27].mxu0  ;;  %v7751_v37 = vld [vmem:[#allocation4 + $0x20] sm:$0xff]  ;;  %v2892_v40 = vrot.slane %v2803_v21, 1  ;;  %v2972_v44 = vrot.slane %v2803_v21, 2  ;;  %v7763_v31 = vld [vmem:[#allocation4 + $0x28] sm:$0x3]  ;;  %v3328_v60 = vpack.c.bf16 %v2802_v18, %v7743_v3 }
 0x40d   : > { %2787 = vst [vmem:[#allocation4 + $0x41] sm:$0xff] %v2730_v48  ;;  %v2584_v19 = vadd.f32 %v5512_v28, %v2487_v15  ;;  %v5515_v20 = vadd.f32 %v5514_v43, %v5513_v29  ;;  %v7760_v25 = vpop.f32.mrb[40].mxu1  ;;  %v3331_v51 = vpack.c.bf16 %v7751_v37, %v2802_v18  ;;  %v2894_v56 = vrot.slane %v7751_v37, 1  ;;  %v6088_v18 = vld [vmem:[%s8830_s5 + $0x224] ss:$8 sps:$4 sm:$0xff]  }
 0x40e   : > { %v7765_v39 = vpop.f32.mrb[41].mxu1  ;;  %v7771_v47 = vsel %vm554_vm2, %v2891_v36, %v2892_v40  ;;  %v7774_v27 = vsel %vm668_vm3, %v2971_v32, %v2972_v44  ;;  %v2895_v61 = vrot.slane %v7763_v31, 1  ;;  %v2974_v9 = vrot.slane %v7751_v37, 2 }
 0x40f   : > { %v2681_v49 = vadd.f32 %v2680_v54, %v2584_v19  ;;  %v2587_v50 = vadd.f32 %v5515_v20, %v2490_v12  ;;  %v7776_v38 = vpop.f32.mrb[42].mxu1  ;;  %4421 = vmatprep.mubr.bf16.mxu0 %v3331_v51  ;;  %v3329_v55 = vpack.c.bf16 %v7771_v47, %v2890_v14  ;;  %v3330_v57 = vpack.c.bf16 %v7774_v27, %v2970_v22  ;;  %v7819_v14 = vld [vmem:[%s8830_s5 + $0x410] ss:$8 sps:$4 sm:$0xff]   ;;  %v7833_v20 = vld [vmem:[%s8830_s5 + $0x424] ss:$8 sps:$4 sm:$0xff]  }
 0x410   : > { %v7788_v59 = vpop.f32.mrb[43].mxu1  ;;  %v2975_v13 = vrot.slane %v7763_v31, 2  ;;  %v2498_v48 = vadd.f32 %v7630_v10, %v7727_v34  ;;  %v7814_v32 = vsel %vm554_vm2, %v2894_v56, %v2895_v61  ;;  %v6086_v31 = vld [vmem:[%s8830_s5 + $0x220] ss:$8 sps:$4 sm:$0xff]   ;;  %v6091_v56 = vld [vmem:[%s8830_s5 + $0x234] ss:$8 sps:$4 sm:$0xff]  }
 0x411   : > { %v2731_v62 = vmax.f32 %v2681_v49, 0.0  ;;  %v2684_v0 = vadd.f32 %v2683_v4, %v2587_v50  ;;  %4308 = vmatprep.mubr.bf16.mxu1 %v3329_v55  ;;  %4422 = vmatmul.mubr.bf16.vlgmr.msra.gmra.mrb[48].mxu0 %v3330_v57  ;;  %v5516_v54 = vpop.f32.mrb[28].mxu0 }
 0x412   : > { %4503 = vmatpush1.bf16.msra.mxu0 %v6080_v52  ;;  %4309 = vmatmul.mubr.bf16.vlgmr.msra.gmra.mrb[48].mxu1 %v3328_v60  ;;  %v5517_v5 = vpop.f32.mrb[29].mxu0  ;;  %v2806_v41 = vld [vmem:[#allocation4 + $0x30] sm:$0xff]  ;;  %v2807_v8 = vld [vmem:[#allocation4 + $0x38] sm:$0x3]  ;;  %v7845_v49 = vsel %vm668_vm3, %v2974_v9, %v2975_v13 }
 0x413   : > { %2788 = vst [vmem:[#allocation4 + $0x51] sm:$0xff] %v2731_v62  ;;  %v2732_v4 = vmax.f32 %v2684_v0, 0.0  ;;  %v5518_v15 = vadd.f32 %v5517_v5, %v5516_v54  ;;  %v5519_v17 = vpop.f32.mrb[30].mxu0  ;;  %4504 = vmatprep.subr.bf16.mxu0 %v6085_v53  ;;  %v2897_v21 = vrot.slane %v2806_v41, 1  ;;  %v2898_v35 = vrot.slane %v2807_v8, 1  ;;  %5755 = vmatpush1.bf16.msra.mxu1 %v7786_v58 }
 0x414   : > { %v5520_v28 = vpop.f32.mrb[31].mxu0  ;;  %v7811_v29 = vld [vmem:[#allocation4 + $0x40] sm:$0xff]  ;;  %v2977_v36 = vrot.slane %v2806_v41, 2  ;;  %v2978_v43 = vrot.slane %v2807_v8, 2  ;;  %5748 = vmatprep.subr.bf16.mxu1 %v7796_v46  ;;  %v7828_v19 = vld [vmem:[#allocation4 + $0x48] sm:$0x3]  ;;  %v7864_v62 = vpack.c.bf16 %v2806_v41, %v7751_v37  ;;  %v2503_v8 = vadd.f32 %v7707_v33, %v7727_v34 }
 0x415   : > { %2789 = vst [vmem:[#allocation4 + $0x61] sm:$0xff] %v2732_v4  ;;  %v2592_v40 = vadd.f32 %v5518_v15, %v2495_v24  ;;  %v5521_v44 = vadd.f32 %v5520_v28, %v5519_v17  ;;  %v7822_v22 = vpop.f32.mrb[44].mxu1  ;;  %v3340_v10 = vpack.c.bf16 %v7811_v29, %v2806_v41  ;;  %v7826_v12 = vsel %vm554_vm2, %v2897_v21, %v2898_v35  ;;  %v7872_v54 = vld [vmem:[%s8830_s5 + $0x420] ss:$8 sps:$4 sm:$0xff]   ;;  %v6089_v37 = vld [vmem:[%s8830_s5 + $0x230] ss:$8 sps:$4 sm:$0xff]  }
 0x416   : > { %4505 = vmatpush1.bf16.msra.mxu0 %v6083_v1  ;;  %v7835_v51 = vpop.f32.mrb[45].mxu1  ;;  %v7842_v52 = vpack.c.bf16 %v7826_v12, %v7814_v32  ;;  %v7848_v50 = vsel %vm668_vm3, %v2977_v36, %v2978_v43  ;;  %v2901_v0 = vrot.slane %v7828_v19, 1  ;;  %v7883_v41 = vld [vmem:[%s8830_s5 + $0x434] ss:$8 sps:$4 sm:$0xff]   ;;  %v2980_v4 = vrot.slane %v7811_v29, 2 }
 0x417   : > { %v2689_v55 = vadd.f32 %v7739_v45, %v2592_v40  ;;  %v2595_v57 = vadd.f32 %v5521_v44, %v2498_v48  ;;  %v7851_v53 = vpop.f32.mrb[46].mxu1  ;;  %4431 = vmatprep.mubr.bf16.mxu0 %v3340_v10  ;;  %4506 = vmatprep.subr.bf16.mxu0 %v6088_v18  ;;  %v7855_v60 = vpack.c.bf16 %v7848_v50, %v7845_v49  ;;  %v2900_v45 = vrot.slane %v7811_v29, 1  ;;  %v6094_v35 = vld [vmem:[%s8830_s5 + $0x244] ss:$8 sps:$4 sm:$0xff]  }
 0x418   : > { %v7860_v61 = vpop.f32.mrb[47].mxu1  ;;  %4318 = vmatprep.mubr.bf16.mxu1 %v7842_v52  ;;  %5756 = vmatpush1.bf16.msra.mxu1 %v7819_v14  ;;  %8853 = vst [vmem:[#allocation9_spill] sm:$0xff] %v7883_v41  ;;  %v2981_v15 = vrot.slane %v7828_v19, 2  ;;  %v2506_v28 = vadd.f32 %v7709_v6, %v7727_v34  ;;  %v7904_v19 = vld [vmem:[%s8830_s5 + $0x430] ss:$8 sps:$4 sm:$0xff]  }
 0x419   : > { %8852 = vst [vmem:[#allocation8_spill] sm:$0xff] %v7855_v60  ;;  %v2733_v1 = vmax.f32 %v2689_v55, 0.0  ;;  %v2692_v24 = vadd.f32 %v7741_v2, %v2595_v57  ;;  %4432 = vmatmul.mubr.bf16.gmra.mrb[52].mxu0 %v7855_v60  ;;  %v5522_v5 = vpop.f32.mrb[32].mxu0  ;;  %5749 = vmatprep.subr.bf16.mxu1 %v7833_v20  ;;  %v7898_v40 = vsel %vm554_vm2, %v2900_v45, %v2901_v0  ;;  %8854 = vst [vmem:[#allocation10_spill] sm:$0xff] %v7904_v19  ;;  %v7916_v45 = vld [vmem:[%s8830_s5 + $0x444] ss:$8 sps:$4 sm:$0xff]  }
 0x41a   : > { %4507 = vmatpush1.bf16.msra.mxu0 %v6086_v31  ;;  %4319 = vmatmul.mubr.bf16.gmra.mrb[52].mxu1 %v7864_v62  ;;  %v5523_v2 = vpop.f32.mrb[33].mxu0  ;;  %v2810_v9 = vld [vmem:[#allocation4 + $0x50] sm:$0xff]  ;;  %v2811_v13 = vld [vmem:[#allocation4 + $0x58] sm:$0x3]  ;;  %8855 = vst [vmem:[#allocation11_spill] sm:$0xff] %v7916_v45 }
 0x41b   : > { %2790 = vst [vmem:[#allocation4 + $0x71] sm:$0xff] %v2733_v1  ;;  %v2734_v17 = vmax.f32 %v2692_v24, 0.0  ;;  %v5524_v18 = vadd.f32 %v5523_v2, %v5522_v5  ;;  %v5525_v21 = vpop.f32.mrb[34].mxu0  ;;  %4508 = vmatprep.subr.bf16.mxu0 %v6091_v56  ;;  %v2903_v33 = vrot.slane %v2810_v9, 1  ;;  %v2904_v48 = vrot.slane %v2811_v13, 1 }
 0x41c   : > { %v5526_v36 = vpop.f32.mrb[35].mxu0  ;;  %v7895_v43 = vld [vmem:[#allocation4 + $0x60] sm:$0xff]  ;;  %v2983_v44 = vrot.slane %v2810_v9, 2  ;;  %v2984_v10 = vrot.slane %v2811_v13, 2  ;;  %5757 = vmatpush1.bf16.msra.mxu1 %v7872_v54  ;;  %v7910_v56 = vld [vmem:[#allocation4 + $0x68] sm:$0x3]  ;;  %v7926_v24 = vsel %vm668_vm3, %v2980_v4, %v2981_v15  ;;  %v7941_v4 = vpack.c.bf16 %v2810_v9, %v7811_v29 }
 0x41d   : > { %2791 = vst [vmem:[#allocation4 + $0x81] sm:$0xff] %v2734_v17  ;;  %v2600_v31 = vadd.f32 %v5524_v18, %v2503_v8  ;;  %v5527_v55 = vadd.f32 %v5526_v36, %v5525_v21  ;;  %v3349_v6 = vpack.c.bf16 %v7895_v43, %v2810_v9  ;;  %v7908_v57 = vsel %vm554_vm2, %v2903_v33, %v2904_v48  ;;  %v6092_v0 = vld [vmem:[%s8830_s5 + $0x240] ss:$8 sps:$4 sm:$0xff]   ;;  %v6097_v13 = vld [vmem:[%s8830_s5 + $0x254] ss:$8 sps:$4 sm:$0xff]  }
 0x41e   : > { %5750 = vmatprep.subr.bf16.mxu1 %v7883_v41  ;;  %4509 = vmatpush1.bf16.msra.mxu0 %v6089_v37  ;;  %v7923_v1 = vpack.c.bf16 %v7908_v57, %v7898_v40  ;;  %v7929_v5 = vsel %vm668_vm3, %v2983_v44, %v2984_v10  ;;  %v2906_v15 = vrot.slane %v7895_v43, 1  ;;  %v2907_v17 = vrot.slane %v7910_v56, 1  ;;  %v7952_v18 = vld [vmem:[%s8830_s5 + $0x440] ss:$8 sps:$4 sm:$0xff]   ;;  %v6100_v9 = vld [vmem:[%s8830_s5 + $0x264] ss:$8 sps:$4 sm:$0xff]  }
 0x41f   : > { %v2697_v8 = vadd.f32 %v7765_v39, %v2600_v31  ;;  %v2603_v2 = vadd.f32 %v5527_v55, %v2506_v28  ;;  %4441 = vmatprep.mubr.bf16.mxu0 %v3349_v6  ;;  %4510 = vmatprep.subr.bf16.mxu0 %v6094_v35  ;;  %v7934_v37 = vpack.c.bf16 %v7929_v5, %v7926_v24  ;;  %v6095_v39 = vld [vmem:[%s8830_s5 + $0x250] ss:$8 sps:$4 sm:$0xff]   ;;  %v7963_v33 = vld [vmem:[%s8830_s5 + $0x454] ss:$8 sps:$4 sm:$0xff]   ;;  %v2986_v44 = vrot.slane %v7895_v43, 2 }
 0x420   : > { %4328 = vmatprep.mubr.bf16.mxu1 %v7923_v1  ;;  %5758 = vmatpush1.bf16.msra.mxu1 %v7904_v19  ;;  %8856 = vst [vmem:[#allocation12_spill] sm:$0xff] %v7963_v33  ;;  %v2511_v48 = vadd.f32 %v7714_v11, %v7727_v34  ;;  %v2987_v10 = vrot.slane %v7910_v56, 2  ;;  %v2514_v11 = vadd.f32 %v7716_v16, %v7727_v34  ;;  %v7981_v56 = vld [vmem:[%s8830_s5 + $0x450] ss:$8 sps:$4 sm:$0xff]  }
 0x421   : > { %v2735_v21 = vmax.f32 %v2697_v8, 0.0  ;;  %v2700_v35 = vadd.f32 %v7788_v59, %v2603_v2  ;;  %4442 = vmatmul.mubr.bf16.gmra.mrb[56].mxu0 %v7934_v37  ;;  %v5528_v29 = vpop.f32.mrb[36].mxu0  ;;  %5751 = vmatprep.subr.bf16.mxu1 %v7916_v45  ;;  %v7975_v45 = vsel %vm554_vm2, %v2906_v15, %v2907_v17  ;;  %8857 = vst [vmem:[#allocation13_spill] sm:$0xff] %v7981_v56  ;;  %v7991_v15 = vld [vmem:[%s8830_s5 + $0x464] ss:$8 sps:$4 sm:$0xff]  }
 0x422   : > { %4511 = vmatpush1.bf16.msra.mxu0 %v6092_v0  ;;  %4329 = vmatmul.mubr.bf16.gmra.mrb[56].mxu1 %v7941_v4  ;;  %v5529_v59 = vpop.f32.mrb[37].mxu0  ;;  %v2814_v28 = vld [vmem:[#allocation4 + $0x70] sm:$0xff]  ;;  %v2815_v36 = vld [vmem:[#allocation4 + $0x78] sm:$0x3]  ;;  %8858 = vst [vmem:[#allocation14_spill] sm:$0xff] %v7991_v15 }
 0x423   : > { %2792 = vst [vmem:[#allocation4 + $0xb1] sm:$0xff] %v2735_v21  ;;  %v2736_v31 = vmax.f32 %v2700_v35, 0.0  ;;  %v5530_v55 = vadd.f32 %v5529_v59, %v5528_v29  ;;  %v5531_v6 = vpop.f32.mrb[38].mxu0  ;;  %4512 = vmatprep.subr.bf16.mxu0 %v6097_v13  ;;  %v2909_v8 = vrot.slane %v2814_v28, 1  ;;  %v2910_v2 = vrot.slane %v2815_v36, 1 }
 0x424   : > { %v5532_v0 = vpop.f32.mrb[39].mxu0  ;;  %v7972_v60 = vld [vmem:[#allocation4 + $0x80] sm:$0xff]  ;;  %v2989_v19 = vrot.slane %v2814_v28, 2  ;;  %v2990_v41 = vrot.slane %v2815_v36, 2  ;;  %5759 = vmatpush1.bf16.msra.mxu1 %v7952_v18  ;;  %v2913_v36 = vrot.slane %v2821_v23, 1 }
 0x425   : > { %2793 = vst [vmem:[#allocation4 + $0xc1] sm:$0xff] %v2736_v31  ;;  %v2608_v13 = vadd.f32 %v5530_v55, %v2511_v48  ;;  %v5533_v21 = vadd.f32 %v5532_v0, %v5531_v6  ;;  %v3358_v16 = vpack.c.bf16 %v7972_v60, %v2814_v28  ;;  %v7985_v35 = vsel %vm554_vm2, %v2909_v8, %v2910_v2  ;;  %v6098_v17 = vld [vmem:[%s8830_s5 + $0x260] ss:$8 sps:$4 sm:$0xff]   ;;  %v6103_v6 = vld [vmem:[%s8830_s5 + $0x274] ss:$8 sps:$4 sm:$0xff]  }
 0x426   : > { %5752 = vmatprep.subr.bf16.mxu1 %v7963_v33  ;;  %4513 = vmatpush1.bf16.msra.mxu0 %v6095_v39  ;;  %v7998_v29 = vpack.c.bf16 %v7985_v35, %v7975_v45  ;;  %v8001_v48 = vsel %vm668_vm3, %v2986_v44, %v2987_v10  ;;  %v8004_v59 = vsel %vm668_vm3, %v2989_v19, %v2990_v41  ;;  %v2993_v41 = vrot.slane %v2821_v23, 2 }
 0x427   : > { %v2705_v31 = vadd.f32 %v7760_v25, %v2608_v13  ;;  %v2611_v55 = vadd.f32 %v5533_v21, %v2514_v11  ;;  %4451 = vmatprep.mubr.bf16.mxu0 %v3358_v16  ;;  %4514 = vmatprep.subr.bf16.mxu0 %v6100_v9  ;;  %v8009_v39 = vpack.c.bf16 %v8004_v59, %v8001_v48  ;;  %v8022_v25 = vld [vmem:[%s8830_s5 + $0x460] ss:$8 sps:$4 sm:$0xff]   ;;  %v8860_v11 = vrot.slane %v7743_v3, 1 }
 0x428   : > { %4338 = vmatprep.mubr.bf16.mxu1 %v7998_v29  ;;  %v8016_v44 = vpack.c.bf16 %v2814_v28, %v7895_v43  ;;  %5760 = vmatpush1.bf16.msra.mxu1 %v7981_v56  ;;  %8859 = vst [vmem:[#allocation15_spill] sm:$0xff] %v8022_v25  ;;  %v8030_v43 = vld [vmem:[%s8830_s5 + $0x474] ss:$8 sps:$4 sm:$0xff]   ;;  %v2519_v23 = vadd.f32 %v7718_v63, %v7727_v34  ;;  %v6106_v63 = vld [vmem:[%s8830_s5 + $0x284] ss:$8 sps:$4 sm:$0xff]  }
 0x429   : > { %v2737_v19 = vmax.f32 %v2705_v31, 0.0  ;;  %v2708_v9 = vadd.f32 %v7776_v38, %v2611_v55  ;;  %4452 = vmatmul.mubr.bf16.gmra.mrb[60].mxu0 %v8009_v39  ;;  %v5534_v10 = vpop.f32.mrb[40].mxu0  ;;  %5753 = vmatprep.subr.bf16.mxu1 %v7991_v15  ;;  %v6101_v38 = vld [vmem:[%s8830_s5 + $0x270] ss:$8 sps:$4 sm:$0xff]   ;;  %v2914_v0 = vsel %vm554_vm2, %v8860_v11, %v2913_v36  ;;  %v2522_v55 = vadd.f32 %v7720_v26, %v7727_v34 }
 0x42a   : > { %4515 = vmatpush1.bf16.msra.mxu0 %v6098_v17  ;;  %4339 = vmatmul.mubr.bf16.gmra.mrb[60].mxu1 %v8016_v44  ;;  %v5535_v28 = vpop.f32.mrb[41].mxu0  ;;  %v2822_v8 = vld [vmem:[#allocation4 + $0xb0] sm:$0xff]  ;;  %v2823_v2 = vld [vmem:[#allocation4 + $0xb8] sm:$0x3]  ;;  %v2994_v36 = vsel %vm668_vm3, %v7747_v7, %v2993_v41  ;;  %v6104_v41 = vld [vmem:[%s8830_s5 + $0x280] ss:$8 sps:$4 sm:$0xff]  }
 0x42b   : > { %2794 = vst [vmem:[#allocation4 + $0xd1] sm:$0xff] %v2737_v19  ;;  %v2738_v13 = vmax.f32 %v2708_v9, 0.0  ;;  %v5536_v21 = vadd.f32 %v5535_v28, %v5534_v10  ;;  %v5537_v16 = vpop.f32.mrb[42].mxu0  ;;  %4516 = vmatprep.subr.bf16.mxu0 %v6103_v6  ;;  %v2915_v17 = vrot.slane %v2822_v8, 1  ;;  %v2916_v31 = vrot.slane %v2823_v2, 1 }
 0x42c   : > { %v5538_v15 = vpop.f32.mrb[43].mxu0  ;;  %v8046_v56 = vld [vmem:[#allocation4 + $0xc0] sm:$0xff]  ;;  %v2995_v19 = vrot.slane %v2822_v8, 2  ;;  %v2996_v9 = vrot.slane %v2823_v2, 2  ;;  %5761 = vmatpush1.bf16.msra.mxu1 %v8022_v25  ;;  %v8054_v6 = vld [vmem:[%s8830_s5 + $0x470] ss:$8 sps:$4 sm:$0xff]  }
 0x42d   : > { %2795 = vst [vmem:[#allocation4 + $0xe1] sm:$0xff] %v2738_v13  ;;  %v2616_v10 = vadd.f32 %v5536_v21, %v2519_v23  ;;  %v5539_v28 = vadd.f32 %v5538_v15, %v5537_v16  ;;  %v3367_v26 = vpack.c.bf16 %v8046_v56, %v2822_v8  ;;  %v8058_v11 = vsel %vm554_vm2, %v2915_v17, %v2916_v31  ;;  %v2825_v33 = vld [vmem:[#allocation4 + $0xc8] sm:$0x3] }
 0x42e   : > { %5754 = vmatprep.subr.bf16.mxu1 %v8030_v43  ;;  %4517 = vmatpush1.bf16.msra.mxu0 %v6101_v38  ;;  %v3365_v2 = vpack.c.bf16 %v8058_v11, %v2914_v0  ;;  %v8066_v25 = vsel %vm668_vm3, %v2995_v19, %v2996_v9  ;;  %v6112_v38 = vld [vmem:[%s8830_s5 + $0x294] ss:$8 sps:$4 sm:$0xff]   ;;  %v3364_v21 = vpack.c.bf16 %v2822_v8, %v7743_v3  ;;  %v2918_v16 = vrot.slane %v8046_v56, 1 }
 0x42f   : > { %v2713_v15 = vadd.f32 %v7835_v51, %v2616_v10  ;;  %v2619_v23 = vadd.f32 %v5539_v28, %v2522_v55  ;;  %4461 = vmatprep.mubr.bf16.mxu0 %v3367_v26  ;;  %4518 = vmatprep.subr.bf16.mxu0 %v6106_v63  ;;  %v3366_v13 = vpack.c.bf16 %v8066_v25, %v2994_v36  ;;  %v2919_v0 = vrot.slane %v2825_v33, 1  ;;  %v6110_v63 = vld [vmem:[%s8830_s5 + $0x290] ss:$8 sps:$4 sm:$0xff]   ;;  %v6118_v26 = vld [vmem:[%s8830_s5 + $0x2a4] ss:$8 sps:$4 sm:$0xff]  }
 0x430   : > { %4348 = vmatprep.mubr.bf16.mxu1 %v3365_v2  ;;  %5762 = vmatpush1.bf16.msra.mxu1 %v8054_v6  ;;  %v2527_v55 = vadd.f32 %v7722_v30, %v7727_v34  ;;  %v2998_v19 = vrot.slane %v8046_v56, 2  ;;  %v2999_v9 = vrot.slane %v2825_v33, 2  ;;  %v2530_v30 = vadd.f32 %v7729_v42, %v7727_v34 }
 0x431   : > { %v2739_v17 = vmax.f32 %v2713_v15, 0.0  ;;  %v2716_v51 = vadd.f32 %v7860_v61, %v2619_v23  ;;  %4462 = vmatmul.mubr.bf16.gmra.mrb[64].mxu0 %v3366_v13  ;;  %v5540_v31 = vpop.f32.mrb[44].mxu0  ;;  %v8089_v13 = vsel %vm554_vm2, %v2918_v16, %v2919_v0 }
 0x432   : > { %4519 = vmatpush1.bf16.msra.mxu0 %v6104_v41  ;;  %4349 = vmatmul.mubr.bf16.gmra.mrb[64].mxu1 %v3364_v21  ;;  %v5541_v3 = vpop.f32.mrb[45].mxu0  ;;  %v2826_v8 = vld [vmem:[#allocation4 + $0xd0] sm:$0xff]  ;;  %v2827_v36 = vld [vmem:[#allocation4 + $0xd8] sm:$0x3]  ;;  %v8102_v42 = vsel %vm668_vm3, %v2998_v19, %v2999_v9 }
 0x433   : > { %2796 = vst [vmem:[#allocation4 + $0xf1] sm:$0xff] %v2739_v17  ;;  %v2740_v10 = vmax.f32 %v2716_v51, 0.0  ;;  %v5542_v61 = vadd.f32 %v5541_v3, %v5540_v31  ;;  %v5543_v28 = vpop.f32.mrb[46].mxu0  ;;  %4520 = vmatprep.subr.bf16.mxu0 %v6112_v38  ;;  %v2921_v2 = vrot.slane %v2826_v8, 1  ;;  %v2922_v15 = vrot.slane %v2827_v36, 1 }
 0x434   : > { %v5544_v41 = vpop.f32.mrb[47].mxu0  ;;  %v2828_v23 = vld [vmem:[#allocation4 + $0xe0] sm:$0xff]  ;;  %v3001_v33 = vrot.slane %v2826_v8, 2  ;;  %v3002_v21 = vrot.slane %v2827_v36, 2  ;;  %v2829_v0 = vld [vmem:[#allocation4 + $0xe8] sm:$0x3]  ;;  %v8117_v19 = vpack.c.bf16 %v2826_v8, %v8046_v56 }
 0x435   : > { %2797 = vst [vmem:[#allocation4 + $0x101] sm:$0xff] %v2740_v10  ;;  %v2624_v17 = vadd.f32 %v5542_v61, %v2527_v55  ;;  %v5545_v51 = vadd.f32 %v5544_v41, %v5543_v28  ;;  %v3376_v38 = vpack.c.bf16 %v2828_v23, %v2826_v8  ;;  %v8092_v31 = vsel %vm554_vm2, %v2921_v2, %v2922_v15  ;;  %v6116_v3 = vld [vmem:[%s8830_s5 + $0x2a0] ss:$8 sps:$4 sm:$0xff]   ;;  %v6124_v10 = vld [vmem:[%s8830_s5 + $0x2b4] ss:$8 sps:$4 sm:$0xff]  }
 0x436   : > { %4521 = vmatpush1.bf16.msra.mxu0 %v6110_v63  ;;  %v8099_v34 = vpack.c.bf16 %v8092_v31, %v8089_v13  ;;  %v8105_v16 = vsel %vm668_vm3, %v3001_v33, %v3002_v21  ;;  %8861 = vst [vmem:[#allocation16_spill] sm:$0xff] %v8117_v19  ;;  %v2924_v28 = vrot.slane %v2828_v23, 1  ;;  %v3005_v41 = vrot.slane %v2829_v0, 2 }
 0x437   : > { %v2721_v55 = vadd.f32 %v7822_v22, %v2624_v17  ;;  %v2627_v36 = vadd.f32 %v5545_v51, %v2530_v30  ;;  %4471 = vmatprep.mubr.bf16.mxu0 %v3376_v38  ;;  %4522 = vmatprep.subr.bf16.mxu0 %v6118_v26  ;;  %v8110_v63 = vpack.c.bf16 %v8105_v16, %v8102_v42  ;;  %v6122_v22 = vld [vmem:[%s8830_s5 + $0x2b0] ss:$8 sps:$4 sm:$0xff]   ;;  %v2925_v26 = vrot.slane %v2829_v0, 1 }
 0x438   : > { %4358 = vmatprep.mubr.bf16.mxu1 %v8099_v34  ;;  %v3004_v30 = vrot.slane %v2828_v23, 2 }
 0x439   : > { %v2741_v9 = vmax.f32 %v2721_v55, 0.0  ;;  %v2724_v61 = vadd.f32 %v7851_v53, %v2627_v36  ;;  %4472 = vmatmul.mubr.bf16.gmra.mrb[68].mxu0 %v8110_v63  ;;  %v6130_v53 = vld [vmem:[%s8830_s5 + $0x2c4] ss:$8 sps:$4 sm:$0xff]   ;;  %v6128_v36 = vld [vmem:[%s8830_s5 + $0x2c0] ss:$8 sps:$4 sm:$0xff]  }
 0x43a   : > { %4523 = vmatpush1.bf16.msra.mxu0 %v6116_v3  ;;  %4359 = vmatmul.mubr.bf16.gmra.mrb[68].mxu1 %v8117_v19  ;;  %v2830_v2 = vld [vmem:[#allocation4 + $0xf0] sm:$0xff]  ;;  %v2831_v15 = vld [vmem:[#allocation4 + $0xf8] sm:$0x3]  ;;  %v8129_v3 = vsel %vm554_vm2, %v2924_v28, %v2925_v26 }
 0x43b   : > { %2798 = vst [vmem:[#allocation4 + $0x111] sm:$0xff] %v2741_v9  ;;  %v2742_v56 = vmax.f32 %v2724_v61, 0.0  ;;  %4524 = vmatprep.subr.bf16.mxu0 %v6124_v10  ;;  %v2927_v8 = vrot.slane %v2830_v2, 1  ;;  %v2928_v33 = vrot.slane %v2831_v15, 1  ;;  %v3007_v21 = vrot.slane %v2830_v2, 2 }
 0x43c   : > { %v2832_v17 = vld [vmem:[#allocation4 + $0x100] sm:$0xff]  ;;  %v3008_v51 = vrot.slane %v2831_v15, 2  ;;  %v2833_v0 = vld [vmem:[#allocation4 + $0x108] sm:$0x3]  ;;  %v8142_v9 = vsel %vm668_vm3, %v3004_v30, %v3005_v41  ;;  %v8155_v26 = vpack.c.bf16 %v2830_v2, %v2828_v23 }
 0x43d   : > { %2799 = vst [vmem:[#allocation4 + $0x121] sm:$0xff] %v2742_v56  ;;  %v3385_v38 = vpack.c.bf16 %v2832_v17, %v2830_v2  ;;  %v8132_v55 = vsel %vm554_vm2, %v2927_v8, %v2928_v33  ;;  %v2930_v15 = vrot.slane %v2832_v17, 1  ;;  %v2931_v30 = vrot.slane %v2833_v0, 1  ;;  %v6142_v23 = vld [vmem:[%s8830_s5 + $0x2e4] ss:$8 sps:$4 sm:$0xff]  }
 0x43e   : > { %4525 = vmatpush1.bf16.msra.mxu0 %v6122_v22  ;;  %v8139_v10 = vpack.c.bf16 %v8132_v55, %v8129_v3  ;;  %v8145_v61 = vsel %vm668_vm3, %v3007_v21, %v3008_v51  ;;  %v6136_v22 = vld [vmem:[%s8830_s5 + $0x2d4] ss:$8 sps:$4 sm:$0xff]   ;;  %8863 = vst [vmem:[#allocation18_spill] sm:$0xff] %v8155_v26  ;;  %v3010_v41 = vrot.slane %v2832_v17, 2  ;;  %v3011_v56 = vrot.slane %v2833_v0, 2 }
 0x43f   : > { %4481 = vmatprep.mubr.bf16.mxu0 %v3385_v38  ;;  %4526 = vmatprep.subr.bf16.mxu0 %v6130_v53  ;;  %v8149_v28 = vpack.c.bf16 %v8145_v61, %v8142_v9  ;;  %v6134_v53 = vld [vmem:[%s8830_s5 + $0x2d0] ss:$8 sps:$4 sm:$0xff]   ;;  %v8168_v0 = vsel %vm554_vm2, %v2930_v15, %v2931_v30 }
 0x440   : > { %8862 = vst [vmem:[#allocation17_spill] sm:$0xff] %v8139_v10  ;;  %4368 = vmatprep.mubr.bf16.mxu1 %v8139_v10 }
 0x441   : > { %4482 = vmatmul.mubr.bf16.gmra.mrb[72].mxu0 %v8149_v28 }
 0x442   : > { %4527 = vmatpush1.bf16.msra.mxu0 %v6128_v36  ;;  %4369 = vmatmul.mubr.bf16.gmra.mrb[72].mxu1 %v8155_v26  ;;  %v2834_v8 = vld [vmem:[#allocation4 + $0x110] sm:$0xff]  ;;  %v2835_v33 = vld [vmem:[#allocation4 + $0x118] sm:$0x3] }
 0x443   : > { %4528 = vmatprep.subr.bf16.mxu0 %v6136_v22  ;;  %v2933_v2 = vrot.slane %v2834_v8, 1  ;;  %v2934_v21 = vrot.slane %v2835_v33, 1  ;;  %v3013_v51 = vrot.slane %v2834_v8, 2  ;;  %v3014_v38 = vrot.slane %v2835_v33, 2  ;;  %v6140_v33 = vld [vmem:[%s8830_s5 + $0x2e0] ss:$8 sps:$4 sm:$0xff]  }
 0x444   : > { %v8165_v10 = vld [vmem:[#allocation4 + $0x120] sm:$0xff]  ;;  %v8175_v22 = vsel %vm668_vm3, %v3010_v41, %v3011_v56  ;;  %v6148_v41 = vld [vmem:[%s8830_s5 + $0x2f4] ss:$8 sps:$4 sm:$0xff]   ;;  %v8195_v56 = vpack.c.bf16 %v2834_v8, %v2832_v17  ;;  %v6224_v17 = vmov 0  }
 0x445   : > { %v3394_v36 = vpack.c.bf16 %v8165_v10, %v2834_v8  ;;  %v8172_v26 = vsel %vm554_vm2, %v2933_v2, %v2934_v21  ;;  %v8178_v19 = vsel %vm668_vm3, %v3013_v51, %v3014_v38  ;;  %v6154_v2 = vld [vmem:[%s8830_s5 + $0x304] ss:$8 sps:$4 sm:$0xff]   ;;  %v6157_v8 = vld [vmem:[%s8830_s5 + $0x314] ss:$8 sps:$4 sm:$0xff]   ;;  %v3342_v21 = vpack.c.bf16 %v7926_v24, %v7848_v50  ;;  %v6155_v51 = vld [vmem:[%s8830_s5 + $0x310] ss:$8 sps:$4 sm:$0xff]  }
 0x446   : > { %4529 = vmatpush1.bf16.msra.mxu0 %v6134_v53  ;;  %v8185_v15 = vpack.c.bf16 %v8172_v26, %v8168_v0  ;;  %v8189_v30 = vpack.c.bf16 %v8178_v19, %v8175_v22  ;;  %v3333_v53 = vpack.c.bf16 %v7845_v49, %v7774_v27  ;;  %v6152_v27 = vld [vmem:[%s8830_s5 + $0x300] ss:$8 sps:$4 sm:$0xff]   ;;  %v3332_v49 = vpack.c.bf16 %v7814_v32, %v7771_v47  ;;  %v6160_v47 = vld [vmem:[%s8830_s5 + $0x324] ss:$8 sps:$4 sm:$0xff]   ;;  %v8234_v38 = vld [vmem:[#allocation4 + $0x98] sm:$0x3] }
 0x447   : > { %4491 = vmatprep.mubr.bf16.mxu0 %v3394_v36  ;;  %4530 = vmatprep.subr.bf16.mxu0 %v6142_v23  ;;  %v6146_v23 = vld [vmem:[%s8830_s5 + $0x2f0] ss:$8 sps:$4 sm:$0xff]   ;;  %v6158_v32 = vld [vmem:[%s8830_s5 + $0x320] ss:$8 sps:$4 sm:$0xff]   ;;  %v3341_v24 = vpack.c.bf16 %v7898_v40, %v7826_v12  ;;  %v3351_v36 = vpack.c.bf16 %v8001_v48, %v7929_v5  ;;  %v3161_v12 = vrot.slane %v8234_v38, 2 }
 0x448   : > { %4378 = vmatprep.mubr.bf16.mxu1 %v8185_v15  ;;  %v2817_v50 = vld [vmem:[#allocation4 + $0x88] sm:$0x3]  ;;  %v6166_v40 = vld [vmem:[%s8830_s5 + $0x344] ss:$8 sps:$4 sm:$0xff]  }
 0x449   : > { %4492 = vmatmul.mubr.bf16.gmra.mrb[76].mxu0 %v8189_v30  ;;  %v6164_v48 = vld [vmem:[%s8830_s5 + $0x340] ss:$8 sps:$4 sm:$0xff]  }
 0x44a   : > { %4531 = vmatpush1.bf16.msra.mxu0 %v6140_v33  ;;  %4379 = vmatmul.mubr.bf16.gmra.mrb[76].mxu1 %v8195_v56  ;;  %v3092_v33 = vrot.slane %v7972_v60, 2 }
 0x44b   : > { %4534 = vmatprep.mubr.bf16.mxu0 %v3333_v53  ;;  %4532 = vmatprep.subr.bf16.mxu0 %v6148_v41  ;;  %v3093_v41 = vrot.slane %v2817_v50, 2  ;;  %v6161_v53 = vld [vmem:[%s8830_s5 + $0x330] ss:$8 sps:$4 sm:$0xff]  }
 0x44c   : > { %4770 = vmatprep.mubr.bf16.mxu1 %v6224_v17 }
 0x44d   : > { %v3094_v5 = vsel %vm668_vm3, %v3092_v33, %v3093_v41  ;;  %v8315_v33 = vld [vmem:[#allocation4 + $0x138] sm:$0x3]  ;;  %v3387_v41 = vpack.c.bf16 %v8175_v22, %v8145_v61  ;;  %v6188_v22 = vld [vmem:[%s8830_s5 + $0x3c0] ss:$8 sps:$4 sm:$0xff]  }
 0x44e   : > { %4533 = vmatpush1.bf16.msra.mxu0 %v6146_v23  ;;  %v3162_v23 = vsel %vm668_vm3, %v7747_v7, %v3161_v12 }
 0x44f   : > { %4615 = vmatprep.subr.bf16.mxu0 %v6154_v2  ;;  %v6169_v2 = vld [vmem:[%s8830_s5 + $0x354] ss:$8 sps:$4 sm:$0xff]  }
 0x451   : > { %4535 = vmatmul.mubr.bf16.vlgmr.msra.gmra.mrb[48].mxu0 %v3332_v49  ;;  %v3068_v49 = vrot.slane %v7972_v60, 1 }
 0x452   : > { %4616 = vmatpush1.bf16.msra.mxu0 %v6152_v27  ;;  %4544 = vmatprep.mubr.bf16.mxu0 %v3342_v21  ;;  %v3360_v27 = vpack.c.bf16 %v3094_v5, %v8004_v59  ;;  %v3363_v21 = vpack.c.bf16 %v3162_v23, %v3094_v5  ;;  %v6170_v59 = vld [vmem:[%s8830_s5 + $0x360] ss:$8 sps:$4 sm:$0xff]  }
 0x453   : > { %4771 = vmatmul.mubr.bf16.vlgmr.msra.gmra.mrb[80].mxu1 %v7934_v37  ;;  %4617 = vmatprep.subr.bf16.mxu0 %v6157_v8  ;;  %v6163_v37 = vld [vmem:[%s8830_s5 + $0x334] ss:$8 sps:$4 sm:$0xff]   ;;  %v3069_v8 = vrot.slane %v2817_v50, 1  ;;  %v3369_v50 = vpack.c.bf16 %v8102_v42, %v8066_v25  ;;  %v6176_v25 = vld [vmem:[%s8830_s5 + $0x380] ss:$8 sps:$4 sm:$0xff]   ;;  %v3368_v42 = vpack.c.bf16 %v8089_v13, %v8058_v11 }
 0x454   : > { %4780 = vmatprep.mubr.bf16.mxu1 %v6224_v17  ;;  %v6184_v11 = vld [vmem:[%s8830_s5 + $0x3a4] ss:$8 sps:$4 sm:$0xff]   ;;  %v6182_v13 = vld [vmem:[%s8830_s5 + $0x3a0] ss:$8 sps:$4 sm:$0xff]  }
 0x456   : > { %4618 = vmatpush1.bf16.msra.mxu0 %v6155_v51  ;;  %v6167_v51 = vld [vmem:[%s8830_s5 + $0x350] ss:$8 sps:$4 sm:$0xff]  }
 0x457   : > { %4619 = vmatprep.subr.bf16.mxu0 %v6160_v47 }
 0x459   : > { %4545 = vmatmul.mubr.bf16.gmra.mrb[52].mxu0 %v3341_v24  ;;  %v6173_v24 = vld [vmem:[%s8830_s5 + $0x370] ss:$8 sps:$4 sm:$0xff]  }
 0x45a   : > { %4620 = vmatpush1.bf16.msra.mxu0 %v6158_v32  ;;  %4554 = vmatprep.mubr.bf16.mxu0 %v3351_v36  ;;  %v6175_v32 = vld [vmem:[%s8830_s5 + $0x374] ss:$8 sps:$4 sm:$0xff]   ;;  %v6179_v36 = vld [vmem:[%s8830_s5 + $0x390] ss:$8 sps:$4 sm:$0xff]  }
 0x45b   : > { %4781 = vmatmul.mubr.bf16.gmra.mrb[84].mxu1 %v8009_v39  ;;  %4621 = vmatprep.subr.bf16.mxu0 %v6163_v37  ;;  %v3350_v39 = vpack.c.bf16 %v7975_v45, %v7908_v57  ;;  %v6172_v57 = vld [vmem:[%s8830_s5 + $0x364] ss:$8 sps:$4 sm:$0xff]   ;;  %v8268_v45 = vsel %vm554_vm2, %v3068_v49, %v3069_v8  ;;  %v3378_v37 = vpack.c.bf16 %v8142_v9, %v8105_v16  ;;  %v2837_v16 = vld [vmem:[#allocation4 + $0x128] sm:$0x3]  ;;  %v6199_v8 = vld [vmem:[%s8830_s5 + $0x3f4] ss:$8 sps:$4 sm:$0xff]  }
 0x45c   : > { %4790 = vmatprep.mubr.bf16.mxu1 %v6224_v17  ;;  %v3359_v47 = vpack.c.bf16 %v8268_v45, %v7985_v35  ;;  %v6178_v35 = vld [vmem:[%s8830_s5 + $0x384] ss:$8 sps:$4 sm:$0xff]   ;;  %v3377_v9 = vpack.c.bf16 %v8129_v3, %v8092_v31  ;;  %v3096_v12 = vrot.slane %v2837_v16, 2  ;;  %v3164_v31 = vrot.slane %v8315_v33, 2 }
 0x45d   : > { %v6190_v3 = vld [vmem:[%s8830_s5 + $0x3c4] ss:$8 sps:$4 sm:$0xff]  }
 0x45e   : > { %4622 = vmatpush1.bf16.msra.mxu0 %v6161_v53  ;;  %v3095_v53 = vrot.slane %v8165_v10, 2  ;;  %v3165_v5 = vsel %vm668_vm3, %v7747_v7, %v3164_v31  ;;  %v6191_v7 = vld [vmem:[%s8830_s5 + $0x3d0] ss:$8 sps:$4 sm:$0xff]  }
 0x45f   : > { %4623 = vmatprep.subr.bf16.mxu0 %v6166_v40  ;;  %v6185_v40 = vld [vmem:[%s8830_s5 + $0x3b0] ss:$8 sps:$4 sm:$0xff]  }
 0x460   : > { %v3097_v61 = vsel %vm668_vm3, %v3095_v53, %v3096_v12 }
 0x461   : > { %4555 = vmatmul.mubr.bf16.gmra.mrb[56].mxu0 %v3350_v39  ;;  %v3396_v23 = vpack.c.bf16 %v3097_v61, %v8178_v19  ;;  %v3071_v39 = vrot.slane %v8165_v10, 1  ;;  %v6194_v19 = vld [vmem:[%s8830_s5 + $0x3e0] ss:$8 sps:$4 sm:$0xff]  }
 0x462   : > { %4624 = vmatpush1.bf16.msra.mxu0 %v6164_v48  ;;  %4564 = vmatprep.mubr.bf16.mxu0 %v3360_v27  ;;  %v6193_v48 = vld [vmem:[%s8830_s5 + $0x3d4] ss:$8 sps:$4 sm:$0xff]   ;;  %v3399_v27 = vpack.c.bf16 %v3165_v5, %v3097_v61  ;;  %v4941_v61 = vld [vmem:[%s8832_s7 + $0x80] sm:$0xff] }
 0x463   : > { %4791 = vmatmul.mubr.bf16.gmra.mrb[88].mxu1 %v3363_v21  ;;  %4625 = vmatprep.subr.bf16.mxu0 %v6169_v2  ;;  %v3072_v2 = vrot.slane %v2837_v16, 1  ;;  %v6197_v21 = vld [vmem:[%s8830_s5 + $0x3f0] ss:$8 sps:$4 sm:$0xff]   ;;  %v4925_v5 = vld [vmem:[%s8832_s7] sm:$0xff] }
 0x464   : > { %4800 = vmatprep.mubr.bf16.mxu1 %v6224_v17 }
 0x466   : > { %4626 = vmatpush1.bf16.msra.mxu0 %v6167_v51  ;;  %v6203_v51 = vld [vmem:[%s8830_s5 + $0x404] ss:$8 sps:$4 sm:$0xff]  }
 0x467   : > { %4627 = vmatprep.subr.bf16.mxu0 %v6172_v57  ;;  %v3137_v57 = vrot.slane %v8234_v38, 1  ;;  %v8871_v38 = vld [vmem:[#allocation15_spill] sm:$0xff] }
 0x469   : > { %4565 = vmatmul.mubr.bf16.gmra.mrb[60].mxu0 %v3359_v47 }
 0x46a   : > { %4628 = vmatpush1.bf16.msra.mxu0 %v6170_v59  ;;  %4574 = vmatprep.mubr.bf16.mxu0 %v3369_v50  ;;  %v3140_v59 = vrot.slane %v8315_v33, 1 }
 0x46b   : > { %4801 = vmatmul.mubr.bf16.gmra.mrb[92].mxu1 %v8110_v63  ;;  %4629 = vmatprep.subr.bf16.mxu0 %v6175_v32  ;;  %v6181_v63 = vld [vmem:[%s8830_s5 + $0x394] ss:$8 sps:$4 sm:$0xff]  }
 0x46c   : > { %4810 = vmatprep.mubr.bf16.mxu1 %v6224_v17 }
 0x46e   : > { %4630 = vmatpush1.bf16.msra.mxu0 %v6173_v24 }
 0x46f   : > { %4631 = vmatprep.subr.bf16.mxu0 %v6178_v35 }
 0x471   : > { %4575 = vmatmul.mubr.bf16.gmra.mrb[64].mxu0 %v3368_v42 }
 0x472   : > { %4632 = vmatpush1.bf16.msra.mxu0 %v6176_v25  ;;  %4584 = vmatprep.mubr.bf16.mxu0 %v3378_v37 }
 0x473   : > { %4811 = vmatmul.mubr.bf16.gmra.mrb[96].mxu1 %v8149_v28  ;;  %4633 = vmatprep.subr.bf16.mxu0 %v6181_v63  ;;  %v6187_v28 = vld [vmem:[%s8830_s5 + $0x3b4] ss:$8 sps:$4 sm:$0xff]  }
 0x474   : > { %4820 = vmatprep.mubr.bf16.mxu1 %v6224_v17 }
 0x476   : > { %4634 = vmatpush1.bf16.msra.mxu0 %v6179_v36 }
 0x477   : > { %4635 = vmatprep.subr.bf16.mxu0 %v6184_v11 }
 0x479   : > { %4585 = vmatmul.mubr.bf16.gmra.mrb[68].mxu0 %v3377_v9 }
 0x47a   : > { %4636 = vmatpush1.bf16.msra.mxu0 %v6182_v13  ;;  %4594 = vmatprep.mubr.bf16.mxu0 %v3387_v41 }
 0x47b   : > { %4821 = vmatmul.mubr.bf16.gmra.mrb[100].mxu1 %v8189_v30  ;;  %4637 = vmatprep.subr.bf16.mxu0 %v6187_v28  ;;  %v3386_v30 = vpack.c.bf16 %v8168_v0, %v8132_v55  ;;  %v6196_v55 = vld [vmem:[%s8830_s5 + $0x3e4] ss:$8 sps:$4 sm:$0xff]   ;;  %v3073_v0 = vsel %vm554_vm2, %v3071_v39, %v3072_v2 }
 0x47c   : > { %4830 = vmatprep.mubr.bf16.mxu1 %v6224_v17  ;;  %v3395_v49 = vpack.c.bf16 %v3073_v0, %v8172_v26 }
 0x47e   : > { %4638 = vmatpush1.bf16.msra.mxu0 %v6185_v40 }
 0x47f   : > { %4639 = vmatprep.subr.bf16.mxu0 %v6190_v3 }
 0x481   : > { %4595 = vmatmul.mubr.bf16.gmra.mrb[72].mxu0 %v3386_v30 }
 0x482   : > { %4640 = vmatpush1.bf16.msra.mxu0 %v6188_v22  ;;  %4604 = vmatprep.mubr.bf16.mxu0 %v3396_v23  ;;  %v4942_v22 = vld [vmem:[%s8832_s7 + $0x88] sm:$0xff] }
 0x483   : > { %4831 = vmatmul.mubr.bf16.gmra.mrb[104].mxu1 %v3399_v27  ;;  %4641 = vmatprep.subr.bf16.mxu0 %v6193_v48  ;;  %v5691_v48 = vpack.c.bf16 %v4942_v22, %v4941_v61  ;;  %v4926_v23 = vld [vmem:[%s8832_s7 + $0x8] sm:$0xff] }
 0x484   : > { %v5693_v2 = vpack.c.bf16 %v4926_v23, %v4925_v5  ;;  %v4950_v23 = vld [vmem:[%s8832_s7 + $0xc8] sm:$0xff] }
 0x485   : > { %5692 = vmatprep.subr.bf16.mxu1 %v5691_v48  ;;  %v4949_v48 = vld [vmem:[%s8832_s7 + $0xc0] sm:$0xff] }
 0x486   : > { %4642 = vmatpush1.bf16.msra.mxu0 %v6191_v7  ;;  %5694 = vmatpush3.bf16.msra.mxu1 %v5693_v2  ;;  %v4943_v7 = vld [vmem:[%s8832_s7 + $0x90] sm:$0xff]  ;;  %v4933_v2 = vld [vmem:[%s8832_s7 + $0x40] sm:$0xff] }
 0x487   : > { %4643 = vmatprep.subr.bf16.mxu0 %v6196_v55  ;;  %v4944_v55 = vld [vmem:[%s8832_s7 + $0x98] sm:$0xff] }
 0x489   : > { %4605 = vmatmul.mubr.bf16.gmra.mrb[76].mxu0 %v3395_v49  ;;  %v4927_v49 = vld [vmem:[%s8832_s7 + $0x10] sm:$0xff] }
 0x48a   : > { %4644 = vmatpush1.bf16.msra.mxu0 %v6194_v19  ;;  %4647 = vmatprep.mubr.bf16.mxu0 %v7842_v52  ;;  %v8370_v52 = vld [vmem:[#allocation4] sm:$0xff]  ;;  %v5695_v19 = vpack.c.bf16 %v4944_v55, %v4943_v7  ;;  %v5707_v55 = vpack.c.bf16 %v4950_v23, %v4949_v48 }
 0x48b   : > { %4645 = vmatprep.subr.bf16.mxu0 %v6199_v8  ;;  %8864 = vst [vmem:[#allocation19_spill] sm:$0xff] %v8370_v52  ;;  %v3136_v26 = vrot.slane %v8370_v52, 1  ;;  %v4928_v8 = vld [vmem:[%s8832_s7 + $0x18] sm:$0xff] }
 0x48c   : > { %5696 = vmatprep.subr.bf16.mxu1 %v5695_v19  ;;  %v4934_v19 = vld [vmem:[%s8832_s7 + $0x48] sm:$0xff] }
 0x48e   : > { %4646 = vmatpush1.bf16.msra.mxu0 %v6197_v21 }
 0x48f   : > { %4728 = vmatprep.subr.bf16.mxu0 %v6203_v51  ;;  %v5697_v51 = vpack.c.bf16 %v4928_v8, %v4927_v49  ;;  %v4951_v49 = vld [vmem:[%s8832_s7 + $0xd0] sm:$0xff]  ;;  %v4952_v8 = vld [vmem:[%s8832_s7 + $0xd8] sm:$0xff] }
 0x491   : > { %4648 = vmatmul.mubr.bf16.vlgmr.msra.gmra.mrb[48].mxu0 %v7864_v62  ;;  %v8866_v62 = vld [vmem:[#allocation10_spill] sm:$0xff]  ;;  %5698 = vmatpush3.bf16.msra.mxu1 %v5697_v51 }
 0x492   : > { %4729 = vmatpush1.bf16.msra.mxu0 %v7786_v58  ;;  %4657 = vmatprep.mubr.bf16.mxu0 %v7923_v1  ;;  %v8865_v58 = vld [vmem:[#allocation9_spill] sm:$0xff]  ;;  %v8868_v1 = vld [vmem:[#allocation12_spill] sm:$0xff] }
 0x493   : > { %4730 = vmatprep.subr.bf16.mxu0 %v7796_v46  ;;  %v3138_v46 = vsel %vm554_vm2, %v3136_v26, %v3137_v57  ;;  %v4945_v57 = vld [vmem:[%s8832_s7 + $0xa0] sm:$0xff] }
 0x496   : > { %4731 = vmatpush1.bf16.msra.mxu0 %v7819_v14  ;;  %v8867_v14 = vld [vmem:[#allocation11_spill] sm:$0xff] }
 0x497   : > { %4732 = vmatprep.subr.bf16.mxu0 %v7833_v20  ;;  %v3362_v20 = vpack.c.bf16 %v3138_v46, %v8268_v45  ;;  %v8874_v45 = vld [vmem:[#allocation18_spill] sm:$0xff] }
 0x499   : > { %4658 = vmatmul.mubr.bf16.gmra.mrb[52].mxu0 %v7941_v4  ;;  %v8869_v4 = vld [vmem:[#allocation13_spill] sm:$0xff] }
 0x49a   : > { %4667 = vmatprep.mubr.bf16.mxu0 %v7998_v29  ;;  %4733 = vmatpush1.bf16.msra.mxu0 %v7872_v54  ;;  %v3361_v54 = vpack.c.bf16 %v8370_v52, %v7972_v60  ;;  %v8870_v29 = vld [vmem:[#allocation14_spill] sm:$0xff]  ;;  %v3141_v60 = vsel %vm554_vm2, %v3136_v26, %v3140_v59  ;;  %v4948_v59 = vld [vmem:[%s8832_s7 + $0xb8] sm:$0xff]  ;;  %vm5137_vm2 = vcmask 287744  }
 0x49b   : > { %4734 = vmatprep.subr.bf16.mxu0 %v8865_v58  ;;  %v3398_v47 = vpack.c.bf16 %v3141_v60, %v3073_v0  ;;  %v4946_v58 = vld [vmem:[%s8832_s7 + $0xa8] sm:$0xff]  ;;  %v4931_v60 = vld [vmem:[%s8832_s7 + $0x30] sm:$0xff] }
 0x49c   : > { %v5699_v46 = vpack.c.bf16 %v4946_v58, %v4945_v57  ;;  %v5709_v57 = vpack.c.bf16 %v4934_v19, %v4933_v2  ;;  %v5711_v58 = vpack.c.bf16 %v4952_v8, %v4951_v49  ;;  %v4939_v49 = vld [vmem:[%s8832_s7 + $0x70] sm:$0xff]  ;;  %v4940_v8 = vld [vmem:[%s8832_s7 + $0x78] sm:$0xff] }
 0x49e   : > { %4735 = vmatpush1.bf16.msra.mxu0 %v8866_v62  ;;  %5700 = vmatprep.subr.bf16.mxu1 %v5699_v46  ;;  %v4935_v46 = vld [vmem:[%s8832_s7 + $0x50] sm:$0xff] }
 0x49f   : > { %4736 = vmatprep.subr.bf16.mxu0 %v8867_v14 }
 0x4a1   : > { %4668 = vmatmul.mubr.bf16.gmra.mrb[56].mxu0 %v8016_v44  ;;  %v8872_v44 = vld [vmem:[#allocation16_spill] sm:$0xff] }
 0x4a2   : > { %4677 = vmatprep.mubr.bf16.mxu0 %v3362_v20  ;;  %4737 = vmatpush1.bf16.msra.mxu0 %v7952_v18  ;;  %v8873_v18 = vld [vmem:[#allocation17_spill] sm:$0xff] }
 0x4a3   : > { %4738 = vmatprep.subr.bf16.mxu0 %v8868_v1 }
 0x4a6   : > { %4739 = vmatpush1.bf16.msra.mxu0 %v8869_v4 }
 0x4a7   : > { %4740 = vmatprep.subr.bf16.mxu0 %v8870_v29  ;;  %v4929_v29 = vld [vmem:[%s8832_s7 + $0x20] sm:$0xff] }
 0x4a9   : > { %4678 = vmatmul.mubr.bf16.gmra.mrb[60].mxu0 %v3361_v54 }
 0x4aa   : > { %4687 = vmatprep.mubr.bf16.mxu0 %v8099_v34  ;;  %4741 = vmatpush1.bf16.msra.mxu0 %v8871_v38  ;;  %v4930_v38 = vld [vmem:[%s8832_s7 + $0x28] sm:$0xff] }
 0x4ab   : > { %4742 = vmatprep.subr.bf16.mxu0 %v8030_v43  ;;  %v3397_v43 = vpack.c.bf16 %v8370_v52, %v8165_v10 }
 0x4ae   : > { %4743 = vmatpush1.bf16.msra.mxu0 %v8054_v6  ;;  %v8875_v6 = vld [vmem:[#allocation8_spill] sm:$0xff] }
 0x4b1   : > { %4688 = vmatmul.mubr.bf16.gmra.mrb[64].mxu0 %v8872_v44  ;;  %v4947_v44 = vld [vmem:[%s8832_s7 + $0xb0] sm:$0xff] }
 0x4b2   : > { %4697 = vmatprep.mubr.bf16.mxu0 %v8873_v18 }
 0x4b9   : > { %4698 = vmatmul.mubr.bf16.gmra.mrb[68].mxu0 %v8874_v45  ;;  %v5701_v45 = vpack.c.bf16 %v4930_v38, %v4929_v29  ;;  %v4936_v29 = vld [vmem:[%s8832_s7 + $0x58] sm:$0xff]  ;;  %v4953_v38 = vld [vmem:[%s8832_s7 + $0xe0] sm:$0xff] }
 0x4ba   : > { %4707 = vmatprep.mubr.bf16.mxu0 %v8185_v15 }
 0x4bb   : > { %5702 = vmatpush3.bf16.msra.mxu1 %v5701_v45  ;;  %v5713_v45 = vpack.c.bf16 %v4936_v29, %v4935_v46 }
 0x4c1   : > { %4708 = vmatmul.mubr.bf16.gmra.mrb[72].mxu0 %v8195_v56 }
 0x4c2   : > { %4717 = vmatprep.mubr.bf16.mxu0 %v3398_v47  ;;  %v4932_v47 = vld [vmem:[%s8832_s7 + $0x38] sm:$0xff] }
 0x4c3   : > { %v5705_v61 = vpack.c.bf16 %v4932_v47, %v4931_v60  ;;  %v4937_v60 = vld [vmem:[%s8832_s7 + $0x60] sm:$0xff]  ;;  %v4938_v47 = vld [vmem:[%s8832_s7 + $0x68] sm:$0xff] }
 0x4c4   : > { %v5717_v2 = vpack.c.bf16 %v4938_v47, %v4937_v60 }
 0x4c9   : > { %4718 = vmatmul.mubr.bf16.gmra.mrb[76].mxu0 %v3397_v43 }
 0x4ca   : > { %4760 = vmatprep.mubr.bf16.mxu0 %v6224_v17 }
 0x4d1   : > { %4761 = vmatmul.mubr.bf16.vlgmr.msra.gmra.mrb[48].mxu0 %v8875_v6  ;;  %v5703_v6 = vpack.c.bf16 %v4948_v59, %v4947_v44  ;;  %v4954_v44 = vld [vmem:[%s8832_s7 + $0xe8] sm:$0xff] }
 0x4d2   : > { %v5715_v59 = vpack.c.bf16 %v4954_v44, %v4953_v38 }
 0x4d3   : > { %5704 = vmatprep.subr.bf16.mxu1 %v5703_v6  ;;  %v4955_v6 = vld [vmem:[%s8832_s7 + $0xf0] sm:$0xff] }
 0x4d4   : > { %5706 = vmatpush3.bf16.msra.mxu1 %v5705_v61  ;;  %v4956_v61 = vld [vmem:[%s8832_s7 + $0xf8] sm:$0xff] }
 0x4d5   : > { %5708 = vmatprep.subr.bf16.mxu1 %v5707_v55  ;;  %v5719_v19 = vpack.c.bf16 %v4956_v61, %v4955_v6 }
 0x4d8   : > { %5710 = vmatpush3.bf16.msra.mxu1 %v5709_v57 }
 0x4d9   : > { %5712 = vmatprep.subr.bf16.mxu1 %v5711_v58  ;;  %v5721_v58 = vpack.c.bf16 %v4940_v8, %v4939_v49  ;;  %v3546_v8 = vlaneseq }
 0x4dc   : > { %5714 = vmatpush3.bf16.msra.mxu1 %v5713_v45  ;;  %v8850_v45 = vmov 0.0|0.0  }
 0x4dd   : > { %5716 = vmatprep.subr.bf16.mxu1 %v5715_v59 }
 0x4e0   : > { %5718 = vmatpush3.bf16.msra.mxu1 %v5717_v2 }
 0x4e1   : > { %5720 = vmatprep.subr.bf16.mxu1 %v5719_v19 }
 0x4e4   : > { %5722 = vmatpush3.bf16.msra.mxu1 %v5721_v58  ;;  %v3547_v58 = vshrl.u32 %v3546_v8, 7 }
 0x4e5   : > { %v8403_v34 = vpop.f32.mrb[48].mxu1  ;;  %5723 = vmatprep.subr.bf16.mxu1 %v8850_v45  ;;  %v3544_v45 = vld [vmem:[%s8831_s6] sm:$0x3] }
 0x4e6   : > { %8876 = vst [vmem:[#allocation9_spill] sm:$0xff] %v8403_v34  ;;  %v8405_v32 = vpop.f32.mrb[49].mxu1  ;;  %v3548_v52 = vsub.s32 0, %v3547_v58 }
 0x4e7   : > { %8877 = vst [vmem:[#allocation10_spill] sm:$0xff] %v8405_v32  ;;  %v8407_v50 = vpop.f32.mrb[50].mxu1 }
 0x4e8   : > { %8878 = vst [vmem:[#allocation11_spill] sm:$0xff] %v8407_v50  ;;  %v8409_v15 = vpop.f32.mrb[51].mxu1  ;;  %v8623_v50 = vrot.slane %v3544_v45, %v3548_v52 }
 0x4e9   : > { %8879 = vst [vmem:[#allocation12_spill] sm:$0xff] %v8409_v15  ;;  %v3552_v15 = vsub.s32 1, %v3547_v58 }
 0x4eb   : > { %v8625_v32 = vrot.slane %v3544_v45, %v3552_v15 }
 0x4ed   : > { %v8411_v24 = vpop.f32.mrb[52].mxu1 }
 0x4ee   : > { %v8413_v56 = vpop.f32.mrb[53].mxu1  ;;  %v4321_v34 = vadd.f32 %v8411_v24, %v8623_v50 }
 0x4ef   : > { %v8415_v35 = vpop.f32.mrb[54].mxu1 }
 0x4f0   : > { %v8417_v10 = vpop.f32.mrb[55].mxu1  ;;  %v4325_v8 = vadd.f32 %v8415_v35, %v8623_v50 }
 0x4f5   : > { %v8419_v25 = vpop.f32.mrb[56].mxu1 }
 0x4f6   : > { %v8421_v17 = vpop.f32.mrb[57].mxu1  ;;  %v4331_v35 = vadd.f32 %v8419_v25, %v8623_v50 }
 0x4f7   : > { %v8423_v42 = vpop.f32.mrb[58].mxu1 }
 0x4f8   : > { %v8425_v63 = vpop.f32.mrb[59].mxu1 }
 0x4fd   : > { %v8427_v37 = vpop.f32.mrb[60].mxu1 }
 0x4fe   : > { %v8429_v36 = vpop.f32.mrb[61].mxu1 }
 0x4ff   : > { %v8431_v11 = vpop.f32.mrb[62].mxu1 }
 0x500   : > { %v8433_v13 = vpop.f32.mrb[63].mxu1 }
 0x505   : > { %v8435_v16 = vpop.f32.mrb[64].mxu1 }
 0x506   : > { %v8437_v9 = vpop.f32.mrb[65].mxu1 }
 0x507   : > { %v8439_v28 = vpop.f32.mrb[66].mxu1 }
 0x508   : > { %v8441_v33 = vpop.f32.mrb[67].mxu1 }
 0x50d   : > { %v8443_v41 = vpop.f32.mrb[68].mxu1 }
 0x50e   : > { %v8445_v53 = vpop.f32.mrb[69].mxu1 }
 0x50f   : > { %v8447_v12 = vpop.f32.mrb[70].mxu1 }
 0x510   : > { %v8449_v40 = vpop.f32.mrb[71].mxu1 }
 0x515   : > { %v8451_v31 = vpop.f32.mrb[72].mxu1 }
 0x516   : > { %v8453_v3 = vpop.f32.mrb[73].mxu1 }
 0x517   : > { %v8464_v30 = vpop.f32.mrb[74].mxu1 }
 0x518   : > { %v8469_v39 = vpop.f32.mrb[75].mxu1 }
 0x51d   : > { %v8471_v27 = vpop.f32.mrb[76].mxu1 }
 0x51e   : > { %v8479_v0 = vpop.f32.mrb[77].mxu1 }
 0x51f   : > { %8880 = vst [vmem:[#allocation13_spill] sm:$0xff] %v8479_v0  ;;  %v8487_v21 = vpop.f32.mrb[78].mxu1 }
 0x520   : > { %8881 = vst [vmem:[#allocation14_spill] sm:$0xff] %v8487_v21  ;;  %v8489_v26 = vpop.f32.mrb[79].mxu1 }
 0x521   : > { %8882 = vst [vmem:[#allocation15_spill] sm:$0xff] %v8489_v26  ;;  %v4327_v26 = vadd.f32 %v8417_v10, %v8625_v32  ;;  %v4333_v10 = vadd.f32 %v8421_v17, %v8625_v32 }
 0x526   : > { %v8497_v62 = vpop.f32.mrb[80].mxu1 }
 0x527   : > { %v8499_v14 = vpop.f32.mrb[81].mxu1 }
 0x528   : > { %v8501_v20 = vpop.f32.mrb[82].mxu1 }
 0x529   : > { %v8503_v1 = vpop.f32.mrb[83].mxu1 }
 0x52e   : > { %v8505_v4 = vpop.f32.mrb[84].mxu1 }
 0x52f   : > { %v8507_v54 = vpop.f32.mrb[85].mxu1 }
 0x530   : > { %v8518_v18 = vpop.f32.mrb[86].mxu1 }
 0x531   : > { %v8529_v43 = vpop.f32.mrb[87].mxu1 }
 0x536   : > { %v8531_v22 = vpop.f32.mrb[88].mxu1 }
 0x537   : > { %v8533_v5 = vpop.f32.mrb[89].mxu1 }
 0x538   : > { %v8544_v7 = vpop.f32.mrb[90].mxu1 }
 0x539   : > { %v8555_v51 = vpop.f32.mrb[91].mxu1 }
 0x53e   : > { %v8581_v48 = vpop.f32.mrb[92].mxu1 }
 0x53f   : > { %v8583_v23 = vpop.f32.mrb[93].mxu1 }
 0x540   : > { %v8585_v55 = vpop.f32.mrb[94].mxu1 }
 0x541   : > { %v8593_v57 = vpop.f32.mrb[95].mxu1 }
 0x546   : > { %v8595_v46 = vpop.f32.mrb[96].mxu1 }
 0x547   : > { %v8597_v29 = vpop.f32.mrb[97].mxu1 }
 0x548   : > { %v8599_v38 = vpop.f32.mrb[98].mxu1 }
 0x549   : > { %v8601_v44 = vpop.f32.mrb[99].mxu1 }
 0x54e   : > { %v8604_v59 = vpop.f32.mrb[100].mxu1 }
 0x54f   : > { %v8606_v60 = vpop.f32.mrb[101].mxu1 }
 0x550   : > { %v8608_v47 = vpop.f32.mrb[102].mxu1 }
 0x551   : > { %v8610_v6 = vpop.f32.mrb[103].mxu1 }
 0x556   : > { %v8612_v61 = vpop.f32.mrb[104].mxu1 }
 0x557   : > { %8883 = vst [vmem:[#allocation16_spill] sm:$0xff] %v8612_v61  ;;  %v8614_v2 = vpop.f32.mrb[105].mxu1 }
 0x558   : > { %8884 = vst [vmem:[#allocation17_spill] sm:$0xff] %v8614_v2  ;;  %v8616_v19 = vpop.f32.mrb[106].mxu1 }
 0x559   : > { %8885 = vst [vmem:[#allocation18_spill] sm:$0xff] %v8616_v19  ;;  %v8618_v49 = vpop.f32.mrb[107].mxu1  ;;  %v4323_v19 = vadd.f32 %v8413_v56, %v8625_v32 }
 0x55a   : > { %8886 = vst [vmem:[#allocation8_spill] sm:$0xff] %v8618_v49 }
 0x56c   : > { %v4659_v2 = vpop.f32.mrb[52].mxu0 }
 0x56d   : > { %v5772_v49 = vadd.f32 %v4659_v2, %v4321_v34  ;;  %v4661_v61 = vpop.f32.mrb[53].mxu0 }
 0x56e   : > { %v5775_v58 = vadd.f32 %v4661_v61, %v4323_v19  ;;  %v4663_v52 = vpop.f32.mrb[54].mxu0  ;;  %v4335_v61 = vadd.f32 %v8423_v42, %v8623_v50 }
 0x56f   : > { %v8636_v15 = vadd.f32 %v5772_v49, %v8497_v62  ;;  %v5778_v45 = vadd.f32 %v4663_v52, %v4325_v8  ;;  %v4665_v21 = vpop.f32.mrb[55].mxu0  ;;  %v4345_v52 = vadd.f32 %v8431_v11, %v8623_v50 }
 0x570   : > { %v8639_v24 = vadd.f32 %v5775_v58, %v8499_v14  ;;  %v5781_v56 = vadd.f32 %v4665_v21, %v4327_v26  ;;  %v4337_v21 = vadd.f32 %v8425_v63, %v8625_v32  ;;  %v4341_v63 = vadd.f32 %v8427_v37, %v8623_v50 }
 0x571   : > { %v8642_v0 = vadd.f32 %v5778_v45, %v8501_v20  ;;  %v4343_v58 = vadd.f32 %v8429_v36, %v8625_v32 }
 0x572   : > { %v8645_v34 = vadd.f32 %v5781_v56, %v8503_v1  ;;  %v4347_v56 = vadd.f32 %v8433_v13, %v8625_v32  ;;  %v4351_v13 = vadd.f32 %v8435_v16, %v8623_v50 }
 0x574   : > { %v4669_v62 = vpop.f32.mrb[56].mxu0 }
 0x575   : > { %v5784_v2 = vadd.f32 %v4669_v62, %v4331_v35  ;;  %v4671_v14 = vpop.f32.mrb[57].mxu0 }
 0x576   : > { %v5787_v26 = vadd.f32 %v4671_v14, %v4333_v10  ;;  %v4673_v20 = vpop.f32.mrb[58].mxu0  ;;  %v4355_v14 = vadd.f32 %v8439_v28, %v8623_v50  ;;  %v4361_v28 = vadd.f32 %v8443_v41, %v8623_v50 }
 0x577   : > { %v8656_v1 = vadd.f32 %v5784_v2, %v8505_v4  ;;  %v5790_v19 = vadd.f32 %v4673_v20, %v4335_v61  ;;  %v4675_v49 = vpop.f32.mrb[59].mxu0  ;;  %v4353_v2 = vadd.f32 %v8437_v9, %v8625_v32 }
 0x578   : > { %v8659_v25 = vadd.f32 %v5787_v26, %v8507_v54  ;;  %v5793_v17 = vadd.f32 %v4675_v49, %v4337_v21  ;;  %v4357_v26 = vadd.f32 %v8441_v33, %v8625_v32  ;;  %v4363_v33 = vadd.f32 %v8445_v53, %v8625_v32 }
 0x579   : > { %v8662_v8 = vadd.f32 %v5790_v19, %v8518_v18 }
 0x57a   : > { %v8665_v42 = vadd.f32 %v5793_v17, %v8529_v43 }
 0x57c   : > { %v4679_v4 = vpop.f32.mrb[60].mxu0 }
 0x57d   : > { %v5796_v45 = vadd.f32 %v4679_v4, %v4341_v63  ;;  %v4681_v54 = vpop.f32.mrb[61].mxu0 }
 0x57e   : > { %v5799_v18 = vadd.f32 %v4681_v54, %v4343_v58  ;;  %v4683_v35 = vpop.f32.mrb[62].mxu0  ;;  %v4365_v54 = vadd.f32 %v8447_v12, %v8623_v50 }
 0x57f   : > { %v8676_v43 = vadd.f32 %v5796_v45, %v8531_v22  ;;  %v5802_v10 = vadd.f32 %v4683_v35, %v4345_v52  ;;  %v4685_v62 = vpop.f32.mrb[63].mxu0 }
 0x580   : > { %v8679_v37 = vadd.f32 %v5799_v18, %v8533_v5  ;;  %v5805_v36 = vadd.f32 %v4685_v62, %v4347_v56 }
 0x581   : > { %v8682_v61 = vadd.f32 %v5802_v10, %v8544_v7 }
 0x582   : > { %v8685_v11 = vadd.f32 %v5805_v36, %v8555_v51 }
 0x584   : > { %v4689_v22 = vpop.f32.mrb[64].mxu0 }
 0x585   : > { %v5808_v21 = vadd.f32 %v4689_v22, %v4351_v13  ;;  %v4691_v5 = vpop.f32.mrb[65].mxu0 }
 0x586   : > { %v5811_v7 = vadd.f32 %v4691_v5, %v4353_v2  ;;  %v4693_v20 = vpop.f32.mrb[66].mxu0 }
 0x587   : > { %v5809_v51 = vadd.f32 %v5808_v21, %v8581_v48  ;;  %v5814_v19 = vadd.f32 %v4693_v20, %v4355_v14  ;;  %v4695_v49 = vpop.f32.mrb[67].mxu0  ;;  %v4371_v21 = vadd.f32 %v8451_v31, %v8623_v50 }
 0x588   : > { %v5812_v16 = vadd.f32 %v5811_v7, %v8583_v23  ;;  %v5817_v17 = vadd.f32 %v4695_v49, %v4357_v26  ;;  %v4373_v26 = vadd.f32 %v8453_v3, %v8625_v32 }
 0x589   : > { %v5815_v9 = vadd.f32 %v5814_v19, %v8585_v55  ;;  %v4857_v58 = vmax.f32 %v5809_v51, 0.0  ;;  %v4367_v55 = vadd.f32 %v8449_v40, %v8625_v32 }
 0x58a   : > { %v5818_v63 = vadd.f32 %v5817_v17, %v8593_v57  ;;  %v4858_v52 = vmax.f32 %v5812_v16, 0.0 }
 0x58b   : > { %v4859_v4 = vmax.f32 %v5815_v9, 0.0 }
 0x58c   : > { %v4860_v45 = vmax.f32 %v5818_v63, 0.0  ;;  %v4699_v48 = vpop.f32.mrb[68].mxu0 }
 0x58d   : > { %v4899_v23 = vmax.f32 %v4857_v58, %v4859_v4  ;;  %v5820_v56 = vadd.f32 %v4699_v48, %v4361_v28  ;;  %v4701_v18 = vpop.f32.mrb[69].mxu0  ;;  %v8887_v48 = vld [vmem:[#allocation13_spill] sm:$0xff] }
 0x58e   : > { %v4912_v57 = vmax.f32 %v4858_v52, %v4860_v45  ;;  %v5823_v35 = vadd.f32 %v4701_v18, %v4363_v33  ;;  %v4703_v41 = vpop.f32.mrb[70].mxu0  ;;  %v4381_v52 = vadd.f32 %v8471_v27, %v8623_v50 }
 0x58f   : > { %v5821_v10 = vadd.f32 %v5820_v56, %v8595_v46  ;;  %v5826_v62 = vadd.f32 %v4703_v41, %v4365_v54  ;;  %v4705_v36 = vpop.f32.mrb[71].mxu0  ;;  %v4383_v54 = vadd.f32 %v8887_v48, %v8625_v32 }
 0x590   : > { %v5824_v53 = vadd.f32 %v5823_v35, %v8597_v29  ;;  %v5829_v13 = vadd.f32 %v4705_v36, %v4367_v55  ;;  %v4375_v29 = vadd.f32 %v8464_v30, %v8623_v50  ;;  %v8889_v35 = vld [vmem:[#allocation15_spill] sm:$0xff] }
 0x591   : > { %v4861_v2 = vmax.f32 %v5821_v10, 0.0  ;;  %v5827_v22 = vadd.f32 %v5826_v62, %v8599_v38  ;;  %v8890_v62 = vld [vmem:[#allocation16_spill] sm:$0xff] }
 0x592   : > { %v4862_v12 = vmax.f32 %v5824_v53, 0.0  ;;  %v5830_v14 = vadd.f32 %v5829_v13, %v8601_v44  ;;  %v4377_v44 = vadd.f32 %v8469_v39, %v8625_v32 }
 0x593   : > { %v4900_v40 = vmax.f32 %v4899_v23, %v4861_v2  ;;  %v4863_v5 = vmax.f32 %v5827_v22, 0.0  ;;  %v8891_v2 = vld [vmem:[#allocation17_spill] sm:$0xff] }
 0x594   : > { %v4913_v46 = vmax.f32 %v4912_v57, %v4862_v12  ;;  %v4864_v7 = vmax.f32 %v5830_v14, 0.0  ;;  %v4709_v20 = vpop.f32.mrb[72].mxu0 }
 0x595   : > { %v4901_v51 = vmax.f32 %v4900_v40, %v4863_v5  ;;  %v5832_v19 = vadd.f32 %v4709_v20, %v4371_v21  ;;  %v4711_v38 = vpop.f32.mrb[73].mxu0  ;;  %v8892_v21 = vld [vmem:[#allocation18_spill] sm:$0xff] }
 0x596   : > { %v4914_v49 = vmax.f32 %v4913_v46, %v4864_v7  ;;  %v5835_v16 = vadd.f32 %v4711_v38, %v4373_v26  ;;  %v4713_v31 = vpop.f32.mrb[74].mxu0  ;;  %v8893_v26 = vld [vmem:[#allocation8_spill] sm:$0xff]  ;;  %v8894_v7 = vld [vmem:[#allocation9_spill] sm:$0xff] }
 0x597   : > { %v5833_v17 = vadd.f32 %v5832_v19, %v8604_v59  ;;  %v5838_v9 = vadd.f32 %v4713_v31, %v4375_v29  ;;  %v4715_v63 = vpop.f32.mrb[75].mxu0  ;;  %v4311_v20 = vadd.f32 %v8894_v7, %v8623_v50  ;;  %v8895_v19 = vld [vmem:[#allocation10_spill] sm:$0xff]  ;;  %v8896_v31 = vld [vmem:[#allocation11_spill] sm:$0xff] }
 0x598   : > { %v5836_v3 = vadd.f32 %v5835_v16, %v8606_v60  ;;  %v5841_v28 = vadd.f32 %v4715_v63, %v4377_v44  ;;  %v8888_v60 = vld [vmem:[#allocation14_spill] sm:$0xff]  ;;  %v4313_v38 = vadd.f32 %v8895_v19, %v8625_v32 }
 0x599   : > { %v4865_v58 = vmax.f32 %v5833_v17, 0.0  ;;  %v5839_v4 = vadd.f32 %v5838_v9, %v8608_v47  ;;  %v4385_v18 = vadd.f32 %v8888_v60, %v8623_v50  ;;  %v4315_v17 = vadd.f32 %v8896_v31, %v8623_v50  ;;  %v5045_v31 = vld [vmem:[%s8834_s9 + $0x8] sm:$0xff] }
 0x59a   : > { %v4866_v30 = vmax.f32 %v5836_v3, 0.0  ;;  %v5842_v33 = vadd.f32 %v5841_v28, %v8610_v6  ;;  %v4387_v6 = vadd.f32 %v8889_v35, %v8625_v32  ;;  %v8897_v28 = vld [vmem:[#allocation12_spill] sm:$0xff]  ;;  %v4846_v50 = vmax.f32 %v8639_v24, 0.0 }
 0x59b   : > { %v4902_v39 = vmax.f32 %v4901_v51, %v4865_v58  ;;  %v4867_v45 = vmax.f32 %v5839_v4, 0.0  ;;  %v4317_v58 = vadd.f32 %v8897_v28, %v8625_v32  ;;  %v4848_v32 = vmax.f32 %v8645_v34, 0.0 }
 0x59c   : > { %v4915_v59 = vmax.f32 %v4914_v49, %v4866_v30  ;;  %v4868_v23 = vmax.f32 %v5842_v33, 0.0  ;;  %v4719_v56 = vpop.f32.mrb[76].mxu0  ;;  %v4849_v35 = vmax.f32 %v8656_v1, 0.0  ;;  %v4852_v24 = vmax.f32 %v8665_v42, 0.0 }
 0x59d   : > { %v4903_v55 = vmax.f32 %v4902_v39, %v4867_v45  ;;  %v5844_v57 = vadd.f32 %v4719_v56, %v4381_v52  ;;  %v4721_v47 = vpop.f32.mrb[77].mxu0  ;;  %v4845_v56 = vmax.f32 %v8636_v15, 0.0  ;;  %v4851_v15 = vmax.f32 %v8662_v8, 0.0 }
 0x59e   : > { %v4916_v41 = vmax.f32 %v4915_v59, %v4868_v23  ;;  %v5847_v10 = vadd.f32 %v4721_v47, %v4383_v54  ;;  %v4723_v27 = vpop.f32.mrb[78].mxu0  ;;  %v4854_v34 = vmax.f32 %v8679_v37, 0.0 }
 0x59f   : > { %v5845_v36 = vadd.f32 %v5844_v57, %v8890_v62  ;;  %v5850_v53 = vadd.f32 %v4723_v27, %v4385_v18  ;;  %v4725_v13 = vpop.f32.mrb[79].mxu0 }
 0x5a0   : > { %v5848_v22 = vadd.f32 %v5847_v10, %v8891_v2  ;;  %v5853_v12 = vadd.f32 %v4725_v13, %v4387_v6  ;;  %v4850_v10 = vmax.f32 %v8659_v25, 0.0  ;;  %v4856_v25 = vmax.f32 %v8685_v11, 0.0  ;;  %v5044_v11 = vld [vmem:[%s8834_s9] sm:$0xff] }
 0x5a1   : > { %v4869_v14 = vmax.f32 %v5845_v36, 0.0  ;;  %v5851_v40 = vadd.f32 %v5850_v53, %v8892_v21 }
 0x5a2   : > { %v4870_v5 = vmax.f32 %v5848_v22, 0.0  ;;  %v5854_v46 = vadd.f32 %v5853_v12, %v8893_v26  ;;  %v4855_v12 = vmax.f32 %v8682_v61, 0.0 }
 0x5a3   : > { %v4904_v29 = vmax.f32 %v4903_v55, %v4869_v14  ;;  %v4871_v51 = vmax.f32 %v5851_v40, 0.0  ;;  %v4847_v55 = vmax.f32 %v8642_v0, 0.0  ;;  %v4853_v0 = vmax.f32 %v8676_v43, 0.0 }
 0x5a4   : > { %v4917_v44 = vmax.f32 %v4916_v41, %v4870_v5  ;;  %v4872_v49 = vmax.f32 %v5854_v46, 0.0  ;;  %v4762_v16 = vpop.f32.mrb[48].mxu0 }
 0x5a5   : > { %v4905_v9 = vmax.f32 %v4904_v29, %v4871_v51  ;;  %v5764_v63 = vadd.f32 %v4762_v16, %v4311_v20  ;;  %v4764_v3 = vpop.f32.mrb[49].mxu0 }
 0x5a6   : > { %v4918_v4 = vmax.f32 %v4917_v44, %v4872_v49  ;;  %v5766_v30 = vadd.f32 %v4764_v3, %v4313_v38  ;;  %v4766_v33 = vpop.f32.mrb[50].mxu0 }
 0x5a7   : > { %v5768_v52 = vadd.f32 %v4766_v33, %v4315_v17  ;;  %v4768_v39 = vpop.f32.mrb[51].mxu0  ;;  %v4841_v48 = vmax.f32 %v5764_v63, 0.0  ;;  %v4906_v6 = vrot.slane %v4905_v9, 4  ;;  %v5047_v33 = vld [vmem:[%s8834_s9 + $0x18] sm:$0xff] }
 0x5a8   : > { %v5770_v45 = vadd.f32 %v4768_v39, %v4317_v58  ;;  %v4842_v59 = vmax.f32 %v5766_v30, 0.0  ;;  %v4919_v27 = vrot.slane %v4918_v4, 4  ;;  %v5724_v58 = vpack.c.bf16 %v5045_v31, %v5044_v11  ;;  %v5046_v30 = vld [vmem:[%s8834_s9 + $0x10] sm:$0xff] }
 0x5a9   : > { %v4843_v54 = vmax.f32 %v5768_v52, 0.0  ;;  %v4907_v13 = vmax.f32 %v4905_v9, %v4906_v6  ;;  %v5727_v52 = vpack.c.bf16 %v5047_v33, %v5046_v30  ;;  %v8898_v39 = vmov 0.0|0.0  }
 0x5aa   : > { %v4844_v23 = vmax.f32 %v5770_v45, 0.0  ;;  %v4920_v22 = vmax.f32 %v4918_v4, %v4919_v27  ;;  %v5048_v45 = vld [vmem:[%s8834_s9 + $0x20] sm:$0xff]  ;;  %v8899_v27 = vld [vmem:[#allocation19_spill] sm:$0xff] }
 0x5ab   : > { %v4873_v60 = vmax.f32 %v4841_v48, %v4843_v54  ;;  %v4908_v40 = vrot.slane %v4907_v13, 2  ;;  %v5049_v48 = vld [vmem:[%s8834_s9 + $0x28] sm:$0xff] }
 0x5ac   : > { %v4886_v18 = vmax.f32 %v4842_v59, %v4844_v23  ;;  %v4921_v5 = vrot.slane %v4920_v22, 2  ;;  %v5730_v54 = vpack.c.bf16 %v5049_v48, %v5048_v45  ;;  %v5050_v59 = vld [vmem:[%s8834_s9 + $0x30] sm:$0xff]  ;;  %v5051_v23 = vld [vmem:[%s8834_s9 + $0x38] sm:$0xff] }
 0x5ad   : > { %v4874_v57 = vmax.f32 %v4873_v60, %v4845_v56  ;;  %v4909_v7 = vmax.f32 %v4907_v13, %v4908_v40  ;;  %v5733_v56 = vpack.c.bf16 %v5051_v23, %v5050_v59  ;;  %v5052_v60 = vld [vmem:[%s8834_s9 + $0x40] sm:$0xff] }
 0x5ae   : > { %v4887_v47 = vmax.f32 %v4886_v18, %v4846_v50  ;;  %v4922_v29 = vmax.f32 %v4920_v22, %v4921_v5  ;;  %v5053_v50 = vld [vmem:[%s8834_s9 + $0x48] sm:$0xff] }
 0x5af   : > { %v4875_v41 = vmax.f32 %v4874_v57, %v4847_v55  ;;  %v4910_v19 = vrot.slane %v4909_v7, 1  ;;  %v5736_v18 = vpack.c.bf16 %v5053_v50, %v5052_v60  ;;  %v5054_v55 = vld [vmem:[%s8834_s9 + $0x50] sm:$0xff]  ;;  %v5055_v57 = vld [vmem:[%s8834_s9 + $0x58] sm:$0xff] }
 0x5b0   : > { %v4888_v62 = vmax.f32 %v4887_v47, %v4848_v32  ;;  %v4923_v61 = vrot.slane %v4922_v29, 1  ;;  %v5739_v32 = vpack.c.bf16 %v5055_v57, %v5054_v55  ;;  %v5056_v47 = vld [vmem:[%s8834_s9 + $0x60] sm:$0xff] }
 0x5b1   : > { %v4876_v36 = vmax.f32 %v4875_v41, %v4849_v35  ;;  %v4911_v9 = vmax.f32 %v4909_v7, %v4910_v19  ;;  %v5057_v35 = vld [vmem:[%s8834_s9 + $0x68] sm:$0xff]  ;;  %v5058_v41 = vld [vmem:[%s8834_s9 + $0x70] sm:$0xff] }
 0x5b2   : > { %v4889_v53 = vmax.f32 %v4888_v62, %v4850_v10  ;;  %v4924_v3 = vmax.f32 %v4922_v29, %v4923_v61  ;;  %v5742_v6 = vpack.c.bf16 %v5057_v35, %v5056_v47  ;;  %v5059_v10 = vld [vmem:[%s8834_s9 + $0x78] sm:$0xff] }
 0x5b3   : > { %v4877_v2 = vmax.f32 %v4876_v36, %v4851_v15  ;;  %v5745_v62 = vpack.c.bf16 %v5059_v10, %v5058_v41  ;;  %v5402_v36 = vld [vmem:[%s8833_s8] ss:$0 sm:$0xff] }
 0x5b4   : > { %v4890_v1 = vmax.f32 %v4889_v53, %v4852_v24 }
 0x5b5   : > { %v4878_v14 = vmax.f32 %v4877_v2, %v4853_v0  ;;  %v5403_v2 = vld [vmem:[%s8835_s10] ss:$0 sm:$0xff] }
 0x5b6   : > { %v4891_v21 = vmax.f32 %v4890_v1, %v4854_v34 }
 0x5b7   : > { %v4879_v8 = vmax.f32 %v4878_v14, %v4855_v12 }
 0x5b8   : > { %v4892_v26 = vmax.f32 %v4891_v21, %v4856_v25 }
 0x5b9   : > { %v4880_v42 = vrot.slane %v4879_v8, 4 }
 0x5ba   : > { %v4893_v46 = vrot.slane %v4892_v26, 4 }
 0x5bb   : > { %v4881_v43 = vmax.f32 %v4879_v8, %v4880_v42 }
 0x5bc   : > { %v4894_v20 = vmax.f32 %v4892_v26, %v4893_v46 }
 0x5bd   : > { %v4882_v51 = vrot.slane %v4881_v43, 2 }
 0x5be   : > { %v4895_v37 = vrot.slane %v4894_v20, 2 }
 0x5bf   : > { %v4883_v38 = vmax.f32 %v4881_v43, %v4882_v51 }
 0x5c0   : > { %v4896_v44 = vmax.f32 %v4894_v20, %v4895_v37 }
 0x5c1   : > { %v4884_v49 = vrot.slane %v4883_v38, 1 }
 0x5c2   : > { %v4897_v16 = vrot.slane %v4896_v44, 1 }
 0x5c3   : > { %v4885_v17 = vmax.f32 %v4883_v38, %v4884_v49 }
 0x5c4   : > { %v4898_v63 = vmax.f32 %v4896_v44, %v4897_v16 }
 0x5c5   : > { %v4969_v28 = vsel %vm4968_vm0, %v4911_v9, %v4885_v17 }
 0x5c6   : > { %v4970_v4 = vsel %vm4968_vm0, %v4924_v3, %v4898_v63 }
 0x5c7   : > { %5037 = vmatprep.mubr.f32.mxu1 %v4970_v4 }
 0x5c8   : > { %5038 = vmatmul.mubr.f32.vlgmr.msra.gmra.mrb[108].mxu1 %v4969_v28 }
 0x5c9   : > { %5725 = vmatpush3.bf16.msra.mxu1 %v5724_v58  ;;  %5688 = vmatprep.mubr.msk.f32.mxu1 %vm6226_vm1, %v8899_v27 }
 0x5ca   : > { %5726 = vmatprep.subr.bf16.mxu1 %v8898_v39 }
 0x5cd   : > { %5728 = vmatpush3.bf16.msra.mxu1 %v5727_v52 }
 0x5ce   : > { %5729 = vmatprep.subr.bf16.mxu1 %v8898_v39 }
 0x5d1   : > { %5731 = vmatpush3.bf16.msra.mxu1 %v5730_v54 }
 0x5d2   : > { %5732 = vmatprep.subr.bf16.mxu1 %v8898_v39 }
 0x5d5   : > { %5734 = vmatpush3.bf16.msra.mxu1 %v5733_v56 }
 0x5d6   : > { %5735 = vmatprep.subr.bf16.mxu1 %v8898_v39 }
 0x5d9   : > { %5737 = vmatpush3.bf16.msra.mxu1 %v5736_v18 }
 0x5da   : > { %5738 = vmatprep.subr.bf16.mxu1 %v8898_v39 }
 0x5dd   : > { %5740 = vmatpush3.bf16.msra.mxu1 %v5739_v32 }
 0x5de   : > { %5741 = vmatprep.subr.bf16.mxu1 %v8898_v39 }
 0x5e1   : > { %5743 = vmatpush3.bf16.msra.mxu1 %v5742_v6 }
 0x5e2   : > { %5744 = vmatprep.subr.bf16.mxu1 %v8898_v39 }
 0x5e5   : > { %5746 = vmatpush3.bf16.msra.mxu1 %v5745_v62 }
 0x69b   : > { %v5590_v15 = vpop.f32.mrb[108].mxu1 }
 0x69c   : > { %v5591_v24 = vpop.f32.mrb[109].mxu1 }
 0x69d   : > { %v5592_v53 = vadd.f32 %v5591_v24, %v5590_v15 }
 0x69f   : > { %v5040_v0 = vadd.f32 %v5592_v53, %v5402_v36 }
 0x6a1   : > { %v5043_v13 = vmax.f32 %v5040_v0, 0.0 }
 0x6a3   : > { %5689 = vmatmul.mubr.f32.vlgmr.msra.gmra.mrb[110].mxu1 %v5043_v13 }
 0x776   : > { %v5133_v34 = vpop.f32.mrb[110].mxu1 }
 0x777   : > { %v5134_v22 = vadd.f32 %v5403_v2, %v5133_v34  ;;  %v5690_v1 = vpop.f32.mrb[111].mxu1 }
 0x779   : > { %5138 = vst.msk [vmem:[%s389_s19] sm:$0x3] %vm5137_vm2, %v5134_v22 }
 0x77a PF: > { %s21_s17 = sadd.s32 1, %s6211_s17  }
 0x77b   : > { %p18_p5 = scmp.ge.s32.totalorder %s21_s17, 4  }
 0x77d   :  { %20 = sbr.rel (!%p18_p5) target bundleno = 1 (0x1), region = 97 }

</bundles_post_ra>
